<compile_context>
chip_gen: v6e
topology: v6e:2x2x1
jax: 0.10.0
libtpu: 0.0.40
codegen_flags: <defaults>
</compile_context>

<pallas_src>
import functools

import numpy as np
import jax
import jax.numpy as jnp
from jax.experimental import pallas as pl
from jax.experimental.pallas import tpu as pltpu


def _conv3x3_taps(src_ref, w_ref, b_ref, *, Nb, W, M):
    """3x3 VALID conv in flat position-major layout == 9 shifted (M,Ci)@(Ci,Co) matmuls."""
    acc = None
    for dy in range(3):
        for dx in range(3):
            tap = src_ref[pl.ds((dy * W + dx) * Nb, M), :].astype(jnp.bfloat16)
            d = jnp.dot(tap, w_ref[dy * 3 + dx], preferred_element_type=jnp.float32)
            acc = d if acc is None else acc + d
    return jnp.maximum(acc + b_ref[...], 0.0)


def _model_kernel(x_ref, w1_ref, b1_ref, w2_ref, b2_ref, w3_ref, b3_ref,
                  fcw_ref, fcb_ref, o_ref, h1_s, h2_s, h3_s, *, Nb, H, W):
    sz = H - 4                                  # spatial size after two VALID 3x3 convs
    # Exact row counts needed by each stage (receptive-field trimmed), all
    # multiples of Nb (>= 8), so every slice is sublane aligned.
    M2 = ((sz + 1) * (W + 1) + 1) * Nb          # stage-2 positions read by stage 3
    M3 = ((sz - 1) * (W + 1) + 1) * Nb          # stage-3 positions read by the FC

    # ---- stage 1: (BN1-folded) 1x1 conv + ReLU: one (M1, Cin) @ (Cin, 64) matmul ----
    x = x_ref[...].astype(jnp.bfloat16)
    h1 = jnp.dot(x, w1_ref[...], preferred_element_type=jnp.float32)
    h1_s[...] = jnp.maximum(h1 + b1_ref[...], 0.0)

    # ---- stage 2: (BN2-folded) 3x3 VALID conv + ReLU (only rows stage 3 needs) ----
    h2_s[...] = _conv3x3_taps(h1_s, w2_ref, b2_ref, Nb=Nb, W=W, M=M2)

    # ---- stage 3: (BN3-folded) 3x3 VALID conv + ReLU (only rows the FC needs) ----
    h3_s[...] = _conv3x3_taps(h2_s, w3_ref, b3_ref, Nb=Nb, W=W, M=M3)

    # ---- FC: (BN4-folded) gather the sz*sz valid output pixels (each a contiguous,
    #      aligned Nb-row chunk) and accumulate sz*sz (Nb,16)@(16,E) matmuls ----
    acc = None
    for y in range(sz):
        for x_ in range(sz):
            rows = h3_s[pl.ds((y * W + x_) * Nb, Nb), :].astype(jnp.bfloat16)
            d = jnp.dot(rows, fcw_ref[y * sz + x_], preferred_element_type=jnp.float32)
            acc = d if acc is None else acc + d
    o_ref[...] = (acc + fcb_ref[...]).astype(o_ref.dtype)


def _fold_params(p, sz):
    """Fold eval-mode BNs into the adjacent linear ops; cast matmul weights to bf16."""
    f32, bf16 = jnp.float32, jnp.bfloat16
    E = p["fcb"].shape[-1]
    w1 = p["w1"].astype(f32)                                   # (Cin, 64)
    w1f = p["bn1_s"][:, None] * w1
    b1f = p["bn1_b"] @ w1                                      # (64,)
    w2 = p["w2"].astype(f32)                                   # (3,3,64,32) HWIO
    w2f = w2 * p["bn2_s"][None, None, :, None]
    b2f = jnp.einsum("i,hwio->o", p["bn2_b"], w2)              # (32,)
    w3 = p["w3"].astype(f32)                                   # (3,3,32,16) HWIO
    w3f = w3 * p["bn3_s"][None, None, :, None]
    b3f = jnp.einsum("i,hwio->o", p["bn3_b"], w3)              # (16,)
    fcwf = p["bn4_s_hwc"][:, None] * p["fcw_hwc"]              # (16*sz*sz, E), HWC rows
    fcbf = p["fcb"] + p["bn4_b_hwc"] @ p["fcw_hwc"]            # (E,)
    return (w1f.astype(bf16), b1f.reshape(1, -1).astype(f32),
            w2f.reshape(9, 64, 32).astype(bf16), b2f.reshape(1, -1).astype(f32),
            w3f.reshape(9, 32, 16).astype(bf16), b3f.reshape(1, -1).astype(f32),
            fcwf.reshape(sz * sz, 16, E).astype(bf16), fcbf.reshape(1, -1).astype(f32))


def model_forward(x_nchw, p, Nb=8):
    N, Cin, H, W = x_nchw.shape
    assert H == W and Nb % 8 == 0
    sz = H - 4
    E = p["fcb"].shape[-1]
    HW = H * W
    Nblk = -(-N // Nb)
    Npad = Nblk * Nb

    # NCHW -> NHWC, pad batch to a multiple of Nb, then lay out each batch block
    # as flat rows in position-major / batch-minor order: row = pixel*Nb + image.
    x = jnp.transpose(x_nchw, (0, 2, 3, 1)).astype(jnp.float32)
    if Npad != N:
        x = jnp.pad(x, ((0, Npad - N), (0, 0), (0, 0), (0, 0)))
    x = (x.reshape(Nblk, Nb, HW, Cin).transpose(0, 2, 1, 3)    # (Nblk, HW, Nb, Cin)
           .reshape(Nblk * HW * Nb, Cin))

    w1f, b1f, w2f, b2f, w3f, b3f, fcwf, fcbf = _fold_params(p, sz)

    # Exact scratch row counts (no pad rows needed; all multiples of 8).
    M1 = HW * Nb
    M2 = ((sz + 1) * (W + 1) + 1) * Nb
    M3 = ((sz - 1) * (W + 1) + 1) * Nb

    def fs(shape):  # full-array, grid-invariant spec (weights DMA'd once)
        nd = len(shape)
        return pl.BlockSpec(shape, lambda n, _nd=nd: (0,) * _nd)

    kernel = functools.partial(_model_kernel, Nb=Nb, H=H, W=W)
    out = pl.pallas_call(
        kernel,
        out_shape=jax.ShapeDtypeStruct((Npad, E), jnp.float32),
        grid=(Nblk,),
        in_specs=[
            pl.BlockSpec((M1, Cin), lambda n: (n, 0)),
            fs(w1f.shape), fs(b1f.shape),
            fs(w2f.shape), fs(b2f.shape),
            fs(w3f.shape), fs(b3f.shape),
            fs(fcwf.shape), fs(fcbf.shape),
        ],
        out_specs=pl.BlockSpec((Nb, E), lambda n: (n, 0)),
        scratch_shapes=[pltpu.VMEM((M1, 64), jnp.float32),
                        pltpu.VMEM((M2, 32), jnp.float32),
                        pltpu.VMEM((M3, 16), jnp.float32)],
        compiler_params=pltpu.CompilerParams(
            dimension_semantics=("parallel",)),
    )(x, w1f, b1f, w2f, b2f, w3f, b3f, fcwf, fcbf)
    return out[:N]


def make_params(key, Cin, patch_size, E):
    H = 2 * patch_size + 1
    sz = H - 4
    F = 16 * sz * sz
    ks = jax.random.split(key, 24)
    eps = 1e-5

    def bn(kg, kb, km, kv, C):
        gamma = jax.random.uniform(ks[kg], (C,), minval=0.5, maxval=1.5)
        beta = 0.1 * jax.random.normal(ks[kb], (C,))
        mean = 0.1 * jax.random.normal(ks[km], (C,))
        var = jax.random.uniform(ks[kv], (C,), minval=0.5, maxval=1.5)
        scale = gamma / jnp.sqrt(var + eps)
        bias = beta - mean * scale
        return scale.astype(jnp.float32), bias.astype(jnp.float32)

    bn1_s, bn1_b = bn(0, 1, 2, 3, Cin)
    bn2_s, bn2_b = bn(4, 5, 6, 7, 64)
    bn3_s, bn3_b = bn(8, 9, 10, 11, 32)
    bn4_s, bn4_b = bn(12, 13, 14, 15, F)          # PyTorch CHW-flatten order
    w1 = (0.2 * jax.random.normal(ks[16], (Cin, 64))).astype(jnp.float32)
    w2 = (0.05 * jax.random.normal(ks[17], (3, 3, 64, 32))).astype(jnp.float32)  # HWIO
    w3 = (0.07 * jax.random.normal(ks[18], (3, 3, 32, 16))).astype(jnp.float32)  # HWIO
    fcw = (0.05 * jax.random.normal(ks[19], (F, E))).astype(jnp.float32)  # rows in CHW order
    fcb = (0.1 * jax.random.normal(ks[20], (E,))).astype(jnp.float32)

    # permute PyTorch CHW-flatten order -> kernel's HWC order
    def chw_to_hwc_vec(v):
        return jnp.transpose(v.reshape(16, sz, sz), (1, 2, 0)).reshape(-1)

    fcw_hwc = jnp.transpose(fcw.reshape(16, sz, sz, E), (1, 2, 0, 3)).reshape(F, E)
    return dict(
        bn1_s=bn1_s, bn1_b=bn1_b, w1=w1,
        bn2_s=bn2_s, bn2_b=bn2_b, w2=w2,
        bn3_s=bn3_s, bn3_b=bn3_b, w3=w3,
        bn4_s_chw=bn4_s, bn4_b_chw=bn4_b,
        bn4_s_hwc=chw_to_hwc_vec(bn4_s), bn4_b_hwc=chw_to_hwc_vec(bn4_b),
        fcw_chw=fcw, fcw_hwc=fcw_hwc, fcb=fcb)


def reference_forward(x_nchw, p):
    """Pure-JAX reference matching the PyTorch forward (eval-mode BN, unfolded params)."""
    N = x_nchw.shape[0]
    x = jnp.transpose(x_nchw, (0, 2, 3, 1)).astype(jnp.float32)
    dn = ("NHWC", "HWIO", "NHWC")
    h = x * p["bn1_s"] + p["bn1_b"]
    Cin = x.shape[-1]
    h = jax.lax.conv_general_dilated(h, p["w1"].reshape(1, 1, Cin, 64), (1, 1),
                                     "VALID", dimension_numbers=dn)
    h = jnp.maximum(h, 0.0)
    h = h * p["bn2_s"] + p["bn2_b"]
    h = jax.lax.conv_general_dilated(h, p["w2"], (1, 1), "VALID", dimension_numbers=dn)
    h = jnp.maximum(h, 0.0)
    h = h * p["bn3_s"] + p["bn3_b"]
    h = jax.lax.conv_general_dilated(h, p["w3"], (1, 1), "VALID", dimension_numbers=dn)
    h = jnp.maximum(h, 0.0)
    h = jnp.transpose(h, (0, 3, 1, 2)).reshape(N, -1)      # PyTorch CHW flatten
    h = h * p["bn4_s_chw"] + p["bn4_b_chw"]
    return h @ p["fcw_chw"] + p["fcb"]


if __name__ == "__main__":
    number_features, embed_dim, patch_size = 4, 32, 3
    N = 16
    H = W = 2 * patch_size + 1                     # 7
    key = jax.random.PRNGKey(0)
    kx, kp = jax.random.split(key)
    x = jax.random.normal(kx, (N, number_features, H, W), dtype=jnp.float32)
    params = make_params(kp, number_features, patch_size, embed_dim)

    fwd = jax.jit(model_forward)
    out = jax.block_until_ready(fwd(x, params))

    ref = reference_forward(x, params)
    np.testing.assert_allclose(np.asarray(out), np.asarray(ref), rtol=5e-2, atol=5e-2)
    print("KERNEL_OK")
</pallas_src>

<mosaic_0001>
module attributes {stable_mosaic.version = 11 : i64} {
  func.func @_model_kernel(%arg0: i32, %arg1: memref<392x4xf32, #tpu.memory_space<vmem>>, %arg2: memref<4x64xbf16, #tpu.memory_space<vmem>>, %arg3: memref<1x64xf32, #tpu.memory_space<vmem>>, %arg4: memref<9x64x32xbf16, #tpu.memory_space<vmem>>, %arg5: memref<1x32xf32, #tpu.memory_space<vmem>>, %arg6: memref<9x32x16xbf16, #tpu.memory_space<vmem>>, %arg7: memref<1x16xf32, #tpu.memory_space<vmem>>, %arg8: memref<9x16x32xbf16, #tpu.memory_space<vmem>>, %arg9: memref<1x32xf32, #tpu.memory_space<vmem>>, %arg10: memref<8x32xf32, #tpu.memory_space<vmem>>, %arg11: memref<392x64xf32, #tpu.memory_space<vmem>>, %arg12: memref<264x32xf32, #tpu.memory_space<vmem>>, %arg13: memref<136x16xf32, #tpu.memory_space<vmem>>) attributes {dimension_semantics = [#tpu.dimension_semantics<parallel>], iteration_bounds = array<i64: 2>, scalar_prefetch = 0 : i64, scratch_operands = 3 : i64, tpu.core_type = #tpu.core_type<tc>, window_params = [{transform_indices = @transform_0, window_bounds = array<i64: 392, 4>}, {pipeline_mode = #tpu.pipeline_mode<synchronous>, transform_indices = @transform_1, window_bounds = array<i64: 4, 64>}, {pipeline_mode = #tpu.pipeline_mode<synchronous>, transform_indices = @transform_2, window_bounds = array<i64: 1, 64>}, {pipeline_mode = #tpu.pipeline_mode<synchronous>, transform_indices = @transform_3, window_bounds = array<i64: 9, 64, 32>}, {pipeline_mode = #tpu.pipeline_mode<synchronous>, transform_indices = @transform_4, window_bounds = array<i64: 1, 32>}, {pipeline_mode = #tpu.pipeline_mode<synchronous>, transform_indices = @transform_5, window_bounds = array<i64: 9, 32, 16>}, {pipeline_mode = #tpu.pipeline_mode<synchronous>, transform_indices = @transform_6, window_bounds = array<i64: 1, 16>}, {pipeline_mode = #tpu.pipeline_mode<synchronous>, transform_indices = @transform_7, window_bounds = array<i64: 9, 16, 32>}, {pipeline_mode = #tpu.pipeline_mode<synchronous>, transform_indices = @transform_8, window_bounds = array<i64: 1, 32>}, {transform_indices = @transform_9, window_bounds = array<i64: 8, 32>}]} {
    %c0 = arith.constant 0 : index
    %c0_0 = arith.constant 0 : index
    %0 = vector.load %arg1[%c0, %c0_0] : memref<392x4xf32, #tpu.memory_space<vmem>>, vector<392x4xf32>
    %1 = arith.truncf %0 : vector<392x4xf32> to vector<392x4xbf16>
    %c0_1 = arith.constant 0 : index
    %c0_2 = arith.constant 0 : index
    %2 = vector.load %arg2[%c0_1, %c0_2] : memref<4x64xbf16, #tpu.memory_space<vmem>>, vector<4x64xbf16>
    %cst = arith.constant dense<0.000000e+00> : vector<392x64xf32>
    %3 = tpu.matmul %1, %2, %cst {dimension_numbers = #tpu.dot_dimension_numbers<[1], [0], [0], [1], [0, 0, 1, 1], [], []>} : vector<392x4xbf16>, vector<4x64xbf16>, vector<392x64xf32> -> vector<392x64xf32>
    %c0_3 = arith.constant 0 : index
    %c0_4 = arith.constant 0 : index
    %4 = vector.load %arg3[%c0_3, %c0_4] : memref<1x64xf32, #tpu.memory_space<vmem>>, vector<1x64xf32>
    %5 = vector.broadcast %4 : vector<1x64xf32> to vector<392x64xf32>
    %6 = arith.addf %3, %5 : vector<392x64xf32>
    %cst_5 = arith.constant 0.000000e+00 : f32
    %7 = vector.broadcast %cst_5 : f32 to vector<392x64xf32>
    %8 = arith.maximumf %6, %7 : vector<392x64xf32>
    %c0_6 = arith.constant 0 : index
    %c0_7 = arith.constant 0 : index
    %9 = vector.load %arg11[%c0_6, %c0_7] : memref<392x64xf32, #tpu.memory_space<vmem>>, vector<392x64xf32>
    tpu.vector_store %arg11[%c0_6, %c0_7], %8 {strides = array<i32>} : memref<392x64xf32, #tpu.memory_space<vmem>>, vector<392x64xf32>,
    %c0_8 = arith.constant 0 : index
    %c0_9 = arith.constant 0 : index
    %10 = vector.load %arg11[%c0_8, %c0_9] : memref<392x64xf32, #tpu.memory_space<vmem>>, vector<264x64xf32>
    %11 = arith.truncf %10 : vector<264x64xf32> to vector<264x64xbf16>
    %c0_10 = arith.constant 0 : index
    %c0_11 = arith.constant 0 : index
    %c0_12 = arith.constant 0 : index
    %12 = vector.load %arg4[%c0_10, %c0_11, %c0_12] : memref<9x64x32xbf16, #tpu.memory_space<vmem>>, vector<1x64x32xbf16>
    %13 = vector.shape_cast %12 : vector<1x64x32xbf16> to vector<64x32xbf16>
    %cst_13 = arith.constant dense<0.000000e+00> : vector<264x32xf32>
    %14 = tpu.matmul %11, %13, %cst_13 {dimension_numbers = #tpu.dot_dimension_numbers<[1], [0], [0], [1], [0, 0, 1, 1], [], []>} : vector<264x64xbf16>, vector<64x32xbf16>, vector<264x32xf32> -> vector<264x32xf32>
    %c8 = arith.constant 8 : index
    %c0_14 = arith.constant 0 : index
    %15 = vector.load %arg11[%c8, %c0_14] : memref<392x64xf32, #tpu.memory_space<vmem>>, vector<264x64xf32>
    %16 = arith.truncf %15 : vector<264x64xf32> to vector<264x64xbf16>
    %c1 = arith.constant 1 : index
    %c0_15 = arith.constant 0 : index
    %c0_16 = arith.constant 0 : index
    %17 = vector.load %arg4[%c1, %c0_15, %c0_16] : memref<9x64x32xbf16, #tpu.memory_space<vmem>>, vector<1x64x32xbf16>
    %18 = vector.shape_cast %17 : vector<1x64x32xbf16> to vector<64x32xbf16>
    %cst_17 = arith.constant dense<0.000000e+00> : vector<264x32xf32>
    %19 = tpu.matmul %16, %18, %cst_17 {dimension_numbers = #tpu.dot_dimension_numbers<[1], [0], [0], [1], [0, 0, 1, 1], [], []>} : vector<264x64xbf16>, vector<64x32xbf16>, vector<264x32xf32> -> vector<264x32xf32>
    %20 = arith.addf %14, %19 : vector<264x32xf32>
    %c16 = arith.constant 16 : index
    %c0_18 = arith.constant 0 : index
    %21 = vector.load %arg11[%c16, %c0_18] : memref<392x64xf32, #tpu.memory_space<vmem>>, vector<264x64xf32>
    %22 = arith.truncf %21 : vector<264x64xf32> to vector<264x64xbf16>
    %c2 = arith.constant 2 : index
    %c0_19 = arith.constant 0 : index
    %c0_20 = arith.constant 0 : index
    %23 = vector.load %arg4[%c2, %c0_19, %c0_20] : memref<9x64x32xbf16, #tpu.memory_space<vmem>>, vector<1x64x32xbf16>
    %24 = vector.shape_cast %23 : vector<1x64x32xbf16> to vector<64x32xbf16>
    %cst_21 = arith.constant dense<0.000000e+00> : vector<264x32xf32>
    %25 = tpu.matmul %22, %24, %cst_21 {dimension_numbers = #tpu.dot_dimension_numbers<[1], [0], [0], [1], [0, 0, 1, 1], [], []>} : vector<264x64xbf16>, vector<64x32xbf16>, vector<264x32xf32> -> vector<264x32xf32>
    %26 = arith.addf %20, %25 : vector<264x32xf32>
    %c56 = arith.constant 56 : index
    %c0_22 = arith.constant 0 : index
    %27 = vector.load %arg11[%c56, %c0_22] : memref<392x64xf32, #tpu.memory_space<vmem>>, vector<264x64xf32>
    %28 = arith.truncf %27 : vector<264x64xf32> to vector<264x64xbf16>
    %c3 = arith.constant 3 : index
    %c0_23 = arith.constant 0 : index
    %c0_24 = arith.constant 0 : index
    %29 = vector.load %arg4[%c3, %c0_23, %c0_24] : memref<9x64x32xbf16, #tpu.memory_space<vmem>>, vector<1x64x32xbf16>
    %30 = vector.shape_cast %29 : vector<1x64x32xbf16> to vector<64x32xbf16>
    %cst_25 = arith.constant dense<0.000000e+00> : vector<264x32xf32>
    %31 = tpu.matmul %28, %30, %cst_25 {dimension_numbers = #tpu.dot_dimension_numbers<[1], [0], [0], [1], [0, 0, 1, 1], [], []>} : vector<264x64xbf16>, vector<64x32xbf16>, vector<264x32xf32> -> vector<264x32xf32>
    %32 = arith.addf %26, %31 : vector<264x32xf32>
    %c64 = arith.constant 64 : index
    %c0_26 = arith.constant 0 : index
    %33 = vector.load %arg11[%c64, %c0_26] : memref<392x64xf32, #tpu.memory_space<vmem>>, vector<264x64xf32>
    %34 = arith.truncf %33 : vector<264x64xf32> to vector<264x64xbf16>
    %c4 = arith.constant 4 : index
    %c0_27 = arith.constant 0 : index
    %c0_28 = arith.constant 0 : index
    %35 = vector.load %arg4[%c4, %c0_27, %c0_28] : memref<9x64x32xbf16, #tpu.memory_space<vmem>>, vector<1x64x32xbf16>
    %36 = vector.shape_cast %35 : vector<1x64x32xbf16> to vector<64x32xbf16>
    %cst_29 = arith.constant dense<0.000000e+00> : vector<264x32xf32>
    %37 = tpu.matmul %34, %36, %cst_29 {dimension_numbers = #tpu.dot_dimension_numbers<[1], [0], [0], [1], [0, 0, 1, 1], [], []>} : vector<264x64xbf16>, vector<64x32xbf16>, vector<264x32xf32> -> vector<264x32xf32>
    %38 = arith.addf %32, %37 : vector<264x32xf32>
    %c72 = arith.constant 72 : index
    %c0_30 = arith.constant 0 : index
    %39 = vector.load %arg11[%c72, %c0_30] : memref<392x64xf32, #tpu.memory_space<vmem>>, vector<264x64xf32>
    %40 = arith.truncf %39 : vector<264x64xf32> to vector<264x64xbf16>
    %c5 = arith.constant 5 : index
    %c0_31 = arith.constant 0 : index
    %c0_32 = arith.constant 0 : index
    %41 = vector.load %arg4[%c5, %c0_31, %c0_32] : memref<9x64x32xbf16, #tpu.memory_space<vmem>>, vector<1x64x32xbf16>
    %42 = vector.shape_cast %41 : vector<1x64x32xbf16> to vector<64x32xbf16>
    %cst_33 = arith.constant dense<0.000000e+00> : vector<264x32xf32>
    %43 = tpu.matmul %40, %42, %cst_33 {dimension_numbers = #tpu.dot_dimension_numbers<[1], [0], [0], [1], [0, 0, 1, 1], [], []>} : vector<264x64xbf16>, vector<64x32xbf16>, vector<264x32xf32> -> vector<264x32xf32>
    %44 = arith.addf %38, %43 : vector<264x32xf32>
    %c112 = arith.constant 112 : index
    %c0_34 = arith.constant 0 : index
    %45 = vector.load %arg11[%c112, %c0_34] : memref<392x64xf32, #tpu.memory_space<vmem>>, vector<264x64xf32>
    %46 = arith.truncf %45 : vector<264x64xf32> to vector<264x64xbf16>
    %c6 = arith.constant 6 : index
    %c0_35 = arith.constant 0 : index
    %c0_36 = arith.constant 0 : index
    %47 = vector.load %arg4[%c6, %c0_35, %c0_36] : memref<9x64x32xbf16, #tpu.memory_space<vmem>>, vector<1x64x32xbf16>
    %48 = vector.shape_cast %47 : vector<1x64x32xbf16> to vector<64x32xbf16>
    %cst_37 = arith.constant dense<0.000000e+00> : vector<264x32xf32>
    %49 = tpu.matmul %46, %48, %cst_37 {dimension_numbers = #tpu.dot_dimension_numbers<[1], [0], [0], [1], [0, 0, 1, 1], [], []>} : vector<264x64xbf16>, vector<64x32xbf16>, vector<264x32xf32> -> vector<264x32xf32>
    %50 = arith.addf %44, %49 : vector<264x32xf32>
    %c120 = arith.constant 120 : index
    %c0_38 = arith.constant 0 : index
    %51 = vector.load %arg11[%c120, %c0_38] : memref<392x64xf32, #tpu.memory_space<vmem>>, vector<264x64xf32>
    %52 = arith.truncf %51 : vector<264x64xf32> to vector<264x64xbf16>
    %c7 = arith.constant 7 : index
    %c0_39 = arith.constant 0 : index
    %c0_40 = arith.constant 0 : index
    %53 = vector.load %arg4[%c7, %c0_39, %c0_40] : memref<9x64x32xbf16, #tpu.memory_space<vmem>>, vector<1x64x32xbf16>
    %54 = vector.shape_cast %53 : vector<1x64x32xbf16> to vector<64x32xbf16>
    %cst_41 = arith.constant dense<0.000000e+00> : vector<264x32xf32>
    %55 = tpu.matmul %52, %54, %cst_41 {dimension_numbers = #tpu.dot_dimension_numbers<[1], [0], [0], [1], [0, 0, 1, 1], [], []>} : vector<264x64xbf16>, vector<64x32xbf16>, vector<264x32xf32> -> vector<264x32xf32>
    %56 = arith.addf %50, %55 : vector<264x32xf32>
    %c128 = arith.constant 128 : index
    %c0_42 = arith.constant 0 : index
    %57 = vector.load %arg11[%c128, %c0_42] : memref<392x64xf32, #tpu.memory_space<vmem>>, vector<264x64xf32>
    %58 = arith.truncf %57 : vector<264x64xf32> to vector<264x64xbf16>
    %c8_43 = arith.constant 8 : index
    %c0_44 = arith.constant 0 : index
    %c0_45 = arith.constant 0 : index
    %59 = vector.load %arg4[%c8_43, %c0_44, %c0_45] : memref<9x64x32xbf16, #tpu.memory_space<vmem>>, vector<1x64x32xbf16>
    %60 = vector.shape_cast %59 : vector<1x64x32xbf16> to vector<64x32xbf16>
    %cst_46 = arith.constant dense<0.000000e+00> : vector<264x32xf32>
    %61 = tpu.matmul %58, %60, %cst_46 {dimension_numbers = #tpu.dot_dimension_numbers<[1], [0], [0], [1], [0, 0, 1, 1], [], []>} : vector<264x64xbf16>, vector<64x32xbf16>, vector<264x32xf32> -> vector<264x32xf32>
    %62 = arith.addf %56, %61 : vector<264x32xf32>
    %c0_47 = arith.constant 0 : index
    %c0_48 = arith.constant 0 : index
    %63 = vector.load %arg5[%c0_47, %c0_48] : memref<1x32xf32, #tpu.memory_space<vmem>>, vector<1x32xf32>
    %64 = vector.broadcast %63 : vector<1x32xf32> to vector<264x32xf32>
    %65 = arith.addf %62, %64 : vector<264x32xf32>
    %cst_49 = arith.constant 0.000000e+00 : f32
    %66 = vector.broadcast %cst_49 : f32 to vector<264x32xf32>
    %67 = arith.maximumf %65, %66 : vector<264x32xf32>
    %c0_50 = arith.constant 0 : index
    %c0_51 = arith.constant 0 : index
    %68 = vector.load %arg12[%c0_50, %c0_51] : memref<264x32xf32, #tpu.memory_space<vmem>>, vector<264x32xf32>
    tpu.vector_store %arg12[%c0_50, %c0_51], %67 {strides = array<i32>} : memref<264x32xf32, #tpu.memory_space<vmem>>, vector<264x32xf32>,
    %c0_52 = arith.constant 0 : index
    %c0_53 = arith.constant 0 : index
    %69 = vector.load %arg12[%c0_52, %c0_53] : memref<264x32xf32, #tpu.memory_space<vmem>>, vector<136x32xf32>
    %70 = arith.truncf %69 : vector<136x32xf32> to vector<136x32xbf16>
    %c0_54 = arith.constant 0 : index
    %c0_55 = arith.constant 0 : index
    %c0_56 = arith.constant 0 : index
    %71 = vector.load %arg6[%c0_54, %c0_55, %c0_56] : memref<9x32x16xbf16, #tpu.memory_space<vmem>>, vector<1x32x16xbf16>
    %72 = vector.shape_cast %71 : vector<1x32x16xbf16> to vector<32x16xbf16>
    %cst_57 = arith.constant dense<0.000000e+00> : vector<136x16xf32>
    %73 = tpu.matmul %70, %72, %cst_57 {dimension_numbers = #tpu.dot_dimension_numbers<[1], [0], [0], [1], [0, 0, 1, 1], [], []>} : vector<136x32xbf16>, vector<32x16xbf16>, vector<136x16xf32> -> vector<136x16xf32>
    %c8_58 = arith.constant 8 : index
    %c0_59 = arith.constant 0 : index
    %74 = vector.load %arg12[%c8_58, %c0_59] : memref<264x32xf32, #tpu.memory_space<vmem>>, vector<136x32xf32>
    %75 = arith.truncf %74 : vector<136x32xf32> to vector<136x32xbf16>
    %c1_60 = arith.constant 1 : index
    %c0_61 = arith.constant 0 : index
    %c0_62 = arith.constant 0 : index
    %76 = vector.load %arg6[%c1_60, %c0_61, %c0_62] : memref<9x32x16xbf16, #tpu.memory_space<vmem>>, vector<1x32x16xbf16>
    %77 = vector.shape_cast %76 : vector<1x32x16xbf16> to vector<32x16xbf16>
    %cst_63 = arith.constant dense<0.000000e+00> : vector<136x16xf32>
    %78 = tpu.matmul %75, %77, %cst_63 {dimension_numbers = #tpu.dot_dimension_numbers<[1], [0], [0], [1], [0, 0, 1, 1], [], []>} : vector<136x32xbf16>, vector<32x16xbf16>, vector<136x16xf32> -> vector<136x16xf32>
    %79 = arith.addf %73, %78 : vector<136x16xf32>
    %c16_64 = arith.constant 16 : index
    %c0_65 = arith.constant 0 : index
    %80 = vector.load %arg12[%c16_64, %c0_65] : memref<264x32xf32, #tpu.memory_space<vmem>>, vector<136x32xf32>
    %81 = arith.truncf %80 : vector<136x32xf32> to vector<136x32xbf16>
    %c2_66 = arith.constant 2 : index
    %c0_67 = arith.constant 0 : index
    %c0_68 = arith.constant 0 : index
    %82 = vector.load %arg6[%c2_66, %c0_67, %c0_68] : memref<9x32x16xbf16, #tpu.memory_space<vmem>>, vector<1x32x16xbf16>
    %83 = vector.shape_cast %82 : vector<1x32x16xbf16> to vector<32x16xbf16>
    %cst_69 = arith.constant dense<0.000000e+00> : vector<136x16xf32>
    %84 = tpu.matmul %81, %83, %cst_69 {dimension_numbers = #tpu.dot_dimension_numbers<[1], [0], [0], [1], [0, 0, 1, 1], [], []>} : vector<136x32xbf16>, vector<32x16xbf16>, vector<136x16xf32> -> vector<136x16xf32>
    %85 = arith.addf %79, %84 : vector<136x16xf32>
    %c56_70 = arith.constant 56 : index
    %c0_71 = arith.constant 0 : index
    %86 = vector.load %arg12[%c56_70, %c0_71] : memref<264x32xf32, #tpu.memory_space<vmem>>, vector<136x32xf32>
    %87 = arith.truncf %86 : vector<136x32xf32> to vector<136x32xbf16>
    %c3_72 = arith.constant 3 : index
    %c0_73 = arith.constant 0 : index
    %c0_74 = arith.constant 0 : index
    %88 = vector.load %arg6[%c3_72, %c0_73, %c0_74] : memref<9x32x16xbf16, #tpu.memory_space<vmem>>, vector<1x32x16xbf16>
    %89 = vector.shape_cast %88 : vector<1x32x16xbf16> to vector<32x16xbf16>
    %cst_75 = arith.constant dense<0.000000e+00> : vector<136x16xf32>
    %90 = tpu.matmul %87, %89, %cst_75 {dimension_numbers = #tpu.dot_dimension_numbers<[1], [0], [0], [1], [0, 0, 1, 1], [], []>} : vector<136x32xbf16>, vector<32x16xbf16>, vector<136x16xf32> -> vector<136x16xf32>
    %91 = arith.addf %85, %90 : vector<136x16xf32>
    %c64_76 = arith.constant 64 : index
    %c0_77 = arith.constant 0 : index
    %92 = vector.load %arg12[%c64_76, %c0_77] : memref<264x32xf32, #tpu.memory_space<vmem>>, vector<136x32xf32>
    %93 = arith.truncf %92 : vector<136x32xf32> to vector<136x32xbf16>
    %c4_78 = arith.constant 4 : index
    %c0_79 = arith.constant 0 : index
    %c0_80 = arith.constant 0 : index
    %94 = vector.load %arg6[%c4_78, %c0_79, %c0_80] : memref<9x32x16xbf16, #tpu.memory_space<vmem>>, vector<1x32x16xbf16>
    %95 = vector.shape_cast %94 : vector<1x32x16xbf16> to vector<32x16xbf16>
    %cst_81 = arith.constant dense<0.000000e+00> : vector<136x16xf32>
    %96 = tpu.matmul %93, %95, %cst_81 {dimension_numbers = #tpu.dot_dimension_numbers<[1], [0], [0], [1], [0, 0, 1, 1], [], []>} : vector<136x32xbf16>, vector<32x16xbf16>, vector<136x16xf32> -> vector<136x16xf32>
    %97 = arith.addf %91, %96 : vector<136x16xf32>
    %c72_82 = arith.constant 72 : index
    %c0_83 = arith.constant 0 : index
    %98 = vector.load %arg12[%c72_82, %c0_83] : memref<264x32xf32, #tpu.memory_space<vmem>>, vector<136x32xf32>
    %99 = arith.truncf %98 : vector<136x32xf32> to vector<136x32xbf16>
    %c5_84 = arith.constant 5 : index
    %c0_85 = arith.constant 0 : index
    %c0_86 = arith.constant 0 : index
    %100 = vector.load %arg6[%c5_84, %c0_85, %c0_86] : memref<9x32x16xbf16, #tpu.memory_space<vmem>>, vector<1x32x16xbf16>
    %101 = vector.shape_cast %100 : vector<1x32x16xbf16> to vector<32x16xbf16>
    %cst_87 = arith.constant dense<0.000000e+00> : vector<136x16xf32>
    %102 = tpu.matmul %99, %101, %cst_87 {dimension_numbers = #tpu.dot_dimension_numbers<[1], [0], [0], [1], [0, 0, 1, 1], [], []>} : vector<136x32xbf16>, vector<32x16xbf16>, vector<136x16xf32> -> vector<136x16xf32>
    %103 = arith.addf %97, %102 : vector<136x16xf32>
    %c112_88 = arith.constant 112 : index
    %c0_89 = arith.constant 0 : index
    %104 = vector.load %arg12[%c112_88, %c0_89] : memref<264x32xf32, #tpu.memory_space<vmem>>, vector<136x32xf32>
    %105 = arith.truncf %104 : vector<136x32xf32> to vector<136x32xbf16>
    %c6_90 = arith.constant 6 : index
    %c0_91 = arith.constant 0 : index
    %c0_92 = arith.constant 0 : index
    %106 = vector.load %arg6[%c6_90, %c0_91, %c0_92] : memref<9x32x16xbf16, #tpu.memory_space<vmem>>, vector<1x32x16xbf16>
    %107 = vector.shape_cast %106 : vector<1x32x16xbf16> to vector<32x16xbf16>
    %cst_93 = arith.constant dense<0.000000e+00> : vector<136x16xf32>
    %108 = tpu.matmul %105, %107, %cst_93 {dimension_numbers = #tpu.dot_dimension_numbers<[1], [0], [0], [1], [0, 0, 1, 1], [], []>} : vector<136x32xbf16>, vector<32x16xbf16>, vector<136x16xf32> -> vector<136x16xf32>
    %109 = arith.addf %103, %108 : vector<136x16xf32>
    %c120_94 = arith.constant 120 : index
    %c0_95 = arith.constant 0 : index
    %110 = vector.load %arg12[%c120_94, %c0_95] : memref<264x32xf32, #tpu.memory_space<vmem>>, vector<136x32xf32>
    %111 = arith.truncf %110 : vector<136x32xf32> to vector<136x32xbf16>
    %c7_96 = arith.constant 7 : index
    %c0_97 = arith.constant 0 : index
    %c0_98 = arith.constant 0 : index
    %112 = vector.load %arg6[%c7_96, %c0_97, %c0_98] : memref<9x32x16xbf16, #tpu.memory_space<vmem>>, vector<1x32x16xbf16>
    %113 = vector.shape_cast %112 : vector<1x32x16xbf16> to vector<32x16xbf16>
    %cst_99 = arith.constant dense<0.000000e+00> : vector<136x16xf32>
    %114 = tpu.matmul %111, %113, %cst_99 {dimension_numbers = #tpu.dot_dimension_numbers<[1], [0], [0], [1], [0, 0, 1, 1], [], []>} : vector<136x32xbf16>, vector<32x16xbf16>, vector<136x16xf32> -> vector<136x16xf32>
    %115 = arith.addf %109, %114 : vector<136x16xf32>
    %c128_100 = arith.constant 128 : index
    %c0_101 = arith.constant 0 : index
    %116 = vector.load %arg12[%c128_100, %c0_101] : memref<264x32xf32, #tpu.memory_space<vmem>>, vector<136x32xf32>
    %117 = arith.truncf %116 : vector<136x32xf32> to vector<136x32xbf16>
    %c8_102 = arith.constant 8 : index
    %c0_103 = arith.constant 0 : index
    %c0_104 = arith.constant 0 : index
    %118 = vector.load %arg6[%c8_102, %c0_103, %c0_104] : memref<9x32x16xbf16, #tpu.memory_space<vmem>>, vector<1x32x16xbf16>
    %119 = vector.shape_cast %118 : vector<1x32x16xbf16> to vector<32x16xbf16>
    %cst_105 = arith.constant dense<0.000000e+00> : vector<136x16xf32>
    %120 = tpu.matmul %117, %119, %cst_105 {dimension_numbers = #tpu.dot_dimension_numbers<[1], [0], [0], [1], [0, 0, 1, 1], [], []>} : vector<136x32xbf16>, vector<32x16xbf16>, vector<136x16xf32> -> vector<136x16xf32>
    %121 = arith.addf %115, %120 : vector<136x16xf32>
    %c0_106 = arith.constant 0 : index
    %c0_107 = arith.constant 0 : index
    %122 = vector.load %arg7[%c0_106, %c0_107] : memref<1x16xf32, #tpu.memory_space<vmem>>, vector<1x16xf32>
    %123 = vector.broadcast %122 : vector<1x16xf32> to vector<136x16xf32>
    %124 = arith.addf %121, %123 : vector<136x16xf32>
    %cst_108 = arith.constant 0.000000e+00 : f32
    %125 = vector.broadcast %cst_108 : f32 to vector<136x16xf32>
    %126 = arith.maximumf %124, %125 : vector<136x16xf32>
    %c0_109 = arith.constant 0 : index
    %c0_110 = arith.constant 0 : index
    %127 = vector.load %arg13[%c0_109, %c0_110] : memref<136x16xf32, #tpu.memory_space<vmem>>, vector<136x16xf32>
    tpu.vector_store %arg13[%c0_109, %c0_110], %126 {strides = array<i32>} : memref<136x16xf32, #tpu.memory_space<vmem>>, vector<136x16xf32>,
    %c0_111 = arith.constant 0 : index
    %c0_112 = arith.constant 0 : index
    %128 = vector.load %arg13[%c0_111, %c0_112] : memref<136x16xf32, #tpu.memory_space<vmem>>, vector<8x16xf32>
    %129 = arith.truncf %128 : vector<8x16xf32> to vector<8x16xbf16>
    %c0_113 = arith.constant 0 : index
    %c0_114 = arith.constant 0 : index
    %c0_115 = arith.constant 0 : index
    %130 = vector.load %arg8[%c0_113, %c0_114, %c0_115] : memref<9x16x32xbf16, #tpu.memory_space<vmem>>, vector<1x16x32xbf16>
    %131 = vector.shape_cast %130 : vector<1x16x32xbf16> to vector<16x32xbf16>
    %cst_116 = arith.constant dense<0.000000e+00> : vector<8x32xf32>
    %132 = tpu.matmul %129, %131, %cst_116 {dimension_numbers = #tpu.dot_dimension_numbers<[1], [0], [0], [1], [0, 0, 1, 1], [], []>} : vector<8x16xbf16>, vector<16x32xbf16>, vector<8x32xf32> -> vector<8x32xf32>
    %c8_117 = arith.constant 8 : index
    %c0_118 = arith.constant 0 : index
    %133 = vector.load %arg13[%c8_117, %c0_118] : memref<136x16xf32, #tpu.memory_space<vmem>>, vector<8x16xf32>
    %134 = arith.truncf %133 : vector<8x16xf32> to vector<8x16xbf16>
    %c1_119 = arith.constant 1 : index
    %c0_120 = arith.constant 0 : index
    %c0_121 = arith.constant 0 : index
    %135 = vector.load %arg8[%c1_119, %c0_120, %c0_121] : memref<9x16x32xbf16, #tpu.memory_space<vmem>>, vector<1x16x32xbf16>
    %136 = vector.shape_cast %135 : vector<1x16x32xbf16> to vector<16x32xbf16>
    %cst_122 = arith.constant dense<0.000000e+00> : vector<8x32xf32>
    %137 = tpu.matmul %134, %136, %cst_122 {dimension_numbers = #tpu.dot_dimension_numbers<[1], [0], [0], [1], [0, 0, 1, 1], [], []>} : vector<8x16xbf16>, vector<16x32xbf16>, vector<8x32xf32> -> vector<8x32xf32>
    %138 = arith.addf %132, %137 : vector<8x32xf32>
    %c16_123 = arith.constant 16 : index
    %c0_124 = arith.constant 0 : index
    %139 = vector.load %arg13[%c16_123, %c0_124] : memref<136x16xf32, #tpu.memory_space<vmem>>, vector<8x16xf32>
    %140 = arith.truncf %139 : vector<8x16xf32> to vector<8x16xbf16>
    %c2_125 = arith.constant 2 : index
    %c0_126 = arith.constant 0 : index
    %c0_127 = arith.constant 0 : index
    %141 = vector.load %arg8[%c2_125, %c0_126, %c0_127] : memref<9x16x32xbf16, #tpu.memory_space<vmem>>, vector<1x16x32xbf16>
    %142 = vector.shape_cast %141 : vector<1x16x32xbf16> to vector<16x32xbf16>
    %cst_128 = arith.constant dense<0.000000e+00> : vector<8x32xf32>
    %143 = tpu.matmul %140, %142, %cst_128 {dimension_numbers = #tpu.dot_dimension_numbers<[1], [0], [0], [1], [0, 0, 1, 1], [], []>} : vector<8x16xbf16>, vector<16x32xbf16>, vector<8x32xf32> -> vector<8x32xf32>
    %144 = arith.addf %138, %143 : vector<8x32xf32>
    %c56_129 = arith.constant 56 : index
    %c0_130 = arith.constant 0 : index
    %145 = vector.load %arg13[%c56_129, %c0_130] : memref<136x16xf32, #tpu.memory_space<vmem>>, vector<8x16xf32>
    %146 = arith.truncf %145 : vector<8x16xf32> to vector<8x16xbf16>
    %c3_131 = arith.constant 3 : index
    %c0_132 = arith.constant 0 : index
    %c0_133 = arith.constant 0 : index
    %147 = vector.load %arg8[%c3_131, %c0_132, %c0_133] : memref<9x16x32xbf16, #tpu.memory_space<vmem>>, vector<1x16x32xbf16>
    %148 = vector.shape_cast %147 : vector<1x16x32xbf16> to vector<16x32xbf16>
    %cst_134 = arith.constant dense<0.000000e+00> : vector<8x32xf32>
    %149 = tpu.matmul %146, %148, %cst_134 {dimension_numbers = #tpu.dot_dimension_numbers<[1], [0], [0], [1], [0, 0, 1, 1], [], []>} : vector<8x16xbf16>, vector<16x32xbf16>, vector<8x32xf32> -> vector<8x32xf32>
    %150 = arith.addf %144, %149 : vector<8x32xf32>
    %c64_135 = arith.constant 64 : index
    %c0_136 = arith.constant 0 : index
    %151 = vector.load %arg13[%c64_135, %c0_136] : memref<136x16xf32, #tpu.memory_space<vmem>>, vector<8x16xf32>
    %152 = arith.truncf %151 : vector<8x16xf32> to vector<8x16xbf16>
    %c4_137 = arith.constant 4 : index
    %c0_138 = arith.constant 0 : index
    %c0_139 = arith.constant 0 : index
    %153 = vector.load %arg8[%c4_137, %c0_138, %c0_139] : memref<9x16x32xbf16, #tpu.memory_space<vmem>>, vector<1x16x32xbf16>
    %154 = vector.shape_cast %153 : vector<1x16x32xbf16> to vector<16x32xbf16>
    %cst_140 = arith.constant dense<0.000000e+00> : vector<8x32xf32>
    %155 = tpu.matmul %152, %154, %cst_140 {dimension_numbers = #tpu.dot_dimension_numbers<[1], [0], [0], [1], [0, 0, 1, 1], [], []>} : vector<8x16xbf16>, vector<16x32xbf16>, vector<8x32xf32> -> vector<8x32xf32>
    %156 = arith.addf %150, %155 : vector<8x32xf32>
    %c72_141 = arith.constant 72 : index
    %c0_142 = arith.constant 0 : index
    %157 = vector.load %arg13[%c72_141, %c0_142] : memref<136x16xf32, #tpu.memory_space<vmem>>, vector<8x16xf32>
    %158 = arith.truncf %157 : vector<8x16xf32> to vector<8x16xbf16>
    %c5_143 = arith.constant 5 : index
    %c0_144 = arith.constant 0 : index
    %c0_145 = arith.constant 0 : index
    %159 = vector.load %arg8[%c5_143, %c0_144, %c0_145] : memref<9x16x32xbf16, #tpu.memory_space<vmem>>, vector<1x16x32xbf16>
    %160 = vector.shape_cast %159 : vector<1x16x32xbf16> to vector<16x32xbf16>
    %cst_146 = arith.constant dense<0.000000e+00> : vector<8x32xf32>
    %161 = tpu.matmul %158, %160, %cst_146 {dimension_numbers = #tpu.dot_dimension_numbers<[1], [0], [0], [1], [0, 0, 1, 1], [], []>} : vector<8x16xbf16>, vector<16x32xbf16>, vector<8x32xf32> -> vector<8x32xf32>
    %162 = arith.addf %156, %161 : vector<8x32xf32>
    %c112_147 = arith.constant 112 : index
    %c0_148 = arith.constant 0 : index
    %163 = vector.load %arg13[%c112_147, %c0_148] : memref<136x16xf32, #tpu.memory_space<vmem>>, vector<8x16xf32>
    %164 = arith.truncf %163 : vector<8x16xf32> to vector<8x16xbf16>
    %c6_149 = arith.constant 6 : index
    %c0_150 = arith.constant 0 : index
    %c0_151 = arith.constant 0 : index
    %165 = vector.load %arg8[%c6_149, %c0_150, %c0_151] : memref<9x16x32xbf16, #tpu.memory_space<vmem>>, vector<1x16x32xbf16>
    %166 = vector.shape_cast %165 : vector<1x16x32xbf16> to vector<16x32xbf16>
    %cst_152 = arith.constant dense<0.000000e+00> : vector<8x32xf32>
    %167 = tpu.matmul %164, %166, %cst_152 {dimension_numbers = #tpu.dot_dimension_numbers<[1], [0], [0], [1], [0, 0, 1, 1], [], []>} : vector<8x16xbf16>, vector<16x32xbf16>, vector<8x32xf32> -> vector<8x32xf32>
    %168 = arith.addf %162, %167 : vector<8x32xf32>
    %c120_153 = arith.constant 120 : index
    %c0_154 = arith.constant 0 : index
    %169 = vector.load %arg13[%c120_153, %c0_154] : memref<136x16xf32, #tpu.memory_space<vmem>>, vector<8x16xf32>
    %170 = arith.truncf %169 : vector<8x16xf32> to vector<8x16xbf16>
    %c7_155 = arith.constant 7 : index
    %c0_156 = arith.constant 0 : index
    %c0_157 = arith.constant 0 : index
    %171 = vector.load %arg8[%c7_155, %c0_156, %c0_157] : memref<9x16x32xbf16, #tpu.memory_space<vmem>>, vector<1x16x32xbf16>
    %172 = vector.shape_cast %171 : vector<1x16x32xbf16> to vector<16x32xbf16>
    %cst_158 = arith.constant dense<0.000000e+00> : vector<8x32xf32>
    %173 = tpu.matmul %170, %172, %cst_158 {dimension_numbers = #tpu.dot_dimension_numbers<[1], [0], [0], [1], [0, 0, 1, 1], [], []>} : vector<8x16xbf16>, vector<16x32xbf16>, vector<8x32xf32> -> vector<8x32xf32>
    %174 = arith.addf %168, %173 : vector<8x32xf32>
    %c128_159 = arith.constant 128 : index
    %c0_160 = arith.constant 0 : index
    %175 = vector.load %arg13[%c128_159, %c0_160] : memref<136x16xf32, #tpu.memory_space<vmem>>, vector<8x16xf32>
    %176 = arith.truncf %175 : vector<8x16xf32> to vector<8x16xbf16>
    %c8_161 = arith.constant 8 : index
    %c0_162 = arith.constant 0 : index
    %c0_163 = arith.constant 0 : index
    %177 = vector.load %arg8[%c8_161, %c0_162, %c0_163] : memref<9x16x32xbf16, #tpu.memory_space<vmem>>, vector<1x16x32xbf16>
    %178 = vector.shape_cast %177 : vector<1x16x32xbf16> to vector<16x32xbf16>
    %cst_164 = arith.constant dense<0.000000e+00> : vector<8x32xf32>
    %179 = tpu.matmul %176, %178, %cst_164 {dimension_numbers = #tpu.dot_dimension_numbers<[1], [0], [0], [1], [0, 0, 1, 1], [], []>} : vector<8x16xbf16>, vector<16x32xbf16>, vector<8x32xf32> -> vector<8x32xf32>
    %180 = arith.addf %174, %179 : vector<8x32xf32>
    %c0_165 = arith.constant 0 : index
    %c0_166 = arith.constant 0 : index
    %181 = vector.load %arg9[%c0_165, %c0_166] : memref<1x32xf32, #tpu.memory_space<vmem>>, vector<1x32xf32>
    %182 = vector.broadcast %181 : vector<1x32xf32> to vector<8x32xf32>
    %183 = arith.addf %180, %182 : vector<8x32xf32>
    %c0_167 = arith.constant 0 : index
    %c0_168 = arith.constant 0 : index
    %184 = vector.load %arg10[%c0_167, %c0_168] : memref<8x32xf32, #tpu.memory_space<vmem>>, vector<8x32xf32>
    tpu.vector_store %arg10[%c0_167, %c0_168], %183 {strides = array<i32>} : memref<8x32xf32, #tpu.memory_space<vmem>>, vector<8x32xf32>,
    return
  }
  func.func @transform_0(%arg0: i32) -> (i32, i32) {
    %c0_i32 = arith.constant 0 : i32
    %c0_i32_0 = arith.constant 0 : i32
    return %arg0, %c0_i32 : i32, i32
  }
  func.func @transform_1(%arg0: i32) -> (i32, i32) {
    %c0_i32 = arith.constant 0 : i32
    %c0_i32_0 = arith.constant 0 : i32
    %c0_i32_1 = arith.constant 0 : i32
    return %c0_i32, %c0_i32_0 : i32, i32
  }
  func.func @transform_2(%arg0: i32) -> (i32, i32) {
    %c0_i32 = arith.constant 0 : i32
    %c0_i32_0 = arith.constant 0 : i32
    %c0_i32_1 = arith.constant 0 : i32
    return %c0_i32, %c0_i32_0 : i32, i32
  }
  func.func @transform_3(%arg0: i32) -> (i32, i32, i32) {
    %c0_i32 = arith.constant 0 : i32
    %c0_i32_0 = arith.constant 0 : i32
    %c0_i32_1 = arith.constant 0 : i32
    %c0_i32_2 = arith.constant 0 : i32
    return %c0_i32, %c0_i32_0, %c0_i32_1 : i32, i32, i32
  }
  func.func @transform_4(%arg0: i32) -> (i32, i32) {
    %c0_i32 = arith.constant 0 : i32
    %c0_i32_0 = arith.constant 0 : i32
    %c0_i32_1 = arith.constant 0 : i32
    return %c0_i32, %c0_i32_0 : i32, i32
  }
  func.func @transform_5(%arg0: i32) -> (i32, i32, i32) {
    %c0_i32 = arith.constant 0 : i32
    %c0_i32_0 = arith.constant 0 : i32
    %c0_i32_1 = arith.constant 0 : i32
    %c0_i32_2 = arith.constant 0 : i32
    return %c0_i32, %c0_i32_0, %c0_i32_1 : i32, i32, i32
  }
  func.func @transform_6(%arg0: i32) -> (i32, i32) {
    %c0_i32 = arith.constant 0 : i32
    %c0_i32_0 = arith.constant 0 : i32
    %c0_i32_1 = arith.constant 0 : i32
    return %c0_i32, %c0_i32_0 : i32, i32
  }
  func.func @transform_7(%arg0: i32) -> (i32, i32, i32) {
    %c0_i32 = arith.constant 0 : i32
    %c0_i32_0 = arith.constant 0 : i32
    %c0_i32_1 = arith.constant 0 : i32
    %c0_i32_2 = arith.constant 0 : i32
    return %c0_i32, %c0_i32_0, %c0_i32_1 : i32, i32, i32
  }
  func.func @transform_8(%arg0: i32) -> (i32, i32) {
    %c0_i32 = arith.constant 0 : i32
    %c0_i32_0 = arith.constant 0 : i32
    %c0_i32_1 = arith.constant 0 : i32
    return %c0_i32, %c0_i32_0 : i32, i32
  }
  func.func @transform_9(%arg0: i32) -> (i32, i32) {
    %c0_i32 = arith.constant 0 : i32
    %c0_i32_0 = arith.constant 0 : i32
    return %arg0, %c0_i32 : i32, i32
  }
}

</mosaic_0001>

<bundles_post_ra>
// kernel: model_forward.1
= control target key start
LH: loop header
LB: loop body
LE: loop exit
PB: predicated region body
PF: predicated region fallthrough
CT: control target
= control target key end

     0   :  { %14 = vsyncpa [#allocation6], 0  ;;  %s11143_s0 = inlined_call_operand.vmem [shape: f32[784,4], index: 0, kind: input, shape index: {}]   ;;  %s11144_s1 = inlined_call_operand.vmem [shape: bf16[4,64], index: 1, kind: input, shape index: {}]   ;;  %s11145_s2 = inlined_call_operand.vmem [shape: f32[1,64], index: 2, kind: input, shape index: {}]   ;;  %s11146_s3 = inlined_call_operand.vmem [shape: bf16[9,64,32], index: 3, kind: input, shape index: {}]   ;;  %s11147_s4 = inlined_call_operand.vmem [shape: f32[1,32], index: 4, kind: input, shape index: {}]   ;;  %s11148_s5 = inlined_call_operand.vmem [shape: bf16[9,32,16], index: 5, kind: input, shape index: {}]   ;;  %s11149_s6 = inlined_call_operand.vmem [shape: f32[1,16], index: 6, kind: input, shape index: {}]   ;;  %s11150_s7 = inlined_call_operand.vmem [shape: bf16[9,16,32], index: 7, kind: input, shape index: {}]   ;;  %s11151_s8 = inlined_call_operand.vmem [shape: f32[1,32], index: 8, kind: input, shape index: {}]   ;;  %s11152_s9 = inlined_call_operand.hbm [shape: f32[16,32], index: 9, kind: output, shape index: {}]  }
   0x1   :  { %16 = vsyncpa [#allocation6 + $0x1], 0  ;;  %s8359_s30 = smov 0   ;;  %s8361_s10 = smov 0  }
   0x2   :  { %s8363_s11 = smov 0   ;;  %s8365_s12 = smov 0  }
   0x3 LB: > { %s8380_s13 = sadd.s32 4294967295, %s8304_s12   ;;  %s6151_s14 = sadd.s32 4294967294, %s8304_s12   ;;  %s8304_s12 = sphi %s8365_s12, %s11444_s12   ;;  %s8300_s11 = sphi %s8363_s11, %s11443_s11   ;;  %s8296_s10 = sphi %s8361_s10, %s11442_s10   ;;  %s8292_s30 = sphi %s8359_s30, %s11441_s30  }
   0x4   : > { %s8384_s15 = sadd.s32 1, %s8304_s12   ;;  %s223_s16 = sadd.s32 1, %s8300_s11 }
   0x5   : > { %s220_s17 = ssub.s32 %s8304_s12, %s8384_s15  ;;  %p233_p0 = scmp.ne.s32.totalorder %s8300_s11, %s8296_s10 }
   0x6   : > { %p221_p1 = scmp.eq.s32.totalorder %s220_s17, 0  ;;  %p234_p2 = scmp.eq.s32.totalorder %s8380_s13, 1 }
   0x7   : > { %p239_p3 = scmp.ne.s32.totalorder %s8296_s10, %s8292_s30  ;;  %p240_p4 = scmp.eq.s32.totalorder %s6151_s14, 1 }
   0x8   : > { %s8395_s18 = scalar_select %p221_p1, %s8300_s11, %s223_s16  }
   0x9   : > { %p8397_p5 = por %p234_p2, %p233_p0  ;;  %p8401_p6 = por %p240_p4, %p239_p3 }
   0xa   : > { %p6154_p7 = scmp.ge.s32.totalorder %s8304_s12, 1  ;;  %p291_p8 = scmp.lt.s32.totalorder %s8304_s12, 3 }
   0xc   : > { %p292_p9 = pnand %p6154_p7, %p291_p8 }
   0xe   : > { %295 = sbr.rel (%p292_p9) target bundleno = 1779 (0x6f3), region = 56 }
  0x13   : > { %v408_v0 = vld [vmem:[%s11144_s1] sm:$0x3]  ;;  %vm492_vm0 = vcmask 1041408   ;;  %s327_s23 = smul.u32 49, %s8380_s13  ;;  %v11154_v1 = vmov 0.0   ;;  %vm8307_vm1 = vmmov 0  }
  0x14   : > { %6940 = vmatprep.subr.bf16.mxu0 %v11154_v1  ;;  %v494_v2 = vsel %vm492_vm0, %v408_v0, 0  ;;  %6942 = vmatprep.mubr.msk.bf16.mxu0 %vm8307_vm1, %v11154_v1  ;;  %vm416_vm2 = vcmask 31744   ;;  %v8181_v11 = vld [vmem:[%s11146_s3 + $0x58] sm:$0xff]   ;;  %v8183_v37 = vld [vmem:[%s11146_s3 + $0x30] sm:$0xff]   ;;  %v8185_v40 = vld [vmem:[%s11146_s3 + $0x28] sm:$0xff]   ;;  %vm777_vm3 = vcmask 523264  }
  0x15   : > { %6941 = vmatpush3.bf16.msra.mxu0 %v494_v2  ;;  %p328_p10 = scmp.lt.s32.totalorder %s327_s23, 97  ;;  %7042 = vmatprep.subr.bf16.mxu1 %v11154_v1  ;;  %v8182_v34 = vld [vmem:[%s11146_s3 + $0x38] sm:$0xff]   ;;  %v8184_v39 = vld [vmem:[%s11146_s3 + $0x50] sm:$0xff]   ;;  %v8186_v43 = vld [vmem:[%s11146_s3 + $0x20] sm:$0xff]   ;;  %vm3816_vm4 = vcmask 261120   ;;  %vm5559_vm5 = vcmask 130048  }
  0x16   : > { %7194 = vmatprep.subr.bf16.mxu0 %v11154_v1  ;;  %7050 = vmatprep.mubr.msk.bf16.mxu1 %vm8307_vm1, %v11154_v1  ;;  %v8187_v44 = vld [vmem:[%s11146_s3 + $0x48] sm:$0xff]   ;;  %v8189_v46 = vld [vmem:[%s11146_s3 + $0x40] sm:$0xff]   ;;  %s324_s29 = sand.u32 1, %s8296_s10   ;;  %s6605_s21 = sshll.u32 %s8380_s13, 7 }
  0x17   : > { %s11446_s23 = smov (!%p328_p10, %s327_s23), 97  ;;  %7043 = vmatpush3.bf16.msra.mxu1 %v8182_v34  ;;  %s6155_s14 = sshll.u32 %s324_s29, 3 }
  0x18   : > { %s6156_s24 = sshll.u32 %s11446_s23, 3  ;;  %7044 = vmatprep.subr.bf16.mxu1 %v11154_v1  ;;  %s326_s22 = scalar_lea.vmem [#allocation5], %s6155_s14 }
  0x19   : > { %s8421_s27 = scalar_lea.vmem %s11143_s0, %s6156_s24  ;;  %s11101_s25 = scalar_lea.hbm %s11152_s9, %s6605_s21 }
  0x1a   : > { %v334_v3 = vld [vmem:[%s8421_s27] sm:$0xff]  ;;  %v335_v4 = vld [vmem:[%s8421_s27 + $0x8] sm:$0xff]  ;;  %v336_v6 = vld [vmem:[%s8421_s27 + $0x10] sm:$0xff]  ;;  %s6079_s13 = scalar_lea.sflag [#allocation6], %s324_s29  ;;  %s8308_s28 = smov [#allocation5]  }
  0x1b   : > { %v383_v5 = vpack.c.bf16 %v335_v4, %v334_v3  ;;  %v337_v7 = vld [vmem:[%s8421_s27 + $0x18] sm:$0xff]  ;;  %v338_v9 = vld [vmem:[%s8421_s27 + $0x20] sm:$0xff]  ;;  %v339_v10 = vld [vmem:[%s8421_s27 + $0x28] sm:$0xff]  ;;  %7045 = vmatpush3.bf16.msra.mxu1 %v8183_v37  ;;  %s8248_s14 = sshll.u32 %s8308_s28, 4  ;;  %s8249_s14 = int_to_ptr.vmem [resolvable:$false] %s8248_s14 }
  0x1c   : > { %v384_v8 = vpack.c.bf16 %v337_v7, %v336_v6  ;;  %v385_v12 = vpack.c.bf16 %v339_v10, %v338_v9  ;;  %v340_v13 = vld [vmem:[%s8421_s27 + $0x30] sm:$0xff]  ;;  %v341_v14 = vld [vmem:[%s8421_s27 + $0x38] sm:$0xff]  ;;  %v342_v16 = vld [vmem:[%s8421_s27 + $0x40] sm:$0xff]  ;;  %7046 = vmatprep.subr.bf16.mxu1 %v11154_v1  ;;  %s8250_s16 = scalar_lea.vmem %s8249_s14, 256 }
  0x1d   : > { %6943 = vmatmul.mubr.msk.bf16.vlgmr.msra.gmra.mxu0 %vm416_vm2, %v383_v5  ;;  %v386_v15 = vpack.c.bf16 %v341_v14, %v340_v13  ;;  %v343_v17 = vld [vmem:[%s8421_s27 + $0x48] sm:$0xff]  ;;  %v344_v19 = vld [vmem:[%s8421_s27 + $0x50] sm:$0xff]  ;;  %v345_v20 = vld [vmem:[%s8421_s27 + $0x58] sm:$0xff] }
  0x1e   : > { %6946 = vmatprep.mubr.msk.bf16.mxu0 %vm8307_vm1, %v11154_v1  ;;  %7195 = vmatpush3.bf16.msra.mxu0 %v8181_v11  ;;  %v387_v18 = vpack.c.bf16 %v343_v17, %v342_v16  ;;  %v388_v21 = vpack.c.bf16 %v345_v20, %v344_v19  ;;  %v346_v22 = vld [vmem:[%s8421_s27 + $0x60] sm:$0xff]  ;;  %v347_v23 = vld [vmem:[%s8421_s27 + $0x68] sm:$0xff]  ;;  %v348_v25 = vld [vmem:[%s8421_s27 + $0x70] sm:$0xff] }
  0x1f   : > { %7196 = vmatprep.subr.bf16.mxu0 %v11154_v1  ;;  %v389_v24 = vpack.c.bf16 %v347_v23, %v346_v22  ;;  %v349_v26 = vld [vmem:[%s8421_s27 + $0x78] sm:$0xff]  ;;  %v350_v28 = vld [vmem:[%s8421_s27 + $0x80] sm:$0xff]  ;;  %v351_v29 = vld [vmem:[%s8421_s27 + $0x88] sm:$0xff]  ;;  %7047 = vmatpush3.bf16.msra.mxu1 %v8185_v40 }
  0x20   : > { %v390_v27 = vpack.c.bf16 %v349_v26, %v348_v25  ;;  %v391_v30 = vpack.c.bf16 %v351_v29, %v350_v28  ;;  %v352_v31 = vld [vmem:[%s8421_s27 + $0x90] sm:$0xff]  ;;  %v353_v32 = vld [vmem:[%s8421_s27 + $0x98] sm:$0xff]  ;;  %v354_v35 = vld [vmem:[%s8421_s27 + $0xa0] sm:$0xff]  ;;  %7048 = vmatprep.subr.bf16.mxu1 %v11154_v1 }
  0x21   : > { %v392_v33 = vpack.c.bf16 %v353_v32, %v352_v31  ;;  %v355_v36 = vld [vmem:[%s8421_s27 + $0xa8] sm:$0xff]  ;;  %v356_v41 = vld [vmem:[%s8421_s27 + $0xb0] sm:$0xff]  ;;  %v357_v42 = vld [vmem:[%s8421_s27 + $0xb8] sm:$0xff] }
  0x22   : > { %v393_v38 = vpack.c.bf16 %v355_v36, %v354_v35  ;;  %7197 = vmatpush3.bf16.msra.mxu0 %v8184_v39  ;;  %v394_v45 = vpack.c.bf16 %v357_v42, %v356_v41  ;;  %v358_v47 = vld [vmem:[%s8421_s27 + $0xc0] sm:$0xff]  ;;  %v359_v48 = vld [vmem:[%s8421_s27 + $0xc8] sm:$0xff]  ;;  %v360_v50 = vld [vmem:[%s8421_s27 + $0xd0] sm:$0xff] }
  0x23   : > { %7198 = vmatprep.subr.bf16.mxu0 %v11154_v1  ;;  %7049 = vmatpush3.bf16.msra.mxu1 %v8186_v43  ;;  %v395_v49 = vpack.c.bf16 %v359_v48, %v358_v47  ;;  %v361_v51 = vld [vmem:[%s8421_s27 + $0xd8] sm:$0xff]  ;;  %v362_v53 = vld [vmem:[%s8421_s27 + $0xe0] sm:$0xff]  ;;  %v363_v54 = vld [vmem:[%s8421_s27 + $0xe8] sm:$0xff] }
  0x24   : > { %7118 = vmatprep.subr.bf16.mxu1 %v11154_v1  ;;  %v396_v52 = vpack.c.bf16 %v361_v51, %v360_v50  ;;  %v397_v55 = vpack.c.bf16 %v363_v54, %v362_v53  ;;  %v364_v56 = vld [vmem:[%s8421_s27 + $0xf0] sm:$0xff]  ;;  %v365_v57 = vld [vmem:[%s8421_s27 + $0xf8] sm:$0xff]  ;;  %v366_v59 = vld [vmem:[%s8421_s27 + $0x100] sm:$0xff] }
  0x25   : > { %6947 = vmatmul.mubr.msk.bf16.gmra.mxu0 %vm416_vm2, %v384_v8  ;;  %v398_v58 = vpack.c.bf16 %v365_v57, %v364_v56  ;;  %v367_v60 = vld [vmem:[%s8421_s27 + $0x108] sm:$0xff]  ;;  %v368_v62 = vld [vmem:[%s8421_s27 + $0x110] sm:$0xff]  ;;  %v369_v63 = vld [vmem:[%s8421_s27 + $0x118] sm:$0xff] }
  0x26   : > { %6950 = vmatprep.mubr.msk.bf16.mxu0 %vm8307_vm1, %v11154_v1  ;;  %7199 = vmatpush3.bf16.msra.mxu0 %v8187_v44  ;;  %v399_v61 = vpack.c.bf16 %v367_v60, %v366_v59  ;;  %v400_v0 = vpack.c.bf16 %v369_v63, %v368_v62  ;;  %v370_v2 = vld [vmem:[%s8421_s27 + $0x120] sm:$0xff]  ;;  %v371_v3 = vld [vmem:[%s8421_s27 + $0x128] sm:$0xff]  ;;  %v372_v5 = vld [vmem:[%s8421_s27 + $0x130] sm:$0xff] }
  0x27   : > { %7200 = vmatprep.subr.bf16.mxu0 %v11154_v1  ;;  %v401_v4 = vpack.c.bf16 %v371_v3, %v370_v2  ;;  %v373_v6 = vld [vmem:[%s8421_s27 + $0x138] sm:$0xff]  ;;  %v374_v8 = vld [vmem:[%s8421_s27 + $0x140] sm:$0xff]  ;;  %v375_v9 = vld [vmem:[%s8421_s27 + $0x148] sm:$0xff] }
  0x28   : > { %v402_v7 = vpack.c.bf16 %v373_v6, %v372_v5  ;;  %v403_v10 = vpack.c.bf16 %v375_v9, %v374_v8  ;;  %v376_v11 = vld [vmem:[%s8421_s27 + $0x150] sm:$0xff]  ;;  %v378_v14 = vld [vmem:[%s8421_s27 + $0x160] sm:$0xff]  ;;  %v8193_v56 = vld [vmem:[%s11146_s3 + $0x98] sm:$0xff]  }
  0x29   : > { %v380_v17 = vld [vmem:[%s8421_s27 + $0x170] sm:$0xff]  ;;  %v382_v20 = vld [vmem:[%s8421_s27 + $0x180] sm:$0xff]  ;;  %v8195_v9 = vld [vmem:[%s11146_s3 + $0x88] sm:$0xff]  }
  0x2a   : > { %7201 = vmatpush3.bf16.msra.mxu0 %v8189_v46  ;;  %v8579_v22 = vld [vmem:[%s11145_s2] ss:$0 sm:$0xff]  ;;  %v8188_v46 = vld [vmem:[%s11146_s3 + $0x18] sm:$0xff]   ;;  %v8190_v53 = vld [vmem:[%s11146_s3 + $0x10] sm:$0xff]  }
  0x2b   : > { %7346 = vmatprep.subr.bf16.mxu0 %v11154_v1  ;;  %v8192_v6 = vld [vmem:[%s11146_s3] sm:$0xff]  }
  0x2d   : > { %6951 = vmatmul.mubr.msk.bf16.gmra.mxu0 %vm416_vm2, %v385_v12  ;;  %v377_v12 = vld [vmem:[%s8421_s27 + $0x158] sm:$0xff] }
  0x2e   : > { %6954 = vmatprep.mubr.msk.bf16.mxu0 %vm8307_vm1, %v11154_v1  ;;  %v404_v13 = vpack.c.bf16 %v377_v12, %v376_v11 }
  0x35   : > { %6955 = vmatmul.mubr.msk.bf16.gmra.mxu0 %vm416_vm2, %v386_v15  ;;  %v379_v15 = vld [vmem:[%s8421_s27 + $0x168] sm:$0xff] }
  0x36   : > { %6958 = vmatprep.mubr.msk.bf16.mxu0 %vm8307_vm1, %v11154_v1  ;;  %v405_v16 = vpack.c.bf16 %v379_v15, %v378_v14 }
  0x3d   : > { %6959 = vmatmul.mubr.msk.bf16.gmra.mxu0 %vm416_vm2, %v387_v18  ;;  %v381_v18 = vld [vmem:[%s8421_s27 + $0x178] sm:$0xff]  ;;  %s6092_s27 = sshll.u32 %s326_s22, 4  ;;  %s11103_s27 = int_to_ptr.vmem [resolvable:$true] %s6092_s27 }
  0x3e   : > { %6962 = vmatprep.mubr.msk.bf16.mxu0 %vm8307_vm1, %v11154_v1  ;;  %v406_v19 = vpack.c.bf16 %v381_v18, %v380_v17  ;;  %s8244_s26 = scalar_lea.vmem %s11103_s27, 128  ;;  %p8251_p0 = scmp.lt.s32.totalorder %s11103_s27, %s8249_s14 }
  0x3f   : > { %p8245_p11 = scmp.ne.s32.totalorder %s11103_s27, %s8244_s26  ;;  %p8252_p1 = scmp.lt.s32.totalorder %s8250_s16, %s8244_s26 }
  0x41   : > { %p8246_p12 = pnand %p8245_p11, %p8397_p5  ;;  %p8253_p2 = por %p8252_p1, %p8251_p0 }
  0x43   : > { %p8247_p13 = pneg %p8246_p12 }
  0x45   : > { %6963 = vmatmul.mubr.msk.bf16.gmra.mxu0 %vm416_vm2, %v388_v21  ;;  %v407_v21 = vpack.c.bf16 %v382_v20, %v382_v20  ;;  %p8254_p3 = pnand %p8253_p2, %p8247_p13 }
  0x46   : > { %6966 = vmatprep.mubr.msk.bf16.mxu0 %vm8307_vm1, %v11154_v1 }
  0x4d   : > { %6967 = vmatmul.mubr.msk.bf16.gmra.mxu0 %vm416_vm2, %v389_v24 }
  0x4e   : > { %6970 = vmatprep.mubr.msk.bf16.mxu0 %vm8307_vm1, %v11154_v1 }
  0x55   : > { %6971 = vmatmul.mubr.msk.bf16.gmra.mxu0 %vm416_vm2, %v390_v27 }
  0x56   : > { %6974 = vmatprep.mubr.msk.bf16.mxu0 %vm8307_vm1, %v11154_v1 }
  0x5d   : > { %6975 = vmatmul.mubr.msk.bf16.gmra.mxu0 %vm416_vm2, %v391_v30 }
  0x5e   : > { %6978 = vmatprep.mubr.msk.bf16.mxu0 %vm8307_vm1, %v11154_v1 }
  0x65   : > { %6979 = vmatmul.mubr.msk.bf16.gmra.mxu0 %vm416_vm2, %v392_v33 }
  0x66   : > { %6982 = vmatprep.mubr.msk.bf16.mxu0 %vm8307_vm1, %v11154_v1 }
  0x6d   : > { %6983 = vmatmul.mubr.msk.bf16.gmra.mxu0 %vm416_vm2, %v393_v38 }
  0x6e   : > { %6986 = vmatprep.mubr.msk.bf16.mxu0 %vm8307_vm1, %v11154_v1 }
  0x75   : > { %6987 = vmatmul.mubr.msk.bf16.gmra.mxu0 %vm416_vm2, %v394_v45 }
  0x76   : > { %6990 = vmatprep.mubr.msk.bf16.mxu0 %vm8307_vm1, %v11154_v1 }
  0x7d   : > { %6991 = vmatmul.mubr.msk.bf16.gmra.mxu0 %vm416_vm2, %v395_v49 }
  0x7e   : > { %6994 = vmatprep.mubr.msk.bf16.mxu0 %vm8307_vm1, %v11154_v1 }
  0x85   : > { %6995 = vmatmul.mubr.msk.bf16.gmra.mxu0 %vm416_vm2, %v396_v52 }
  0x86   : > { %6998 = vmatprep.mubr.msk.bf16.mxu0 %vm8307_vm1, %v11154_v1 }
  0x8d   : > { %6999 = vmatmul.mubr.msk.bf16.gmra.mxu0 %vm416_vm2, %v397_v55 }
  0x8e   : > { %7002 = vmatprep.mubr.msk.bf16.mxu0 %vm8307_vm1, %v11154_v1 }
  0x95   : > { %7003 = vmatmul.mubr.msk.bf16.gmra.mxu0 %vm416_vm2, %v398_v58 }
  0x96   : > { %7006 = vmatprep.mubr.msk.bf16.mxu0 %vm8307_vm1, %v11154_v1 }
  0x9d   : > { %7007 = vmatmul.mubr.msk.bf16.gmra.mxu0 %vm416_vm2, %v399_v61  ;;  %v8191_v61 = vld [vmem:[%s11146_s3 + $0x8] sm:$0xff]  }
  0x9e   : > { %7010 = vmatprep.mubr.msk.bf16.mxu0 %vm8307_vm1, %v11154_v1 }
  0xa5   : > { %7011 = vmatmul.mubr.msk.bf16.gmra.mxu0 %vm416_vm2, %v400_v0  ;;  %v8194_v0 = vld [vmem:[%s11146_s3 + $0x90] sm:$0xff]  }
  0xa6   : > { %7014 = vmatprep.mubr.msk.bf16.mxu0 %vm8307_vm1, %v11154_v1 }
  0xad   : > { %7015 = vmatmul.mubr.msk.bf16.gmra.mxu0 %vm416_vm2, %v401_v4 }
  0xae   : > { %7018 = vmatprep.mubr.msk.bf16.mxu0 %vm8307_vm1, %v11154_v1 }
  0xb5   : > { %7019 = vmatmul.mubr.msk.bf16.gmra.mxu0 %vm416_vm2, %v402_v7 }
  0xb6   : > { %7022 = vmatprep.mubr.msk.bf16.mxu0 %vm8307_vm1, %v11154_v1 }
  0xbd   : > { %7023 = vmatmul.mubr.msk.bf16.gmra.mxu0 %vm416_vm2, %v403_v10 }
  0xbe   : > { %7026 = vmatprep.mubr.msk.bf16.mxu0 %vm8307_vm1, %v11154_v1 }
  0xc5   : > { %7027 = vmatmul.mubr.msk.bf16.gmra.mxu0 %vm416_vm2, %v404_v13 }
  0xc6   : > { %7030 = vmatprep.mubr.msk.bf16.mxu0 %vm8307_vm1, %v11154_v1 }
  0xcd   : > { %7031 = vmatmul.mubr.msk.bf16.gmra.mxu0 %vm416_vm2, %v405_v16  ;;  %v8197_v16 = vld [vmem:[%s11146_s3 + $0x80] sm:$0xff]  }
  0xce   : > { %7034 = vmatprep.mubr.msk.bf16.mxu0 %vm8307_vm1, %v11154_v1 }
  0xd5   : > { %7035 = vmatmul.mubr.msk.bf16.gmra.mxu0 %vm416_vm2, %v406_v19 }
  0xd6   : > { %7038 = vmatprep.mubr.msk.bf16.mxu0 %vm8307_vm1, %v11154_v1 }
  0xdd   : > { %v530_v23 = vpop.f32.mrf.mxu0  ;;  %7039 = vmatmul.mubr.msk.bf16.gmra.mxu0 %vm416_vm2, %v407_v21 }
  0xde   : > { %v531_v24 = vadd.f32 %v8579_v22, %v530_v23  ;;  %7202 = vmatprep.mubr.msk.bf16.mxu0 %vm8307_vm1, %v11154_v1 }
  0xdf   : > { %v6944_v25 = vpop.f32.mrf.mxu0 }
  0xe0   : > { %v728_v26 = vmax.f32 %v531_v24, 0.0 }
  0xe1   : > { %v533_v27 = vpop.f32.mrf.mxu0 }
  0xe2   : > { %778 = vst.msk [vmem:[#allocation2] sm:$0xff] %vm777_vm3, %v728_v26  ;;  %v534_v28 = vadd.f32 %v8579_v22, %v533_v27 }
  0xe3   : > { %v6945_v29 = vpop.f32.mrf.mxu0 }
  0xe4   : > { %v729_v30 = vmax.f32 %v534_v28, 0.0 }
  0xe5   : > { %v538_v31 = vpop.f32.mrf.mxu0 }
  0xe6   : > { %779 = vst.msk [vmem:[#allocation2 + $0x8] sm:$0xff] %vm777_vm3, %v729_v30  ;;  %v539_v32 = vadd.f32 %v8579_v22, %v538_v31 }
  0xe7   : > { %v6948_v33 = vpop.f32.mrf.mxu0 }
  0xe8   : > { %v730_v34 = vmax.f32 %v539_v32, 0.0 }
  0xe9   : > { %v541_v35 = vpop.f32.mrf.mxu0 }
  0xea   : > { %780 = vst.msk [vmem:[#allocation2 + $0x10] sm:$0xff] %vm777_vm3, %v730_v34  ;;  %v542_v36 = vadd.f32 %v8579_v22, %v541_v35 }
  0xeb   : > { %v6949_v37 = vpop.f32.mrf.mxu0 }
  0xec   : > { %v731_v38 = vmax.f32 %v542_v36, 0.0 }
  0xed   : > { %v546_v39 = vpop.f32.mrf.mxu0  ;;  %v8593_v44 = vld [vmem:[#allocation2 + $0x8] sm:$0xff] }
  0xee   : > { %781 = vst.msk [vmem:[#allocation2 + $0x18] sm:$0xff] %vm777_vm3, %v731_v38  ;;  %v547_v40 = vadd.f32 %v8579_v22, %v546_v39 }
  0xef   : > { %v6952_v41 = vpop.f32.mrf.mxu0 }
  0xf0   : > { %v732_v42 = vmax.f32 %v547_v40, 0.0 }
  0xf1   : > { %v549_v43 = vpop.f32.mrf.mxu0  ;;  %v829_v45 = vld [vmem:[#allocation2 + $0x10] sm:$0xff] }
  0xf2   : > { %782 = vst.msk [vmem:[#allocation2 + $0x20] sm:$0xff] %vm777_vm3, %v732_v42  ;;  %v550_v47 = vadd.f32 %v8579_v22, %v549_v43  ;;  %v886_v48 = vpack.c.bf16 %v829_v45, %v8593_v44 }
  0xf3   : > { %v6953_v49 = vpop.f32.mrf.mxu0 }
  0xf4   : > { %v733_v50 = vmax.f32 %v550_v47, 0.0  ;;  %7051 = vmatmul.mubr.msk.bf16.vlgmr.msra.gmra.mxu1 %vm777_vm3, %v886_v48 }
  0xf5   : > { %7119 = vmatpush3.bf16.msra.mxu1 %v8188_v46  ;;  %v554_v51 = vpop.f32.mrf.mxu0  ;;  %v1399_v52 = vld [vmem:[#allocation2 + $0x18] sm:$0xff]  ;;  %7054 = vmatprep.mubr.msk.bf16.mxu1 %vm8307_vm1, %v11154_v1 }
  0xf6   : > { %783 = vst.msk [vmem:[#allocation2 + $0x28] sm:$0xff] %vm777_vm3, %v733_v50  ;;  %v555_v54 = vadd.f32 %v8579_v22, %v554_v51  ;;  %v8609_v55 = vpack.c.bf16 %v1399_v52, %v829_v45  ;;  %7120 = vmatprep.subr.bf16.mxu1 %v11154_v1 }
  0xf7   : > { %v6956_v57 = vpop.f32.mrf.mxu0 }
  0xf8   : > { %v734_v58 = vmax.f32 %v555_v54, 0.0  ;;  %7203 = vmatmul.mubr.msk.bf16.vlgmr.msra.gmra.mxu0 %vm777_vm3, %v8609_v55 }
  0xf9   : > { %v557_v59 = vpop.f32.mrf.mxu0  ;;  %v831_v60 = vld [vmem:[#allocation2 + $0x20] sm:$0xff]  ;;  %7206 = vmatprep.mubr.msk.bf16.mxu0 %vm8307_vm1, %v11154_v1  ;;  %7121 = vmatpush3.bf16.msra.mxu1 %v8190_v53 }
  0xfa   : > { %784 = vst.msk [vmem:[#allocation2 + $0x30] sm:$0xff] %vm777_vm3, %v734_v58  ;;  %v558_v62 = vadd.f32 %v8579_v22, %v557_v59  ;;  %v887_v63 = vpack.c.bf16 %v831_v60, %v1399_v52  ;;  %7122 = vmatprep.subr.bf16.mxu1 %v11154_v1  ;;  %7347 = vmatpush3.bf16.msra.mxu0 %v8193_v56 }
  0xfb   : > { %v6957_v2 = vpop.f32.mrf.mxu0  ;;  %7348 = vmatprep.subr.bf16.mxu0 %v11154_v1 }
  0xfc   : > { %v735_v3 = vmax.f32 %v558_v62, 0.0  ;;  %7055 = vmatmul.mubr.msk.bf16.gmra.mxu1 %vm777_vm3, %v887_v63 }
  0xfd   : > { %v562_v4 = vpop.f32.mrf.mxu0  ;;  %v1401_v5 = vld [vmem:[#allocation2 + $0x28] sm:$0xff]  ;;  %7058 = vmatprep.mubr.msk.bf16.mxu1 %vm8307_vm1, %v11154_v1  ;;  %7123 = vmatpush3.bf16.msra.mxu1 %v8191_v61 }
  0xfe   : > { %785 = vst.msk [vmem:[#allocation2 + $0x38] sm:$0xff] %vm777_vm3, %v735_v3  ;;  %v563_v7 = vadd.f32 %v8579_v22, %v562_v4  ;;  %v8637_v8 = vpack.c.bf16 %v1401_v5, %v831_v60  ;;  %7124 = vmatprep.subr.bf16.mxu1 %v11154_v1  ;;  %7349 = vmatpush3.bf16.msra.mxu0 %v8194_v0 }
  0xff   : > { %v6960_v10 = vpop.f32.mrf.mxu0  ;;  %7350 = vmatprep.subr.bf16.mxu0 %v11154_v1 }
 0x100   : > { %v736_v11 = vmax.f32 %v563_v7, 0.0  ;;  %7207 = vmatmul.mubr.msk.bf16.gmra.mxu0 %vm777_vm3, %v8637_v8 }
 0x101   : > { %v565_v12 = vpop.f32.mrf.mxu0  ;;  %v833_v13 = vld [vmem:[#allocation2 + $0x30] sm:$0xff]  ;;  %7210 = vmatprep.mubr.msk.bf16.mxu0 %vm8307_vm1, %v11154_v1  ;;  %7125 = vmatpush3.bf16.msra.mxu1 %v8192_v6 }
 0x102   : > { %786 = vst.msk [vmem:[#allocation2 + $0x40] sm:$0xff] %vm777_vm3, %v736_v11  ;;  %v566_v14 = vadd.f32 %v8579_v22, %v565_v12  ;;  %v888_v15 = vpack.c.bf16 %v833_v13, %v1401_v5  ;;  %7351 = vmatpush3.bf16.msra.mxu0 %v8195_v9  ;;  %7270 = vmatprep.subr.bf16.mxu1 %v11154_v1 }
 0x103   : > { %v6961_v17 = vpop.f32.mrf.mxu0  ;;  %7352 = vmatprep.subr.bf16.mxu0 %v11154_v1 }
 0x104   : > { %v737_v18 = vmax.f32 %v566_v14, 0.0  ;;  %7059 = vmatmul.mubr.msk.bf16.gmra.mxu1 %vm777_vm3, %v888_v15 }
 0x105   : > { %v570_v19 = vpop.f32.mrf.mxu0  ;;  %v1403_v20 = vld [vmem:[#allocation2 + $0x38] sm:$0xff]  ;;  %7062 = vmatprep.mubr.msk.bf16.mxu1 %vm8307_vm1, %v11154_v1 }
 0x106   : > { %787 = vst.msk [vmem:[#allocation2 + $0x48] sm:$0xff] %vm777_vm3, %v737_v18  ;;  %v571_v21 = vadd.f32 %v8579_v22, %v570_v19  ;;  %v8660_v23 = vpack.c.bf16 %v1403_v20, %v833_v13  ;;  %7353 = vmatpush3.bf16.msra.mxu0 %v8197_v16 }
 0x107   : > { %v6964_v24 = vpop.f32.mrf.mxu0  ;;  %7498 = vmatprep.subr.bf16.mxu0 %v11154_v1 }
 0x108   : > { %v738_v25 = vmax.f32 %v571_v21, 0.0  ;;  %7211 = vmatmul.mubr.msk.bf16.gmra.mxu0 %vm777_vm3, %v8660_v23 }
 0x109   : > { %v573_v26 = vpop.f32.mrf.mxu0  ;;  %v835_v27 = vld [vmem:[#allocation2 + $0x40] sm:$0xff]  ;;  %7214 = vmatprep.mubr.msk.bf16.mxu0 %vm8307_vm1, %v11154_v1 }
 0x10a   : > { %788 = vst.msk [vmem:[#allocation2 + $0x50] sm:$0xff] %vm777_vm3, %v738_v25  ;;  %v574_v28 = vadd.f32 %v8579_v22, %v573_v26  ;;  %v889_v29 = vpack.c.bf16 %v835_v27, %v1403_v20 }
 0x10b   : > { %v6965_v30 = vpop.f32.mrf.mxu0 }
 0x10c   : > { %v739_v31 = vmax.f32 %v574_v28, 0.0  ;;  %7063 = vmatmul.mubr.msk.bf16.gmra.mxu1 %vm777_vm3, %v889_v29 }
 0x10d   : > { %v578_v32 = vpop.f32.mrf.mxu0  ;;  %v1405_v33 = vld [vmem:[#allocation2 + $0x48] sm:$0xff]  ;;  %7066 = vmatprep.mubr.msk.bf16.mxu1 %vm8307_vm1, %v11154_v1 }
 0x10e   : > { %789 = vst.msk [vmem:[#allocation2 + $0x58] sm:$0xff] %vm777_vm3, %v739_v31  ;;  %v579_v34 = vadd.f32 %v8579_v22, %v578_v32  ;;  %v8674_v35 = vpack.c.bf16 %v1405_v33, %v835_v27 }
 0x10f   : > { %v6968_v36 = vpop.f32.mrf.mxu0 }
 0x110   : > { %v740_v37 = vmax.f32 %v579_v34, 0.0  ;;  %7215 = vmatmul.mubr.msk.bf16.gmra.mxu0 %vm777_vm3, %v8674_v35 }
 0x111   : > { %v581_v38 = vpop.f32.mrf.mxu0  ;;  %v837_v39 = vld [vmem:[#allocation2 + $0x50] sm:$0xff]  ;;  %7218 = vmatprep.mubr.msk.bf16.mxu0 %vm8307_vm1, %v11154_v1 }
 0x112   : > { %790 = vst.msk [vmem:[#allocation2 + $0x60] sm:$0xff] %vm777_vm3, %v740_v37  ;;  %v582_v40 = vadd.f32 %v8579_v22, %v581_v38  ;;  %v890_v41 = vpack.c.bf16 %v837_v39, %v1405_v33 }
 0x113   : > { %v6969_v42 = vpop.f32.mrf.mxu0 }
 0x114   : > { %v741_v43 = vmax.f32 %v582_v40, 0.0  ;;  %7067 = vmatmul.mubr.msk.bf16.gmra.mxu1 %vm777_vm3, %v890_v41 }
 0x115   : > { %v586_v45 = vpop.f32.mrf.mxu0  ;;  %v1407_v46 = vld [vmem:[#allocation2 + $0x58] sm:$0xff]  ;;  %7070 = vmatprep.mubr.msk.bf16.mxu1 %vm8307_vm1, %v11154_v1 }
 0x116   : > { %791 = vst.msk [vmem:[#allocation2 + $0x68] sm:$0xff] %vm777_vm3, %v741_v43  ;;  %v587_v47 = vadd.f32 %v8579_v22, %v586_v45  ;;  %v8687_v48 = vpack.c.bf16 %v1407_v46, %v837_v39 }
 0x117   : > { %v6972_v49 = vpop.f32.mrf.mxu0 }
 0x118   : > { %v742_v50 = vmax.f32 %v587_v47, 0.0  ;;  %7219 = vmatmul.mubr.msk.bf16.gmra.mxu0 %vm777_vm3, %v8687_v48 }
 0x119   : > { %v589_v51 = vpop.f32.mrf.mxu0  ;;  %v839_v52 = vld [vmem:[#allocation2 + $0x60] sm:$0xff]  ;;  %7222 = vmatprep.mubr.msk.bf16.mxu0 %vm8307_vm1, %v11154_v1 }
 0x11a   : > { %792 = vst.msk [vmem:[#allocation2 + $0x70] sm:$0xff] %vm777_vm3, %v742_v50  ;;  %v590_v53 = vadd.f32 %v8579_v22, %v589_v51  ;;  %v891_v54 = vpack.c.bf16 %v839_v52, %v1407_v46 }
 0x11b   : > { %v6973_v56 = vpop.f32.mrf.mxu0 }
 0x11c   : > { %v743_v57 = vmax.f32 %v590_v53, 0.0  ;;  %7071 = vmatmul.mubr.msk.bf16.gmra.mxu1 %vm777_vm3, %v891_v54 }
 0x11d   : > { %v594_v58 = vpop.f32.mrf.mxu0  ;;  %v1409_v59 = vld [vmem:[#allocation2 + $0x68] sm:$0xff]  ;;  %7074 = vmatprep.mubr.msk.bf16.mxu1 %vm8307_vm1, %v11154_v1 }
 0x11e   : > { %793 = vst.msk [vmem:[#allocation2 + $0x78] sm:$0xff] %vm777_vm3, %v743_v57  ;;  %v595_v60 = vadd.f32 %v8579_v22, %v594_v58  ;;  %v8700_v61 = vpack.c.bf16 %v1409_v59, %v839_v52 }
 0x11f   : > { %v6976_v62 = vpop.f32.mrf.mxu0 }
 0x120   : > { %v744_v63 = vmax.f32 %v595_v60, 0.0  ;;  %7223 = vmatmul.mubr.msk.bf16.gmra.mxu0 %vm777_vm3, %v8700_v61 }
 0x121   : > { %v597_v0 = vpop.f32.mrf.mxu0  ;;  %v841_v2 = vld [vmem:[#allocation2 + $0x70] sm:$0xff]  ;;  %7226 = vmatprep.mubr.msk.bf16.mxu0 %vm8307_vm1, %v11154_v1 }
 0x122   : > { %794 = vst.msk [vmem:[#allocation2 + $0x80] sm:$0xff] %vm777_vm3, %v744_v63  ;;  %v598_v3 = vadd.f32 %v8579_v22, %v597_v0  ;;  %v892_v4 = vpack.c.bf16 %v841_v2, %v1409_v59 }
 0x123   : > { %v6977_v5 = vpop.f32.mrf.mxu0 }
 0x124   : > { %v745_v6 = vmax.f32 %v598_v3, 0.0  ;;  %7075 = vmatmul.mubr.msk.bf16.gmra.mxu1 %vm777_vm3, %v892_v4 }
 0x125   : > { %v602_v7 = vpop.f32.mrf.mxu0  ;;  %v1411_v9 = vld [vmem:[#allocation2 + $0x78] sm:$0xff]  ;;  %7078 = vmatprep.mubr.msk.bf16.mxu1 %vm8307_vm1, %v11154_v1 }
 0x126   : > { %795 = vst.msk [vmem:[#allocation2 + $0x88] sm:$0xff] %vm777_vm3, %v745_v6  ;;  %v603_v10 = vadd.f32 %v8579_v22, %v602_v7  ;;  %v8713_v11 = vpack.c.bf16 %v1411_v9, %v841_v2 }
 0x127   : > { %v6980_v12 = vpop.f32.mrf.mxu0 }
 0x128   : > { %v746_v13 = vmax.f32 %v603_v10, 0.0  ;;  %7227 = vmatmul.mubr.msk.bf16.gmra.mxu0 %vm777_vm3, %v8713_v11 }
 0x129   : > { %v605_v14 = vpop.f32.mrf.mxu0  ;;  %v843_v15 = vld [vmem:[#allocation2 + $0x80] sm:$0xff]  ;;  %7230 = vmatprep.mubr.msk.bf16.mxu0 %vm8307_vm1, %v11154_v1 }
 0x12a   : > { %796 = vst.msk [vmem:[#allocation2 + $0x90] sm:$0xff] %vm777_vm3, %v746_v13  ;;  %v606_v16 = vadd.f32 %v8579_v22, %v605_v14  ;;  %v893_v17 = vpack.c.bf16 %v843_v15, %v1411_v9 }
 0x12b   : > { %v6981_v18 = vpop.f32.mrf.mxu0 }
 0x12c   : > { %v747_v19 = vmax.f32 %v606_v16, 0.0  ;;  %7079 = vmatmul.mubr.msk.bf16.gmra.mxu1 %vm777_vm3, %v893_v17 }
 0x12d   : > { %v610_v20 = vpop.f32.mrf.mxu0  ;;  %v1413_v21 = vld [vmem:[#allocation2 + $0x88] sm:$0xff]  ;;  %7082 = vmatprep.mubr.msk.bf16.mxu1 %vm8307_vm1, %v11154_v1 }
 0x12e   : > { %797 = vst.msk [vmem:[#allocation2 + $0x98] sm:$0xff] %vm777_vm3, %v747_v19  ;;  %v611_v24 = vadd.f32 %v8579_v22, %v610_v20  ;;  %v8726_v25 = vpack.c.bf16 %v1413_v21, %v843_v15 }
 0x12f   : > { %v6984_v26 = vpop.f32.mrf.mxu0 }
 0x130   : > { %v748_v27 = vmax.f32 %v611_v24, 0.0  ;;  %7231 = vmatmul.mubr.msk.bf16.gmra.mxu0 %vm777_vm3, %v8726_v25 }
 0x131   : > { %v613_v28 = vpop.f32.mrf.mxu0  ;;  %v845_v29 = vld [vmem:[#allocation2 + $0x90] sm:$0xff]  ;;  %7234 = vmatprep.mubr.msk.bf16.mxu0 %vm8307_vm1, %v11154_v1 }
 0x132   : > { %798 = vst.msk [vmem:[#allocation2 + $0xa0] sm:$0xff] %vm777_vm3, %v748_v27  ;;  %v614_v30 = vadd.f32 %v8579_v22, %v613_v28  ;;  %v894_v31 = vpack.c.bf16 %v845_v29, %v1413_v21 }
 0x133   : > { %v6985_v32 = vpop.f32.mrf.mxu0 }
 0x134   : > { %v749_v33 = vmax.f32 %v614_v30, 0.0  ;;  %7083 = vmatmul.mubr.msk.bf16.gmra.mxu1 %vm777_vm3, %v894_v31 }
 0x135   : > { %v618_v34 = vpop.f32.mrf.mxu0  ;;  %v1415_v36 = vld [vmem:[#allocation2 + $0x98] sm:$0xff]  ;;  %7086 = vmatprep.mubr.msk.bf16.mxu1 %vm8307_vm1, %v11154_v1 }
 0x136   : > { %799 = vst.msk [vmem:[#allocation2 + $0xa8] sm:$0xff] %vm777_vm3, %v749_v33  ;;  %v619_v37 = vadd.f32 %v8579_v22, %v618_v34  ;;  %v8739_v38 = vpack.c.bf16 %v1415_v36, %v845_v29 }
 0x137   : > { %v6988_v39 = vpop.f32.mrf.mxu0 }
 0x138   : > { %v750_v40 = vmax.f32 %v619_v37, 0.0  ;;  %7235 = vmatmul.mubr.msk.bf16.gmra.mxu0 %vm777_vm3, %v8739_v38 }
 0x139   : > { %v621_v41 = vpop.f32.mrf.mxu0  ;;  %v847_v42 = vld [vmem:[#allocation2 + $0xa0] sm:$0xff]  ;;  %7238 = vmatprep.mubr.msk.bf16.mxu0 %vm8307_vm1, %v11154_v1 }
 0x13a   : > { %800 = vst.msk [vmem:[#allocation2 + $0xb0] sm:$0xff] %vm777_vm3, %v750_v40  ;;  %v622_v43 = vadd.f32 %v8579_v22, %v621_v41  ;;  %v895_v45 = vpack.c.bf16 %v847_v42, %v1415_v36 }
 0x13b   : > { %v6989_v46 = vpop.f32.mrf.mxu0 }
 0x13c   : > { %v751_v47 = vmax.f32 %v622_v43, 0.0  ;;  %7087 = vmatmul.mubr.msk.bf16.gmra.mxu1 %vm777_vm3, %v895_v45 }
 0x13d   : > { %v626_v49 = vpop.f32.mrf.mxu0  ;;  %v1417_v50 = vld [vmem:[#allocation2 + $0xa8] sm:$0xff]  ;;  %7090 = vmatprep.mubr.msk.bf16.mxu1 %vm8307_vm1, %v11154_v1 }
 0x13e   : > { %801 = vst.msk [vmem:[#allocation2 + $0xb8] sm:$0xff] %vm777_vm3, %v751_v47  ;;  %v627_v51 = vadd.f32 %v8579_v22, %v626_v49  ;;  %v8752_v52 = vpack.c.bf16 %v1417_v50, %v847_v42 }
 0x13f   : > { %v6992_v53 = vpop.f32.mrf.mxu0 }
 0x140   : > { %v752_v54 = vmax.f32 %v627_v51, 0.0  ;;  %7239 = vmatmul.mubr.msk.bf16.gmra.mxu0 %vm777_vm3, %v8752_v52 }
 0x141   : > { %v629_v56 = vpop.f32.mrf.mxu0  ;;  %v849_v57 = vld [vmem:[#allocation2 + $0xb0] sm:$0xff]  ;;  %7242 = vmatprep.mubr.msk.bf16.mxu0 %vm8307_vm1, %v11154_v1 }
 0x142   : > { %802 = vst.msk [vmem:[#allocation2 + $0xc0] sm:$0xff] %vm777_vm3, %v752_v54  ;;  %v630_v58 = vadd.f32 %v8579_v22, %v629_v56  ;;  %v896_v59 = vpack.c.bf16 %v849_v57, %v1417_v50 }
 0x143   : > { %v6993_v60 = vpop.f32.mrf.mxu0 }
 0x144   : > { %v753_v62 = vmax.f32 %v630_v58, 0.0  ;;  %7091 = vmatmul.mubr.msk.bf16.gmra.mxu1 %vm777_vm3, %v896_v59 }
 0x145   : > { %v634_v63 = vpop.f32.mrf.mxu0  ;;  %v1419_v0 = vld [vmem:[#allocation2 + $0xb8] sm:$0xff]  ;;  %7094 = vmatprep.mubr.msk.bf16.mxu1 %vm8307_vm1, %v11154_v1 }
 0x146   : > { %803 = vst.msk [vmem:[#allocation2 + $0xc8] sm:$0xff] %vm777_vm3, %v753_v62  ;;  %v635_v2 = vadd.f32 %v8579_v22, %v634_v63  ;;  %v8765_v3 = vpack.c.bf16 %v1419_v0, %v849_v57 }
 0x147   : > { %v6996_v4 = vpop.f32.mrf.mxu0 }
 0x148   : > { %v754_v5 = vmax.f32 %v635_v2, 0.0  ;;  %7243 = vmatmul.mubr.msk.bf16.gmra.mxu0 %vm777_vm3, %v8765_v3 }
 0x149   : > { %v637_v6 = vpop.f32.mrf.mxu0  ;;  %v851_v7 = vld [vmem:[#allocation2 + $0xc0] sm:$0xff]  ;;  %7246 = vmatprep.mubr.msk.bf16.mxu0 %vm8307_vm1, %v11154_v1 }
 0x14a   : > { %804 = vst.msk [vmem:[#allocation2 + $0xd0] sm:$0xff] %vm777_vm3, %v754_v5  ;;  %v638_v9 = vadd.f32 %v8579_v22, %v637_v6  ;;  %v897_v10 = vpack.c.bf16 %v851_v7, %v1419_v0 }
 0x14b   : > { %v6997_v12 = vpop.f32.mrf.mxu0 }
 0x14c   : > { %v755_v13 = vmax.f32 %v638_v9, 0.0  ;;  %7095 = vmatmul.mubr.msk.bf16.gmra.mxu1 %vm777_vm3, %v897_v10 }
 0x14d   : > { %v642_v14 = vpop.f32.mrf.mxu0  ;;  %v1421_v15 = vld [vmem:[#allocation2 + $0xc8] sm:$0xff]  ;;  %7098 = vmatprep.mubr.msk.bf16.mxu1 %vm8307_vm1, %v11154_v1 }
 0x14e   : > { %805 = vst.msk [vmem:[#allocation2 + $0xd8] sm:$0xff] %vm777_vm3, %v755_v13  ;;  %v643_v16 = vadd.f32 %v8579_v22, %v642_v14  ;;  %v8778_v17 = vpack.c.bf16 %v1421_v15, %v851_v7 }
 0x14f   : > { %v7000_v18 = vpop.f32.mrf.mxu0 }
 0x150   : > { %v756_v19 = vmax.f32 %v643_v16, 0.0  ;;  %7247 = vmatmul.mubr.msk.bf16.gmra.mxu0 %vm777_vm3, %v8778_v17 }
 0x151   : > { %v645_v20 = vpop.f32.mrf.mxu0  ;;  %v853_v21 = vld [vmem:[#allocation2 + $0xd0] sm:$0xff]  ;;  %7250 = vmatprep.mubr.msk.bf16.mxu0 %vm8307_vm1, %v11154_v1 }
 0x152   : > { %806 = vst.msk [vmem:[#allocation2 + $0xe0] sm:$0xff] %vm777_vm3, %v756_v19  ;;  %v646_v24 = vadd.f32 %v8579_v22, %v645_v20  ;;  %v898_v26 = vpack.c.bf16 %v853_v21, %v1421_v15 }
 0x153   : > { %v7001_v27 = vpop.f32.mrf.mxu0 }
 0x154   : > { %v757_v28 = vmax.f32 %v646_v24, 0.0  ;;  %7099 = vmatmul.mubr.msk.bf16.gmra.mxu1 %vm777_vm3, %v898_v26 }
 0x155   : > { %v650_v29 = vpop.f32.mrf.mxu0  ;;  %v1423_v30 = vld [vmem:[#allocation2 + $0xd8] sm:$0xff]  ;;  %7102 = vmatprep.mubr.msk.bf16.mxu1 %vm8307_vm1, %v11154_v1 }
 0x156   : > { %807 = vst.msk [vmem:[#allocation2 + $0xe8] sm:$0xff] %vm777_vm3, %v757_v28  ;;  %v651_v31 = vadd.f32 %v8579_v22, %v650_v29  ;;  %v8791_v32 = vpack.c.bf16 %v1423_v30, %v853_v21 }
 0x157   : > { %v7004_v33 = vpop.f32.mrf.mxu0 }
 0x158   : > { %v758_v34 = vmax.f32 %v651_v31, 0.0  ;;  %7251 = vmatmul.mubr.msk.bf16.gmra.mxu0 %vm777_vm3, %v8791_v32 }
 0x159   : > { %v653_v36 = vpop.f32.mrf.mxu0  ;;  %v855_v37 = vld [vmem:[#allocation2 + $0xe0] sm:$0xff]  ;;  %7254 = vmatprep.mubr.msk.bf16.mxu0 %vm8307_vm1, %v11154_v1 }
 0x15a   : > { %808 = vst.msk [vmem:[#allocation2 + $0xf0] sm:$0xff] %vm777_vm3, %v758_v34  ;;  %v654_v39 = vadd.f32 %v8579_v22, %v653_v36  ;;  %v899_v40 = vpack.c.bf16 %v855_v37, %v1423_v30  ;;  %v827_v34 = vld [vmem:[#allocation2] sm:$0xff]  ;;  %v8196_v36 = vld [vmem:[%s11146_s3 + $0x78] sm:$0xff]  }
 0x15b   : > { %v7005_v41 = vpop.f32.mrf.mxu0 }
 0x15c   : > { %v759_v42 = vmax.f32 %v654_v39, 0.0  ;;  %7103 = vmatmul.mubr.msk.bf16.gmra.mxu1 %vm777_vm3, %v899_v40  ;;  %v860_v39 = vpack.c.bf16 %v8593_v44, %v827_v34 }
 0x15d   : > { %v658_v43 = vpop.f32.mrf.mxu0  ;;  %v1425_v45 = vld [vmem:[#allocation2 + $0xe8] sm:$0xff]  ;;  %7106 = vmatprep.mubr.msk.bf16.mxu1 %vm8307_vm1, %v11154_v1 }
 0x15e   : > { %809 = vst.msk [vmem:[#allocation2 + $0xf8] sm:$0xff] %vm777_vm3, %v759_v42  ;;  %v659_v46 = vadd.f32 %v8579_v22, %v658_v43  ;;  %v8804_v47 = vpack.c.bf16 %v1425_v45, %v855_v37 }
 0x15f   : > { %v7008_v49 = vpop.f32.mrf.mxu0 }
 0x160   : > { %v760_v50 = vmax.f32 %v659_v46, 0.0  ;;  %7255 = vmatmul.mubr.msk.bf16.gmra.mxu0 %vm777_vm3, %v8804_v47  ;;  %v8198_v49 = vld [vmem:[%s11146_s3 + $0x70] sm:$0xff]   ;;  %v9187_v46 = vld [vmem:[#allocation2 + $0x88] sm:$0xff] }
 0x161   : > { %v661_v51 = vpop.f32.mrf.mxu0  ;;  %v857_v53 = vld [vmem:[#allocation2 + $0xf0] sm:$0xff]  ;;  %7258 = vmatprep.mubr.msk.bf16.mxu0 %vm8307_vm1, %v11154_v1 }
 0x162   : > { %810 = vst.msk [vmem:[#allocation2 + $0x100] sm:$0xff] %vm777_vm3, %v760_v50  ;;  %v662_v54 = vadd.f32 %v8579_v22, %v661_v51  ;;  %v900_v56 = vpack.c.bf16 %v857_v53, %v1425_v45  ;;  %v8201_v51 = vld [vmem:[%s11146_s3 + $0xd8] sm:$0xff]  }
 0x163   : > { %v7009_v57 = vpop.f32.mrf.mxu0 }
 0x164   : > { %v761_v58 = vmax.f32 %v662_v54, 0.0  ;;  %7107 = vmatmul.mubr.msk.bf16.gmra.mxu1 %vm777_vm3, %v900_v56  ;;  %v8199_v57 = vld [vmem:[%s11146_s3 + $0x68] sm:$0xff]  }
 0x165   : > { %v666_v59 = vpop.f32.mrf.mxu0  ;;  %v1427_v60 = vld [vmem:[#allocation2 + $0xf8] sm:$0xff]  ;;  %7110 = vmatprep.mubr.msk.bf16.mxu1 %vm8307_vm1, %v11154_v1 }
 0x166   : > { %811 = vst.msk [vmem:[#allocation2 + $0x108] sm:$0xff] %vm777_vm3, %v761_v58  ;;  %v667_v62 = vadd.f32 %v8579_v22, %v666_v59  ;;  %v8817_v63 = vpack.c.bf16 %v1427_v60, %v857_v53  ;;  %v8202_v59 = vld [vmem:[%s11146_s3 + $0xd0] sm:$0xff]  }
 0x167   : > { %v7012_v0 = vpop.f32.mrf.mxu0 }
 0x168   : > { %v762_v2 = vmax.f32 %v667_v62, 0.0  ;;  %7259 = vmatmul.mubr.msk.bf16.gmra.mxu0 %vm777_vm3, %v8817_v63 }
 0x169   : > { %v8821_v4 = vld [vmem:[#allocation2 + $0x100] sm:$0xff]  ;;  %7262 = vmatprep.mubr.msk.bf16.mxu0 %vm8307_vm1, %v11154_v1  ;;  %v669_v5 = vpop.f32.mrf.mxu0 }
 0x16a   : > { %812 = vst.msk [vmem:[#allocation2 + $0x110] sm:$0xff] %vm777_vm3, %v762_v2  ;;  %v901_v6 = vpack.c.bf16 %v8821_v4, %v1427_v60  ;;  %v670_v7 = vadd.f32 %v8579_v22, %v669_v5  ;;  %v8200_v2 = vld [vmem:[%s11146_s3 + $0x60] sm:$0xff]  }
 0x16b   : > { %v7013_v9 = vpop.f32.mrf.mxu0 }
 0x16c   : > { %7111 = vmatmul.mubr.msk.bf16.gmra.mxu1 %vm777_vm3, %v901_v6  ;;  %v763_v10 = vmax.f32 %v670_v7, 0.0 }
 0x16d   : > { %v1429_v12 = vld [vmem:[#allocation2 + $0x108] sm:$0xff]  ;;  %7114 = vmatprep.mubr.msk.bf16.mxu1 %vm8307_vm1, %v11154_v1  ;;  %v674_v13 = vpop.f32.mrf.mxu0 }
 0x16e   : > { %v8832_v14 = vpack.c.bf16 %v1429_v12, %v8821_v4  ;;  %813 = vst.msk [vmem:[#allocation2 + $0x118] sm:$0xff] %vm777_vm3, %v763_v10  ;;  %v675_v15 = vadd.f32 %v8579_v22, %v674_v13  ;;  %v902_v21 = vpack.c.bf16 %v1429_v12, %v1429_v12  ;;  %v8205_v12 = vld [vmem:[%s11146_s3 + $0xc0] sm:$0xff]  }
 0x16f   : > { %v7016_v16 = vpop.f32.mrf.mxu0 }
 0x170   : > { %7263 = vmatmul.mubr.msk.bf16.gmra.mxu0 %vm777_vm3, %v8832_v14  ;;  %v764_v18 = vmax.f32 %v675_v15, 0.0 }
 0x171   : > { %7266 = vmatprep.mubr.msk.bf16.mxu0 %vm8307_vm1, %v11154_v1  ;;  %v8840_v19 = vld [vmem:[#allocation2 + $0x110] sm:$0xff]  ;;  %v677_v20 = vpop.f32.mrf.mxu0 }
 0x172   : > { %814 = vst.msk [vmem:[#allocation2 + $0x120] sm:$0xff] %vm777_vm3, %v764_v18  ;;  %v678_v24 = vadd.f32 %v8579_v22, %v677_v20  ;;  %v1447_v27 = vpack.c.bf16 %v8840_v19, %v8840_v19 }
 0x173   : > { %v7017_v26 = vpop.f32.mrf.mxu0 }
 0x174   : > { %7115 = vmatmul.mubr.msk.bf16.gmra.mxu1 %vm777_vm3, %v902_v21  ;;  %v765_v28 = vmax.f32 %v678_v24, 0.0 }
 0x175   : > { %7126 = vmatprep.mubr.msk.bf16.mxu1 %vm8307_vm1, %v11154_v1  ;;  %v682_v29 = vpop.f32.mrf.mxu0  ;;  %v8860_v42 = vld [vmem:[#allocation2 + $0x118] sm:$0xff] }
 0x176   : > { %815 = vst.msk [vmem:[#allocation2 + $0x128] sm:$0xff] %vm777_vm3, %v765_v28  ;;  %v683_v30 = vadd.f32 %v8579_v22, %v682_v29 }
 0x177   : > { %v7020_v31 = vpop.f32.mrf.mxu0 }
 0x178   : > { %7267 = vmatmul.mubr.msk.bf16.gmra.mxu0 %vm777_vm3, %v1447_v27  ;;  %v766_v33 = vmax.f32 %v683_v30, 0.0 }
 0x179   : > { %7354 = vmatprep.mubr.msk.bf16.mxu0 %vm8307_vm1, %v11154_v1  ;;  %v685_v37 = vpop.f32.mrf.mxu0  ;;  %v8862_v43 = vld [vmem:[#allocation2 + $0x120] sm:$0xff] }
 0x17a   : > { %816 = vst.msk [vmem:[#allocation2 + $0x130] sm:$0xff] %vm777_vm3, %v766_v33  ;;  %v686_v40 = vadd.f32 %v8579_v22, %v685_v37 }
 0x17b   : > { %v7021_v41 = vpop.f32.mrf.mxu0 }
 0x17c   : > { %7127 = vmatmul.mubr.msk.bf16.vlgmr.msra.gmra.mxu1 %vm777_vm3, %v860_v39  ;;  %v767_v45 = vmax.f32 %v686_v40, 0.0 }
 0x17d   : > { %7271 = vmatpush3.bf16.msra.mxu1 %v8196_v36  ;;  %7130 = vmatprep.mubr.msk.bf16.mxu1 %vm8307_vm1, %v11154_v1  ;;  %v690_v44 = vpop.f32.mrf.mxu0  ;;  %v8930_v26 = vld [vmem:[#allocation2 + $0x128] sm:$0xff] }
 0x17e   : > { %817 = vst.msk [vmem:[#allocation2 + $0x138] sm:$0xff] %vm777_vm3, %v767_v45  ;;  %v691_v50 = vadd.f32 %v8579_v22, %v690_v44  ;;  %7272 = vmatprep.subr.bf16.mxu1 %v11154_v1 }
 0x17f   : > { %v7024_v53 = vpop.f32.mrf.mxu0 }
 0x180   : > { %7355 = vmatmul.mubr.msk.bf16.vlgmr.msra.gmra.mxu0 %vm777_vm3, %v8674_v35  ;;  %v768_v54 = vmax.f32 %v691_v50, 0.0 }
 0x181   : > { %7358 = vmatprep.mubr.msk.bf16.mxu0 %vm8307_vm1, %v11154_v1  ;;  %v693_v56 = vpop.f32.mrf.mxu0  ;;  %7273 = vmatpush3.bf16.msra.mxu1 %v8198_v49  ;;  %v8932_v27 = vld [vmem:[#allocation2 + $0x130] sm:$0xff] }
 0x182   : > { %818 = vst.msk [vmem:[#allocation2 + $0x140] sm:$0xff] %vm777_vm3, %v768_v54  ;;  %v694_v58 = vadd.f32 %v8579_v22, %v693_v56  ;;  %7274 = vmatprep.subr.bf16.mxu1 %v11154_v1  ;;  %7499 = vmatpush3.bf16.msra.mxu0 %v8201_v51 }
 0x183   : > { %v7025_v60 = vpop.f32.mrf.mxu0  ;;  %7500 = vmatprep.subr.bf16.mxu0 %v11154_v1 }
 0x184   : > { %7131 = vmatmul.mubr.msk.bf16.gmra.mxu1 %vm777_vm3, %v8609_v55  ;;  %v769_v62 = vmax.f32 %v694_v58, 0.0  ;;  %v8203_v55 = vld [vmem:[%s11146_s3 + $0xc8] sm:$0xff]  }
 0x185   : > { %7134 = vmatprep.mubr.msk.bf16.mxu1 %vm8307_vm1, %v11154_v1  ;;  %v698_v0 = vpop.f32.mrf.mxu0  ;;  %7275 = vmatpush3.bf16.msra.mxu1 %v8199_v57 }
 0x186   : > { %819 = vst.msk [vmem:[#allocation2 + $0x148] sm:$0xff] %vm777_vm3, %v769_v62  ;;  %v699_v5 = vadd.f32 %v8579_v22, %v698_v0  ;;  %7276 = vmatprep.subr.bf16.mxu1 %v11154_v1  ;;  %7501 = vmatpush3.bf16.msra.mxu0 %v8202_v59 }
 0x187   : > { %v7028_v6 = vpop.f32.mrf.mxu0  ;;  %7502 = vmatprep.subr.bf16.mxu0 %v11154_v1 }
 0x188   : > { %7359 = vmatmul.mubr.msk.bf16.gmra.mxu0 %vm777_vm3, %v8687_v48  ;;  %v770_v7 = vmax.f32 %v699_v5, 0.0 }
 0x189   : > { %7362 = vmatprep.mubr.msk.bf16.mxu0 %vm8307_vm1, %v11154_v1  ;;  %v701_v9 = vpop.f32.mrf.mxu0  ;;  %7277 = vmatpush3.bf16.msra.mxu1 %v8200_v2 }
 0x18a   : > { %820 = vst.msk [vmem:[#allocation2 + $0x150] sm:$0xff] %vm777_vm3, %v770_v7  ;;  %v702_v10 = vadd.f32 %v8579_v22, %v701_v9  ;;  %7503 = vmatpush3.bf16.msra.mxu0 %v8203_v55  ;;  %7422 = vmatprep.subr.bf16.mxu1 %v11154_v1 }
 0x18b   : > { %v7029_v13 = vpop.f32.mrf.mxu0  ;;  %7504 = vmatprep.subr.bf16.mxu0 %v11154_v1 }
 0x18c   : > { %7135 = vmatmul.mubr.msk.bf16.gmra.mxu1 %vm777_vm3, %v8637_v8  ;;  %v771_v15 = vmax.f32 %v702_v10, 0.0 }
 0x18d   : > { %7138 = vmatprep.mubr.msk.bf16.mxu1 %vm8307_vm1, %v11154_v1  ;;  %v706_v16 = vpop.f32.mrf.mxu0 }
 0x18e   : > { %821 = vst.msk [vmem:[#allocation2 + $0x158] sm:$0xff] %vm777_vm3, %v771_v15  ;;  %v707_v18 = vadd.f32 %v8579_v22, %v706_v16  ;;  %7505 = vmatpush3.bf16.msra.mxu0 %v8205_v12 }
 0x18f   : > { %v7032_v20 = vpop.f32.mrf.mxu0  ;;  %7650 = vmatprep.subr.bf16.mxu0 %v11154_v1 }
 0x190   : > { %7363 = vmatmul.mubr.msk.bf16.gmra.mxu0 %vm777_vm3, %v8700_v61  ;;  %v772_v21 = vmax.f32 %v707_v18, 0.0 }
 0x191   : > { %7366 = vmatprep.mubr.msk.bf16.mxu0 %vm8307_vm1, %v11154_v1  ;;  %v709_v8 = vpop.f32.mrf.mxu0 }
 0x192   : > { %822 = vst.msk [vmem:[#allocation2 + $0x160] sm:$0xff] %vm777_vm3, %v772_v21  ;;  %v710_v24 = vadd.f32 %v8579_v22, %v709_v8 }
 0x193   : > { %v7033_v28 = vpop.f32.mrf.mxu0 }
 0x194   : > { %7139 = vmatmul.mubr.msk.bf16.gmra.mxu1 %vm777_vm3, %v8660_v23  ;;  %v773_v30 = vmax.f32 %v710_v24, 0.0 }
 0x195   : > { %7142 = vmatprep.mubr.msk.bf16.mxu1 %vm8307_vm1, %v11154_v1  ;;  %v714_v31 = vpop.f32.mrf.mxu0 }
 0x196   : > { %823 = vst.msk [vmem:[#allocation2 + $0x168] sm:$0xff] %vm777_vm3, %v773_v30  ;;  %v715_v33 = vadd.f32 %v8579_v22, %v714_v31 }
 0x197   : > { %v7036_v34 = vpop.f32.mrf.mxu0 }
 0x198   : > { %7367 = vmatmul.mubr.msk.bf16.gmra.mxu0 %vm777_vm3, %v8713_v11  ;;  %v774_v36 = vmax.f32 %v715_v33, 0.0 }
 0x199   : > { %7370 = vmatprep.mubr.msk.bf16.mxu0 %vm8307_vm1, %v11154_v1  ;;  %v717_v37 = vpop.f32.mrf.mxu0 }
 0x19a   : > { %824 = vst.msk [vmem:[#allocation2 + $0x170] sm:$0xff] %vm777_vm3, %v774_v36  ;;  %v718_v23 = vadd.f32 %v8579_v22, %v717_v37 }
 0x19b   : > { %v7037_v39 = vpop.f32.mrf.mxu0 }
 0x19c   : > { %7143 = vmatmul.mubr.msk.bf16.gmra.mxu1 %vm777_vm3, %v8674_v35  ;;  %v775_v40 = vmax.f32 %v718_v23, 0.0 }
 0x19d   : > { %7146 = vmatprep.mubr.msk.bf16.mxu1 %vm8307_vm1, %v11154_v1  ;;  %v722_v41 = vpop.f32.mrf.mxu0 }
 0x19e   : > { %825 = vst.msk [vmem:[#allocation2 + $0x178] sm:$0xff] %vm777_vm3, %v775_v40  ;;  %v723_v45 = vadd.f32 %v8579_v22, %v722_v41 }
 0x19f   : > { %v7040_v44 = vpop.f32.mrf.mxu0 }
 0x1a0   : > { %7371 = vmatmul.mubr.msk.bf16.gmra.mxu0 %vm777_vm3, %v8726_v25  ;;  %v776_v49 = vmax.f32 %v723_v45, 0.0 }
 0x1a1   : > { %7374 = vmatprep.mubr.msk.bf16.mxu0 %vm8307_vm1, %v11154_v1  ;;  %v725_v50 = vpop.f32.mrf.mxu0 }
 0x1a2   : > { %826 = vst.msk [vmem:[#allocation2 + $0x180] sm:$0xff] %vm777_vm3, %v776_v49  ;;  %v2114_v49 = vpack.c.bf16 %v8860_v42, %v8840_v19 }
 0x1a3   : > { %v7041_v35 = vpop.f32.mrf.mxu0 }
 0x1a4   : > { %7147 = vmatmul.mubr.msk.bf16.gmra.mxu1 %vm777_vm3, %v8687_v48 }
 0x1a5   : > { %7150 = vmatprep.mubr.msk.bf16.mxu1 %vm8307_vm1, %v11154_v1 }
 0x1a8   : > { %7375 = vmatmul.mubr.msk.bf16.gmra.mxu0 %vm777_vm3, %v8739_v38 }
 0x1a9   : > { %7378 = vmatprep.mubr.msk.bf16.mxu0 %vm8307_vm1, %v11154_v1 }
 0x1ac   : > { %7151 = vmatmul.mubr.msk.bf16.gmra.mxu1 %vm777_vm3, %v8700_v61 }
 0x1ad   : > { %7154 = vmatprep.mubr.msk.bf16.mxu1 %vm8307_vm1, %v11154_v1 }
 0x1b0   : > { %7379 = vmatmul.mubr.msk.bf16.gmra.mxu0 %vm777_vm3, %v8752_v52 }
 0x1b1   : > { %7382 = vmatprep.mubr.msk.bf16.mxu0 %vm8307_vm1, %v11154_v1 }
 0x1b4   : > { %v8975_v22 = vpop.f32.mrf.mxu1  ;;  %7155 = vmatmul.mubr.msk.bf16.gmra.mxu1 %vm777_vm3, %v8713_v11 }
 0x1b5   : > { %7158 = vmatprep.mubr.msk.bf16.mxu1 %vm8307_vm1, %v11154_v1 }
 0x1b6   : > { %v7052_v48 = vpop.f32.mrf.mxu1 }
 0x1b8   : > { %v8981_v51 = vpop.f32.mrf.mxu1  ;;  %v8983_v61 = vpop.f32.mrf.mxu0  ;;  %7383 = vmatmul.mubr.msk.bf16.gmra.mxu0 %vm777_vm3, %v8765_v3 }
 0x1b9   : > { %7386 = vmatprep.mubr.msk.bf16.mxu0 %vm8307_vm1, %v11154_v1 }
 0x1ba   : > { %v7053_v53 = vpop.f32.mrf.mxu1  ;;  %v7204_v54 = vpop.f32.mrf.mxu0 }
 0x1bc   : > { %v8989_v56 = vpop.f32.mrf.mxu1  ;;  %7159 = vmatmul.mubr.msk.bf16.gmra.mxu1 %vm777_vm3, %v8726_v25  ;;  %v8993_v11 = vpop.f32.mrf.mxu0 }
 0x1bd   : > { %7162 = vmatprep.mubr.msk.bf16.mxu1 %vm8307_vm1, %v11154_v1 }
 0x1be   : > { %v7056_v57 = vpop.f32.mrf.mxu1  ;;  %v7205_v58 = vpop.f32.mrf.mxu0 }
 0x1bf   : > { %v9094_v57 = vpack.c.bf16 %v8930_v26, %v8862_v43 }
 0x1c0   : > { %v8997_v59 = vpop.f32.mrf.mxu1  ;;  %v8999_v60 = vpop.f32.mrf.mxu0  ;;  %7387 = vmatmul.mubr.msk.bf16.gmra.mxu0 %vm777_vm3, %v8778_v17 }
 0x1c1   : > { %7390 = vmatprep.mubr.msk.bf16.mxu0 %vm8307_vm1, %v11154_v1 }
 0x1c2   : > { %v7057_v62 = vpop.f32.mrf.mxu1  ;;  %v7208_v0 = vpop.f32.mrf.mxu0 }
 0x1c4   : > { %v9005_v25 = vpop.f32.mrf.mxu1  ;;  %7163 = vmatmul.mubr.msk.bf16.gmra.mxu1 %vm777_vm3, %v8739_v38  ;;  %v9009_v2 = vpop.f32.mrf.mxu0 }
 0x1c5   : > { %7166 = vmatprep.mubr.msk.bf16.mxu1 %vm8307_vm1, %v11154_v1 }
 0x1c6   : > { %v7060_v5 = vpop.f32.mrf.mxu1  ;;  %v7209_v55 = vpop.f32.mrf.mxu0 }
 0x1c8   : > { %v9013_v6 = vpop.f32.mrf.mxu1  ;;  %v9015_v7 = vpop.f32.mrf.mxu0  ;;  %7391 = vmatmul.mubr.msk.bf16.gmra.mxu0 %vm777_vm3, %v8791_v32 }
 0x1c9   : > { %7394 = vmatprep.mubr.msk.bf16.mxu0 %vm8307_vm1, %v11154_v1 }
 0x1ca   : > { %v7061_v9 = vpop.f32.mrf.mxu1  ;;  %v7212_v10 = vpop.f32.mrf.mxu0 }
 0x1cc   : > { %v9021_v38 = vpop.f32.mrf.mxu1  ;;  %7167 = vmatmul.mubr.msk.bf16.gmra.mxu1 %vm777_vm3, %v8752_v52  ;;  %v9025_v12 = vpop.f32.mrf.mxu0 }
 0x1cd   : > { %7170 = vmatprep.mubr.msk.bf16.mxu1 %vm8307_vm1, %v11154_v1 }
 0x1ce   : > { %v7064_v13 = vpop.f32.mrf.mxu1  ;;  %v7213_v15 = vpop.f32.mrf.mxu0 }
 0x1d0   : > { %v9029_v16 = vpop.f32.mrf.mxu1  ;;  %v9031_v18 = vpop.f32.mrf.mxu0  ;;  %7395 = vmatmul.mubr.msk.bf16.gmra.mxu0 %vm777_vm3, %v8804_v47 }
 0x1d1   : > { %11158 = vst [vmem:[#allocation8_spill] sm:$0xff] %v9031_v18  ;;  %7398 = vmatprep.mubr.msk.bf16.mxu0 %vm8307_vm1, %v11154_v1 }
 0x1d2   : > { %v7065_v20 = vpop.f32.mrf.mxu1  ;;  %v7216_v21 = vpop.f32.mrf.mxu0 }
 0x1d4   : > { %v9037_v52 = vpop.f32.mrf.mxu1  ;;  %7171 = vmatmul.mubr.msk.bf16.gmra.mxu1 %vm777_vm3, %v8765_v3  ;;  %v9041_v8 = vpop.f32.mrf.mxu0 }
 0x1d5   : > { %11159 = vst [vmem:[#allocation9_spill] sm:$0xff] %v9037_v52  ;;  %11160 = vst [vmem:[#allocation10_spill] sm:$0xff] %v9041_v8  ;;  %7174 = vmatprep.mubr.msk.bf16.mxu1 %vm8307_vm1, %v11154_v1 }
 0x1d6   : > { %v7068_v24 = vpop.f32.mrf.mxu1  ;;  %v7217_v28 = vpop.f32.mrf.mxu0 }
 0x1d8   : > { %v9045_v30 = vpop.f32.mrf.mxu1  ;;  %v9047_v31 = vpop.f32.mrf.mxu0  ;;  %7399 = vmatmul.mubr.msk.bf16.gmra.mxu0 %vm777_vm3, %v8817_v63 }
 0x1d9   : > { %11161 = vst [vmem:[#allocation11_spill] sm:$0xff] %v9045_v30  ;;  %11162 = vst [vmem:[#allocation12_spill] sm:$0xff] %v9047_v31  ;;  %7402 = vmatprep.mubr.msk.bf16.mxu0 %vm8307_vm1, %v11154_v1 }
 0x1da   : > { %v7069_v33 = vpop.f32.mrf.mxu1  ;;  %v7220_v34 = vpop.f32.mrf.mxu0 }
 0x1db   : > { %v876_v33 = vpack.c.bf16 %v8821_v4, %v8821_v4 }
 0x1dc   : > { %v9053_v3 = vpop.f32.mrf.mxu1  ;;  %7175 = vmatmul.mubr.msk.bf16.gmra.mxu1 %vm777_vm3, %v8778_v17  ;;  %v9057_v36 = vpop.f32.mrf.mxu0 }
 0x1dd   : > { %11163 = vst [vmem:[#allocation13_spill] sm:$0xff] %v9053_v3  ;;  %11164 = vst [vmem:[#allocation14_spill] sm:$0xff] %v9057_v36  ;;  %7178 = vmatprep.mubr.msk.bf16.mxu1 %vm8307_vm1, %v11154_v1 }
 0x1de   : > { %v7072_v37 = vpop.f32.mrf.mxu1  ;;  %v7221_v23 = vpop.f32.mrf.mxu0 }
 0x1e0   : > { %v9061_v39 = vpop.f32.mrf.mxu1  ;;  %v9063_v40 = vpop.f32.mrf.mxu0  ;;  %7403 = vmatmul.mubr.msk.bf16.gmra.mxu0 %vm777_vm3, %v8832_v14 }
 0x1e1   : > { %11165 = vst [vmem:[#allocation15_spill] sm:$0xff] %v9061_v39  ;;  %11166 = vst [vmem:[#allocation16_spill] sm:$0xff] %v9063_v40  ;;  %7406 = vmatprep.mubr.msk.bf16.mxu0 %vm8307_vm1, %v11154_v1  ;;  %v2757_v39 = vld [vmem:[#allocation2 + $0x108] sm:$0xff] }
 0x1e2   : > { %v7073_v41 = vpop.f32.mrf.mxu1  ;;  %v7224_v45 = vpop.f32.mrf.mxu0 }
 0x1e4   : > { %v9069_v17 = vpop.f32.mrf.mxu1  ;;  %7179 = vmatmul.mubr.msk.bf16.gmra.mxu1 %vm777_vm3, %v8791_v32  ;;  %v9073_v44 = vpop.f32.mrf.mxu0 }
 0x1e5   : > { %11167 = vst [vmem:[#allocation17_spill] sm:$0xff] %v9069_v17  ;;  %11168 = vst [vmem:[#allocation18_spill] sm:$0xff] %v9073_v44  ;;  %7182 = vmatprep.mubr.msk.bf16.mxu1 %vm8307_vm1, %v11154_v1 }
 0x1e6   : > { %v7076_v50 = vpop.f32.mrf.mxu1  ;;  %v7225_v14 = vpop.f32.mrf.mxu0 }
 0x1e7   : > { %v1734_v14 = vld [vmem:[#allocation2 + $0x40] sm:$0xff] }
 0x1e8   : > { %v9079_v35 = vpop.f32.mrf.mxu1  ;;  %v9081_v48 = vpop.f32.mrf.mxu0  ;;  %7407 = vmatmul.mubr.msk.bf16.gmra.mxu0 %vm777_vm3, %v2114_v49 }
 0x1e9   : > { %11169 = vst [vmem:[#allocation19_spill] sm:$0xff] %v9079_v35  ;;  %11170 = vst [vmem:[#allocation20_spill] sm:$0xff] %v9081_v48  ;;  %7410 = vmatprep.mubr.msk.bf16.mxu0 %vm8307_vm1, %v11154_v1  ;;  %v2755_v35 = vld [vmem:[#allocation2 + $0xf8] sm:$0xff] }
 0x1ea   : > { %v7077_v32 = vpop.f32.mrf.mxu1  ;;  %v7228_v53 = vpop.f32.mrf.mxu0 }
 0x1eb   : > { %v1733_v53 = vld [vmem:[#allocation2 + $0x38] sm:$0xff] }
 0x1ec   : > { %v9086_v54 = vpop.f32.mrf.mxu1  ;;  %7183 = vmatmul.mubr.msk.bf16.gmra.mxu1 %vm777_vm3, %v8804_v47  ;;  %v9090_v19 = vpop.f32.mrf.mxu0  ;;  %v9106_v47 = vld [vmem:[#allocation2 + $0x138] sm:$0xff] }
 0x1ed   : > { %11171 = vst [vmem:[#allocation21_spill] sm:$0xff] %v9086_v54  ;;  %11172 = vst [vmem:[#allocation22_spill] sm:$0xff] %v9090_v19  ;;  %7186 = vmatprep.mubr.msk.bf16.mxu1 %vm8307_vm1, %v11154_v1  ;;  %v9116_v15 = vpack.c.bf16 %v9106_v47, %v8932_v27  ;;  %v2753_v19 = vld [vmem:[#allocation2 + $0xe8] sm:$0xff] }
 0x1ee   : > { %v7080_v58 = vpop.f32.mrf.mxu1  ;;  %v7229_v62 = vpop.f32.mrf.mxu0 }
 0x1ef   : > { %v8204_v58 = vld [vmem:[%s11146_s3 + $0xb8] sm:$0xff]  }
 0x1f0   : > { %v9098_v0 = vpop.f32.mrf.mxu1  ;;  %v9100_v5 = vpop.f32.mrf.mxu0  ;;  %7411 = vmatmul.mubr.msk.bf16.gmra.mxu0 %vm777_vm3, %v9094_v57 }
 0x1f1   : > { %11173 = vst [vmem:[#allocation23_spill] sm:$0xff] %v9098_v0  ;;  %11174 = vst [vmem:[#allocation24_spill] sm:$0xff] %v9100_v5  ;;  %7414 = vmatprep.mubr.msk.bf16.mxu0 %vm8307_vm1, %v11154_v1 }
 0x1f2   : > { %v7081_v55 = vpop.f32.mrf.mxu1  ;;  %v7232_v9 = vpop.f32.mrf.mxu0 }
 0x1f3   : > { %v1766_v9 = vpack.c.bf16 %v1734_v14, %v1733_v53  ;;  %v8209_v14 = vld [vmem:[%s11146_s3 + $0x118] sm:$0xff]   ;;  %v1736_v53 = vld [vmem:[#allocation2 + $0x50] sm:$0xff] }
 0x1f4   : > { %v9108_v10 = vpop.f32.mrf.mxu1  ;;  %7187 = vmatmul.mubr.msk.bf16.gmra.mxu1 %vm777_vm3, %v8817_v63  ;;  %v9112_v13 = vpop.f32.mrf.mxu0  ;;  %v9128_v63 = vld [vmem:[#allocation2 + $0x140] sm:$0xff] }
 0x1f5   : > { %11175 = vst [vmem:[#allocation25_spill] sm:$0xff] %v9108_v10  ;;  %11176 = vst [vmem:[#allocation26_spill] sm:$0xff] %v9112_v13  ;;  %7190 = vmatprep.mubr.msk.bf16.mxu1 %vm8307_vm1, %v11154_v1  ;;  %v2117_v45 = vpack.c.bf16 %v9128_v63, %v9128_v63 }
 0x1f6   : > { %v7084_v20 = vpop.f32.mrf.mxu1  ;;  %v7233_v21 = vpop.f32.mrf.mxu0 }
 0x1f7   : > { %v9151_v20 = vld [vmem:[#allocation2 + $0x78] sm:$0xff] }
 0x1f8   : > { %v9120_v24 = vpop.f32.mrf.mxu1  ;;  %v9122_v28 = vpop.f32.mrf.mxu0  ;;  %7415 = vmatmul.mubr.msk.bf16.gmra.mxu0 %vm777_vm3, %v9116_v15 }
 0x1f9   : > { %11177 = vst [vmem:[#allocation27_spill] sm:$0xff] %v9120_v24  ;;  %11178 = vst [vmem:[#allocation28_spill] sm:$0xff] %v9122_v28  ;;  %7418 = vmatprep.mubr.msk.bf16.mxu0 %vm8307_vm1, %v11154_v1 }
 0x1fa   : > { %v7085_v34 = vpop.f32.mrf.mxu1  ;;  %v7236_v37 = vpop.f32.mrf.mxu0 }
 0x1fb   : > { %v9158_v34 = vld [vmem:[#allocation2 + $0x70] sm:$0xff] }
 0x1fc   : > { %v9132_v23 = vpop.f32.mrf.mxu1  ;;  %7191 = vmatmul.mubr.msk.bf16.gmra.mxu1 %vm777_vm3, %v876_v33  ;;  %v9135_v41 = vpop.f32.mrf.mxu0  ;;  %v8206_v37 = vld [vmem:[%s11146_s3 + $0xb0] sm:$0xff]  }
 0x1fd   : > { %11179 = vst [vmem:[#allocation29_spill] sm:$0xff] %v9132_v23  ;;  %11180 = vst [vmem:[#allocation30_spill] sm:$0xff] %v9135_v41  ;;  %7278 = vmatprep.mubr.msk.bf16.mxu1 %vm8307_vm1, %v11154_v1 }
 0x1fe   : > { %v7088_v49 = vpop.f32.mrf.mxu1  ;;  %v7237_v50 = vpop.f32.mrf.mxu0 }
 0x1ff   : > { %v2771_v50 = vpack.c.bf16 %v9151_v20, %v9158_v34 }
 0x200   : > { %v9141_v32 = vpop.f32.mrf.mxu1  ;;  %v9143_v4 = vpop.f32.mrf.mxu0  ;;  %7419 = vmatmul.mubr.msk.bf16.gmra.mxu0 %vm777_vm3, %v2117_v45 }
 0x201   : > { %11181 = vst [vmem:[#allocation31_spill] sm:$0xff] %v9141_v32  ;;  %11182 = vst [vmem:[#allocation32_spill] sm:$0xff] %v9143_v4  ;;  %7506 = vmatprep.mubr.msk.bf16.mxu0 %vm8307_vm1, %v11154_v1  ;;  %v9249_v32 = vld [vmem:[#allocation2 + $0xa8] sm:$0xff] }
 0x202   : > { %v7089_v62 = vpop.f32.mrf.mxu1  ;;  %v7240_v55 = vpop.f32.mrf.mxu0 }
 0x203   : > { %v1735_v55 = vld [vmem:[#allocation2 + $0x48] sm:$0xff] }
 0x204   : > { %v9153_v21 = vpop.f32.mrf.mxu1  ;;  %v9155_v33 = vpop.f32.mrf.mxu0  ;;  %7279 = vmatmul.mubr.msk.bf16.vlgmr.msra.gmra.mxu1 %vm777_vm3, %v1766_v9  ;;  %v8207_v9 = vld [vmem:[%s11146_s3 + $0xa8] sm:$0xff]   ;;  %v9181_v29 = vpack.c.bf16 %v1736_v53, %v1735_v55  ;;  %v2740_v53 = vld [vmem:[#allocation2 + $0x80] sm:$0xff] }
 0x205   : > { %11183 = vst [vmem:[#allocation33_spill] sm:$0xff] %v9153_v21  ;;  %11184 = vst [vmem:[#allocation34_spill] sm:$0xff] %v9155_v33  ;;  %7423 = vmatpush3.bf16.msra.mxu1 %v8204_v58  ;;  %7282 = vmatprep.mubr.msk.bf16.mxu1 %vm8307_vm1, %v11154_v1 }
 0x206   : > { %v7092_v45 = vpop.f32.mrf.mxu1  ;;  %v7241_v49 = vpop.f32.mrf.mxu0  ;;  %7424 = vmatprep.subr.bf16.mxu1 %v11154_v1 }
 0x208   : > { %v9171_v58 = vpop.f32.mrf.mxu1  ;;  %v9173_v62 = vpop.f32.mrf.mxu0  ;;  %7507 = vmatmul.mubr.msk.bf16.vlgmr.msra.gmra.mxu0 %vm777_vm3, %v2771_v50  ;;  %v8210_v50 = vld [vmem:[%s11146_s3 + $0x110] sm:$0xff]  }
 0x209   : > { %11185 = vst [vmem:[#allocation35_spill] sm:$0xff] %v9171_v58  ;;  %11186 = vst [vmem:[#allocation36_spill] sm:$0xff] %v9173_v62  ;;  %7510 = vmatprep.mubr.msk.bf16.mxu0 %vm8307_vm1, %v11154_v1  ;;  %7425 = vmatpush3.bf16.msra.mxu1 %v8206_v37 }
 0x20a   : > { %v7093_v45 = vpop.f32.mrf.mxu1  ;;  %v7244_v49 = vpop.f32.mrf.mxu0  ;;  %7426 = vmatprep.subr.bf16.mxu1 %v11154_v1  ;;  %7651 = vmatpush3.bf16.msra.mxu0 %v8209_v14  ;;  %v8208_v14 = vld [vmem:[%s11146_s3 + $0xa0] sm:$0xff]  }
 0x20b   : > { %7652 = vmatprep.subr.bf16.mxu0 %v11154_v1  ;;  %v9202_v49 = vpack.c.bf16 %v9187_v46, %v2740_v53 }
 0x20c   : > { %v9190_v37 = vpop.f32.mrf.mxu1  ;;  %v9192_v62 = vpop.f32.mrf.mxu0  ;;  %7283 = vmatmul.mubr.msk.bf16.gmra.mxu1 %vm777_vm3, %v9181_v29 }
 0x20d   : > { %11187 = vst [vmem:[#allocation37_spill] sm:$0xff] %v9190_v37  ;;  %11188 = vst [vmem:[#allocation38_spill] sm:$0xff] %v9192_v62  ;;  %7286 = vmatprep.mubr.msk.bf16.mxu1 %vm8307_vm1, %v11154_v1  ;;  %7427 = vmatpush3.bf16.msra.mxu1 %v8207_v9  ;;  %v8211_v62 = vld [vmem:[%s11146_s3 + $0x108] sm:$0xff]   ;;  %v1738_v37 = vld [vmem:[#allocation2 + $0x60] sm:$0xff] }
 0x20e   : > { %v7096_v55 = vpop.f32.mrf.mxu1  ;;  %v7245_v45 = vpop.f32.mrf.mxu0  ;;  %7428 = vmatprep.subr.bf16.mxu1 %v11154_v1  ;;  %7653 = vmatpush3.bf16.msra.mxu0 %v8210_v50 }
 0x20f   : > { %7654 = vmatprep.subr.bf16.mxu0 %v11154_v1  ;;  %v1737_v55 = vld [vmem:[#allocation2 + $0x58] sm:$0xff] }
 0x210   : > { %v9209_v9 = vpop.f32.mrf.mxu1  ;;  %v9211_v58 = vpop.f32.mrf.mxu0  ;;  %7511 = vmatmul.mubr.msk.bf16.gmra.mxu0 %vm777_vm3, %v9202_v49  ;;  %v9217_v33 = vpack.c.bf16 %v1738_v37, %v1737_v55  ;;  %v2742_v37 = vld [vmem:[#allocation2 + $0x90] sm:$0xff] }
 0x211   : > { %11189 = vst [vmem:[#allocation39_spill] sm:$0xff] %v9209_v9  ;;  %11190 = vst [vmem:[#allocation40_spill] sm:$0xff] %v9211_v58  ;;  %7514 = vmatprep.mubr.msk.bf16.mxu0 %vm8307_vm1, %v11154_v1  ;;  %7429 = vmatpush3.bf16.msra.mxu1 %v8208_v14  ;;  %v8213_v9 = vld [vmem:[%s11146_s3 + $0x100] sm:$0xff]   ;;  %v9223_v58 = vld [vmem:[#allocation2 + $0x98] sm:$0xff] }
 0x212   : > { %v7097_v50 = vpop.f32.mrf.mxu1  ;;  %v7248_v45 = vpop.f32.mrf.mxu0  ;;  %7655 = vmatpush3.bf16.msra.mxu0 %v8211_v62  ;;  %7574 = vmatprep.subr.bf16.mxu1 %v11154_v1  ;;  %v9235_v55 = vpack.c.bf16 %v9223_v58, %v2742_v37 }
 0x213   : > { %7656 = vmatprep.subr.bf16.mxu0 %v11154_v1 }
 0x214   : > { %v9226_v21 = vpop.f32.mrf.mxu1  ;;  %v9228_v4 = vpop.f32.mrf.mxu0  ;;  %7287 = vmatmul.mubr.msk.bf16.gmra.mxu1 %vm777_vm3, %v9217_v33 }
 0x215   : > { %11191 = vst [vmem:[#allocation41_spill] sm:$0xff] %v9226_v21  ;;  %11192 = vst [vmem:[#allocation42_spill] sm:$0xff] %v9228_v4  ;;  %7290 = vmatprep.mubr.msk.bf16.mxu1 %vm8307_vm1, %v11154_v1  ;;  %v1739_v4 = vld [vmem:[#allocation2 + $0x68] sm:$0xff] }
 0x216   : > { %v7100_v62 = vpop.f32.mrf.mxu1  ;;  %v7249_v14 = vpop.f32.mrf.mxu0  ;;  %7657 = vmatpush3.bf16.msra.mxu0 %v8213_v9 }
 0x217   : > { %7766 = vmatprep.subr.bf16.mxu0 %v11154_v1  ;;  %v9247_v14 = vpack.c.bf16 %v9158_v34, %v1739_v4 }
 0x218   : > { %v9238_v50 = vpop.f32.mrf.mxu1  ;;  %v9240_v45 = vpop.f32.mrf.mxu0  ;;  %7515 = vmatmul.mubr.msk.bf16.gmra.mxu0 %vm777_vm3, %v9235_v55 }
 0x219   : > { %11193 = vst [vmem:[#allocation43_spill] sm:$0xff] %v9238_v50  ;;  %11194 = vst [vmem:[#allocation44_spill] sm:$0xff] %v9240_v45  ;;  %7518 = vmatprep.mubr.msk.bf16.mxu0 %vm8307_vm1, %v11154_v1  ;;  %v2744_v45 = vld [vmem:[#allocation2 + $0xa0] sm:$0xff] }
 0x21a   : > { %v7101_v21 = vpop.f32.mrf.mxu1  ;;  %v7252_v62 = vpop.f32.mrf.mxu0 }
 0x21b   : > { %v9260_v21 = vpack.c.bf16 %v9249_v32, %v2744_v45 }
 0x21c   : > { %v9251_v9 = vpop.f32.mrf.mxu1  ;;  %v9253_v41 = vpop.f32.mrf.mxu0  ;;  %7291 = vmatmul.mubr.msk.bf16.gmra.mxu1 %vm777_vm3, %v9247_v14 }
 0x21d   : > { %11195 = vst [vmem:[#allocation45_spill] sm:$0xff] %v9251_v9  ;;  %11196 = vst [vmem:[#allocation46_spill] sm:$0xff] %v9253_v41  ;;  %7294 = vmatprep.mubr.msk.bf16.mxu1 %vm8307_vm1, %v11154_v1  ;;  %v9271_v9 = vpack.c.bf16 %v2740_v53, %v9151_v20 }
 0x21e   : > { %v7104_v50 = vpop.f32.mrf.mxu1  ;;  %v7253_v23 = vpop.f32.mrf.mxu0 }
 0x21f   : > { %v9273_v50 = vld [vmem:[#allocation2 + $0xb8] sm:$0xff] }
 0x220   : > { %v9262_v4 = vpop.f32.mrf.mxu1  ;;  %v9264_v34 = vpop.f32.mrf.mxu0  ;;  %7519 = vmatmul.mubr.msk.bf16.gmra.mxu0 %vm777_vm3, %v9260_v21 }
 0x221   : > { %11197 = vst [vmem:[#allocation47_spill] sm:$0xff] %v9262_v4  ;;  %11198 = vst [vmem:[#allocation48_spill] sm:$0xff] %v9264_v34  ;;  %7522 = vmatprep.mubr.msk.bf16.mxu0 %vm8307_vm1, %v11154_v1  ;;  %v2746_v34 = vld [vmem:[#allocation2 + $0xb0] sm:$0xff] }
 0x222   : > { %v7105_v62 = vpop.f32.mrf.mxu1  ;;  %v7256_v41 = vpop.f32.mrf.mxu0 }
 0x223   : > { %v9284_v41 = vpack.c.bf16 %v9273_v50, %v2746_v34 }
 0x224   : > { %v9275_v23 = vpop.f32.mrf.mxu1  ;;  %v9277_v28 = vpop.f32.mrf.mxu0  ;;  %7295 = vmatmul.mubr.msk.bf16.gmra.mxu1 %vm777_vm3, %v9271_v9 }
 0x225   : > { %11199 = vst [vmem:[#allocation49_spill] sm:$0xff] %v9275_v23  ;;  %11200 = vst [vmem:[#allocation50_spill] sm:$0xff] %v9277_v28  ;;  %7298 = vmatprep.mubr.msk.bf16.mxu1 %vm8307_vm1, %v11154_v1  ;;  %v9295_v23 = vpack.c.bf16 %v2742_v37, %v9187_v46 }
 0x226   : > { %v7108_v4 = vpop.f32.mrf.mxu1  ;;  %v7257_v24 = vpop.f32.mrf.mxu0 }
 0x227   : > { %v9297_v4 = vld [vmem:[#allocation2 + $0xc8] sm:$0xff] }
 0x228   : > { %v9286_v20 = vpop.f32.mrf.mxu1  ;;  %v9288_v53 = vpop.f32.mrf.mxu0  ;;  %7523 = vmatmul.mubr.msk.bf16.gmra.mxu0 %vm777_vm3, %v9284_v41 }
 0x229   : > { %11201 = vst [vmem:[#allocation51_spill] sm:$0xff] %v9286_v20  ;;  %11202 = vst [vmem:[#allocation52_spill] sm:$0xff] %v9288_v53  ;;  %7526 = vmatprep.mubr.msk.bf16.mxu0 %vm8307_vm1, %v11154_v1  ;;  %v2748_v53 = vld [vmem:[#allocation2 + $0xc0] sm:$0xff] }
 0x22a   : > { %v7109_v62 = vpop.f32.mrf.mxu1  ;;  %v7260_v28 = vpop.f32.mrf.mxu0 }
 0x22b   : > { %v9308_v28 = vpack.c.bf16 %v9297_v4, %v2748_v53 }
 0x22c   : > { %v9299_v24 = vpop.f32.mrf.mxu1  ;;  %v9301_v13 = vpop.f32.mrf.mxu0  ;;  %7299 = vmatmul.mubr.msk.bf16.gmra.mxu1 %vm777_vm3, %v9295_v23 }
 0x22d   : > { %11203 = vst [vmem:[#allocation53_spill] sm:$0xff] %v9299_v24  ;;  %11204 = vst [vmem:[#allocation54_spill] sm:$0xff] %v9301_v13  ;;  %7302 = vmatprep.mubr.msk.bf16.mxu1 %vm8307_vm1, %v11154_v1  ;;  %v9319_v24 = vpack.c.bf16 %v2744_v45, %v9223_v58 }
 0x22e   : > { %v7112_v20 = vpop.f32.mrf.mxu1  ;;  %v7261_v10 = vpop.f32.mrf.mxu0 }
 0x22f   : > { %v9321_v20 = vld [vmem:[#allocation2 + $0xd8] sm:$0xff] }
 0x230   : > { %v9310_v46 = vpop.f32.mrf.mxu1  ;;  %v9312_v37 = vpop.f32.mrf.mxu0  ;;  %7527 = vmatmul.mubr.msk.bf16.gmra.mxu0 %vm777_vm3, %v9308_v28 }
 0x231   : > { %11205 = vst [vmem:[#allocation55_spill] sm:$0xff] %v9310_v46  ;;  %11206 = vst [vmem:[#allocation56_spill] sm:$0xff] %v9312_v37  ;;  %7530 = vmatprep.mubr.msk.bf16.mxu0 %vm8307_vm1, %v11154_v1  ;;  %v2750_v37 = vld [vmem:[#allocation2 + $0xd0] sm:$0xff] }
 0x232   : > { %v7113_v62 = vpop.f32.mrf.mxu1  ;;  %v7264_v13 = vpop.f32.mrf.mxu0 }
 0x233   : > { %v9332_v13 = vpack.c.bf16 %v9321_v20, %v2750_v37 }
 0x234   : > { %v9323_v10 = vpop.f32.mrf.mxu1  ;;  %v9325_v5 = vpop.f32.mrf.mxu0  ;;  %7303 = vmatmul.mubr.msk.bf16.gmra.mxu1 %vm777_vm3, %v9319_v24 }
 0x235   : > { %11207 = vst [vmem:[#allocation57_spill] sm:$0xff] %v9323_v10  ;;  %11208 = vst [vmem:[#allocation58_spill] sm:$0xff] %v9325_v5  ;;  %7306 = vmatprep.mubr.msk.bf16.mxu1 %vm8307_vm1, %v11154_v1  ;;  %v9341_v10 = vpack.c.bf16 %v2746_v34, %v9249_v32 }
 0x236   : > { %v7116_v46 = vpop.f32.mrf.mxu1  ;;  %v7265_v0 = vpop.f32.mrf.mxu0 }
 0x238   : > { %v1152_v58 = vpop.f32.mrf.mxu1  ;;  %v9334_v45 = vpop.f32.mrf.mxu0  ;;  %7531 = vmatmul.mubr.msk.bf16.gmra.mxu0 %vm777_vm3, %v9332_v13 }
 0x239   : > { %11209 = vst [vmem:[#allocation59_spill] sm:$0xff] %v9334_v45  ;;  %7534 = vmatprep.mubr.msk.bf16.mxu0 %vm8307_vm1, %v11154_v1  ;;  %v2752_v58 = vld [vmem:[#allocation2 + $0xe0] sm:$0xff] }
 0x23a   : > { %v7117_v62 = vpop.f32.mrf.mxu1  ;;  %v7268_v5 = vpop.f32.mrf.mxu0  ;;  %v9349_v48 = vpack.c.bf16 %v2753_v19, %v2752_v58 }
 0x23c   : > { %v9343_v46 = vpop.f32.mrf.mxu1  ;;  %v1697_v0 = vpop.f32.mrf.mxu0  ;;  %7307 = vmatmul.mubr.msk.bf16.gmra.mxu1 %vm777_vm3, %v9341_v10 }
 0x23d   : > { %7310 = vmatprep.mubr.msk.bf16.mxu1 %vm8307_vm1, %v11154_v1  ;;  %v9360_v0 = vpack.c.bf16 %v2748_v53, %v9273_v50 }
 0x23e   : > { %v7128_v45 = vpop.f32.mrf.mxu1  ;;  %v7269_v54 = vpop.f32.mrf.mxu0 }
 0x240   : > { %v9351_v62 = vpop.f32.mrf.mxu1  ;;  %v9353_v5 = vpop.f32.mrf.mxu0  ;;  %7535 = vmatmul.mubr.msk.bf16.gmra.mxu0 %vm777_vm3, %v9349_v48 }
 0x241   : > { %11210 = vst [vmem:[#allocation60_spill] sm:$0xff] %v9353_v5  ;;  %7538 = vmatprep.mubr.msk.bf16.mxu0 %vm8307_vm1, %v11154_v1  ;;  %v2754_v5 = vld [vmem:[#allocation2 + $0xf0] sm:$0xff] }
 0x242   : > { %v7129_v32 = vpop.f32.mrf.mxu1  ;;  %v7356_v34 = vpop.f32.mrf.mxu0  ;;  %v9370_v40 = vpack.c.bf16 %v2755_v35, %v2754_v5  ;;  %v9423_v52 = vpack.c.bf16 %v2754_v5, %v2753_v19 }
 0x244   : > { %v9362_v45 = vpop.f32.mrf.mxu1  ;;  %7311 = vmatmul.mubr.msk.bf16.gmra.mxu1 %vm777_vm3, %v9360_v0  ;;  %v9366_v54 = vpop.f32.mrf.mxu0 }
 0x245   : > { %11211 = vst [vmem:[#allocation61_spill] sm:$0xff] %v9366_v54  ;;  %7314 = vmatprep.mubr.msk.bf16.mxu1 %vm8307_vm1, %v11154_v1  ;;  %v9381_v54 = vpack.c.bf16 %v2750_v37, %v9297_v4 }
 0x246   : > { %v7132_v44 = vpop.f32.mrf.mxu1  ;;  %v7357_v17 = vpop.f32.mrf.mxu0 }
 0x248   : > { %v9372_v32 = vpop.f32.mrf.mxu1  ;;  %v9374_v50 = vpop.f32.mrf.mxu0  ;;  %7539 = vmatmul.mubr.msk.bf16.gmra.mxu0 %vm777_vm3, %v9370_v40 }
 0x249   : > { %11212 = vst [vmem:[#allocation62_spill] sm:$0xff] %v9374_v50  ;;  %7542 = vmatprep.mubr.msk.bf16.mxu0 %vm8307_vm1, %v11154_v1  ;;  %v2756_v50 = vld [vmem:[#allocation2 + $0x100] sm:$0xff] }
 0x24a   : > { %v7133_v53 = vpop.f32.mrf.mxu1  ;;  %v7360_v34 = vpop.f32.mrf.mxu0  ;;  %v9391_v31 = vpack.c.bf16 %v2757_v39, %v2756_v50 }
 0x24c   : > { %v9383_v44 = vpop.f32.mrf.mxu1  ;;  %7315 = vmatmul.mubr.msk.bf16.gmra.mxu1 %vm777_vm3, %v9381_v54  ;;  %v9387_v17 = vpop.f32.mrf.mxu0 }
 0x24d   : > { %11213 = vst [vmem:[#allocation63_spill] sm:$0xff] %v9387_v17  ;;  %7318 = vmatprep.mubr.msk.bf16.mxu1 %vm8307_vm1, %v11154_v1  ;;  %v9402_v17 = vpack.c.bf16 %v2752_v58, %v9321_v20 }
 0x24e   : > { %v7136_v36 = vpop.f32.mrf.mxu1  ;;  %v7361_v3 = vpop.f32.mrf.mxu0 }
 0x24f   : > { %v9410_v36 = vld [vmem:[#allocation2 + $0x110] sm:$0xff] }
 0x250   : > { %v9393_v53 = vpop.f32.mrf.mxu1  ;;  %v9395_v4 = vpop.f32.mrf.mxu0  ;;  %7543 = vmatmul.mubr.msk.bf16.gmra.mxu0 %vm777_vm3, %v9391_v31 }
 0x251   : > { %11214 = vst [vmem:[#allocation64_spill] sm:$0xff] %v9395_v4  ;;  %7546 = vmatprep.mubr.msk.bf16.mxu0 %vm8307_vm1, %v11154_v1 }
 0x252   : > { %v7137_v37 = vpop.f32.mrf.mxu1  ;;  %v7364_v34 = vpop.f32.mrf.mxu0 }
 0x253   : > { %v2781_v37 = vpack.c.bf16 %v8860_v42, %v9410_v36 }
 0x254   : > { %v9404_v30 = vpop.f32.mrf.mxu1  ;;  %7319 = vmatmul.mubr.msk.bf16.gmra.mxu1 %vm777_vm3, %v9402_v17  ;;  %v9408_v3 = vpop.f32.mrf.mxu0 }
 0x255   : > { %11215 = vst [vmem:[#allocation65_spill] sm:$0xff] %v9408_v3  ;;  %7322 = vmatprep.mubr.msk.bf16.mxu1 %vm8307_vm1, %v11154_v1 }
 0x256   : > { %v7140_v4 = vpop.f32.mrf.mxu1  ;;  %v7365_v8 = vpop.f32.mrf.mxu0 }
 0x258   : > { %v9416_v34 = vpop.f32.mrf.mxu1  ;;  %v9418_v20 = vpop.f32.mrf.mxu0  ;;  %7547 = vmatmul.mubr.msk.bf16.gmra.mxu0 %vm777_vm3, %v2781_v37 }
 0x259   : > { %11216 = vst [vmem:[#allocation66_spill] sm:$0xff] %v9416_v34  ;;  %11217 = vst [vmem:[#allocation67_spill] sm:$0xff] %v9418_v20  ;;  %7550 = vmatprep.mubr.msk.bf16.mxu0 %vm8307_vm1, %v11154_v1 }
 0x25a   : > { %v7141_v58 = vpop.f32.mrf.mxu1  ;;  %v7368_v3 = vpop.f32.mrf.mxu0 }
 0x25b   : > { %v9441_v3 = vpack.c.bf16 %v2756_v50, %v2755_v35 }
 0x25c   : > { %v9425_v18 = vpop.f32.mrf.mxu1  ;;  %7323 = vmatmul.mubr.msk.bf16.gmra.mxu1 %vm777_vm3, %v9423_v52  ;;  %v9429_v8 = vpop.f32.mrf.mxu0 }
 0x25d   : > { %11218 = vst [vmem:[#allocation68_spill] sm:$0xff] %v9429_v8  ;;  %7326 = vmatprep.mubr.msk.bf16.mxu1 %vm8307_vm1, %v11154_v1 }
 0x25e   : > { %v7144_v4 = vpop.f32.mrf.mxu1  ;;  %v7369_v20 = vpop.f32.mrf.mxu0 }
 0x260   : > { %v9433_v37 = vpop.f32.mrf.mxu1  ;;  %v9435_v34 = vpop.f32.mrf.mxu0  ;;  %7551 = vmatmul.mubr.msk.bf16.gmra.mxu0 %vm777_vm3, %v9094_v57 }
 0x261   : > { %11219 = vst [vmem:[#allocation69_spill] sm:$0xff] %v9435_v34  ;;  %7554 = vmatprep.mubr.msk.bf16.mxu0 %vm8307_vm1, %v11154_v1 }
 0x262   : > { %v7145_v19 = vpop.f32.mrf.mxu1  ;;  %v7372_v5 = vpop.f32.mrf.mxu0 }
 0x263   : > { %v9460_v19 = vpack.c.bf16 %v9410_v36, %v2757_v39  ;;  %v9462_v5 = vld [vmem:[#allocation2 + $0x148] sm:$0xff] }
 0x264   : > { %v9443_v58 = vpop.f32.mrf.mxu1  ;;  %7327 = vmatmul.mubr.msk.bf16.gmra.mxu1 %vm777_vm3, %v9441_v3  ;;  %v9447_v20 = vpop.f32.mrf.mxu0 }
 0x265   : > { %11220 = vst [vmem:[#allocation70_spill] sm:$0xff] %v9447_v20  ;;  %7330 = vmatprep.mubr.msk.bf16.mxu1 %vm8307_vm1, %v11154_v1  ;;  %11223 = vst [vmem:[#allocation73_spill] sm:$0xff] %v9460_v19 }
 0x266   : > { %v7148_v4 = vpop.f32.mrf.mxu1  ;;  %v7373_v34 = vpop.f32.mrf.mxu0 }
 0x268   : > { %v9451_v57 = vpop.f32.mrf.mxu1  ;;  %v9453_v8 = vpop.f32.mrf.mxu0  ;;  %7555 = vmatmul.mubr.msk.bf16.gmra.mxu0 %vm777_vm3, %v9116_v15 }
 0x269   : > { %11221 = vst [vmem:[#allocation71_spill] sm:$0xff] %v9451_v57  ;;  %11222 = vst [vmem:[#allocation72_spill] sm:$0xff] %v9453_v8  ;;  %7558 = vmatprep.mubr.msk.bf16.mxu0 %vm8307_vm1, %v11154_v1 }
 0x26a   : > { %v7149_v35 = vpop.f32.mrf.mxu1  ;;  %v7376_v50 = vpop.f32.mrf.mxu0 }
 0x26b   : > { %v2784_v35 = vpack.c.bf16 %v9462_v5, %v9128_v63 }
 0x26c   : > { %v9464_v20 = vpop.f32.mrf.mxu1  ;;  %7331 = vmatmul.mubr.msk.bf16.gmra.mxu1 %vm777_vm3, %v9460_v19  ;;  %v9468_v34 = vpop.f32.mrf.mxu0  ;;  %v2767_v19 = vld [vmem:[#allocation2 + $0x158] sm:$0xff] }
 0x26d   : > { %11224 = vst [vmem:[#allocation74_spill] sm:$0xff] %v9464_v20  ;;  %11225 = vst [vmem:[#allocation75_spill] sm:$0xff] %v9468_v34  ;;  %7334 = vmatprep.mubr.msk.bf16.mxu1 %vm8307_vm1, %v11154_v1  ;;  %v2766_v34 = vld [vmem:[#allocation2 + $0x150] sm:$0xff] }
 0x26e   : > { %v7152_v15 = vpop.f32.mrf.mxu1  ;;  %v7377_v4 = vpop.f32.mrf.mxu0 }
 0x26f   : > { %v11228_v15 = vpack.c.bf16 %v8862_v43, %v8860_v42 }
 0x270   : > { %v9474_v50 = vpop.f32.mrf.mxu1  ;;  %v9476_v39 = vpop.f32.mrf.mxu0  ;;  %7559 = vmatmul.mubr.msk.bf16.gmra.mxu0 %vm777_vm3, %v2784_v35 }
 0x271   : > { %11226 = vst [vmem:[#allocation76_spill] sm:$0xff] %v9476_v39  ;;  %7562 = vmatprep.mubr.msk.bf16.mxu0 %vm8307_vm1, %v11154_v1  ;;  %v9491_v39 = vpack.c.bf16 %v2767_v19, %v2766_v34  ;;  %v11231_v19 = vpack.c.bf16 %v8932_v27, %v8930_v26 }
 0x272   : > { %v7153_v8 = vpop.f32.mrf.mxu1  ;;  %v7380_v20 = vpop.f32.mrf.mxu0 }
 0x274   : > { %v9481_v57 = vpop.f32.mrf.mxu1  ;;  %7335 = vmatmul.mubr.msk.bf16.gmra.mxu1 %vm777_vm3, %v11228_v15  ;;  %v9487_v63 = vpop.f32.mrf.mxu0  ;;  %v2768_v15 = vld [vmem:[#allocation2 + $0x160] sm:$0xff] }
 0x275   : > { %11227 = vst [vmem:[#allocation77_spill] sm:$0xff] %v9481_v57  ;;  %11229 = vst [vmem:[#allocation78_spill] sm:$0xff] %v9487_v63  ;;  %7338 = vmatprep.mubr.msk.bf16.mxu1 %vm8307_vm1, %v11154_v1  ;;  %v2769_v63 = vld [vmem:[#allocation2 + $0x168] sm:$0xff] }
 0x276   : > { %v7156_v4 = vpop.f32.mrf.mxu1  ;;  %v7381_v35 = vpop.f32.mrf.mxu0 }
 0x278   : > { %v9493_v8 = vpop.f32.mrf.mxu1  ;;  %v9495_v20 = vpop.f32.mrf.mxu0  ;;  %7563 = vmatmul.mubr.msk.bf16.gmra.mxu0 %vm777_vm3, %v9491_v39 }
 0x279   : > { %11230 = vst [vmem:[#allocation79_spill] sm:$0xff] %v9495_v20  ;;  %7566 = vmatprep.mubr.msk.bf16.mxu0 %vm8307_vm1, %v11154_v1  ;;  %v9511_v20 = vpack.c.bf16 %v2769_v63, %v2768_v15 }
 0x27a   : > { %v7157_v42 = vpop.f32.mrf.mxu1  ;;  %v7384_v43 = vpop.f32.mrf.mxu0 }
 0x27c   : > { %v9501_v57 = vpop.f32.mrf.mxu1  ;;  %7339 = vmatmul.mubr.msk.bf16.gmra.mxu1 %vm777_vm3, %v11231_v19  ;;  %v9507_v34 = vpop.f32.mrf.mxu0  ;;  %v1782_v19 = vpack.c.bf16 %v9106_v47, %v9106_v47  ;;  %v8212_v47 = vld [vmem:[%s11146_s3 + $0xf8] sm:$0xff]  }
 0x27d   : > { %11232 = vst [vmem:[#allocation80_spill] sm:$0xff] %v9507_v34  ;;  %7342 = vmatprep.mubr.msk.bf16.mxu1 %vm8307_vm1, %v11154_v1  ;;  %v9523_v34 = vld [vmem:[#allocation2 + $0x170] sm:$0xff] }
 0x27e   : > { %v7160_v4 = vpop.f32.mrf.mxu1  ;;  %v7385_v35 = vpop.f32.mrf.mxu0 }
 0x280   : > { %v9513_v42 = vpop.f32.mrf.mxu1  ;;  %v9515_v43 = vpop.f32.mrf.mxu0  ;;  %7567 = vmatmul.mubr.msk.bf16.gmra.mxu0 %vm777_vm3, %v9511_v20 }
 0x281   : > { %11233 = vst [vmem:[#allocation81_spill] sm:$0xff] %v9515_v43  ;;  %7570 = vmatprep.mubr.msk.bf16.mxu0 %vm8307_vm1, %v11154_v1 }
 0x282   : > { %v7161_v26 = vpop.f32.mrf.mxu1  ;;  %v7388_v27 = vpop.f32.mrf.mxu0 }
 0x283   : > { %v2787_v26 = vpack.c.bf16 %v9523_v34, %v9523_v34 }
 0x284   : > { %v9525_v4 = vpop.f32.mrf.mxu1  ;;  %7343 = vmatmul.mubr.msk.bf16.gmra.mxu1 %vm777_vm3, %v1782_v19  ;;  %v9528_v63 = vpop.f32.mrf.mxu0 }
 0x285   : > { %11234 = vst [vmem:[#allocation82_spill] sm:$0xff] %v9528_v63  ;;  %7430 = vmatprep.mubr.msk.bf16.mxu1 %vm8307_vm1, %v11154_v1 }
 0x286   : > { %v7164_v15 = vpop.f32.mrf.mxu1  ;;  %v7389_v35 = vpop.f32.mrf.mxu0 }
 0x288   : > { %v9534_v27 = vpop.f32.mrf.mxu1  ;;  %v9536_v43 = vpop.f32.mrf.mxu0  ;;  %7571 = vmatmul.mubr.msk.bf16.gmra.mxu0 %vm777_vm3, %v2787_v26  ;;  %v8214_v26 = vld [vmem:[%s11146_s3 + $0xf0] sm:$0xff]  }
 0x289   : > { %11235 = vst [vmem:[#allocation83_spill] sm:$0xff] %v9534_v27  ;;  %11236 = vst [vmem:[#allocation84_spill] sm:$0xff] %v9536_v43  ;;  %7658 = vmatprep.mubr.msk.bf16.mxu0 %vm8307_vm1, %v11154_v1 }
 0x28a   : > { %v7165_v19 = vpop.f32.mrf.mxu1  ;;  %v7392_v63 = vpop.f32.mrf.mxu0 }
 0x28c   : > { %v9544_v15 = vpop.f32.mrf.mxu1  ;;  %v9546_v35 = vpop.f32.mrf.mxu0  ;;  %7431 = vmatmul.mubr.msk.bf16.vlgmr.msra.gmra.mxu1 %vm777_vm3, %v9181_v29  ;;  %v8215_v29 = vld [vmem:[%s11146_s3 + $0xe8] sm:$0xff]  }
 0x28d   : > { %11237 = vst [vmem:[#allocation85_spill] sm:$0xff] %v9546_v35  ;;  %7575 = vmatpush3.bf16.msra.mxu1 %v8212_v47  ;;  %7434 = vmatprep.mubr.msk.bf16.mxu1 %vm8307_vm1, %v11154_v1 }
 0x28e   : > { %v7168_v43 = vpop.f32.mrf.mxu1  ;;  %v7393_v27 = vpop.f32.mrf.mxu0  ;;  %7576 = vmatprep.subr.bf16.mxu1 %v11154_v1 }
 0x290   : > { %v9556_v63 = vpop.f32.mrf.mxu1  ;;  %v9558_v19 = vpop.f32.mrf.mxu0  ;;  %7659 = vmatmul.mubr.msk.bf16.vlgmr.msra.gmra.mxu0 %vm777_vm3, %v9202_v49  ;;  %v8216_v49 = vld [vmem:[%s11146_s3 + $0xe0] sm:$0xff]  }
 0x291   : > { %11238 = vst [vmem:[#allocation86_spill] sm:$0xff] %v9558_v19  ;;  %7662 = vmatprep.mubr.msk.bf16.mxu0 %vm8307_vm1, %v11154_v1  ;;  %7577 = vmatpush3.bf16.msra.mxu1 %v8214_v26 }
 0x292   : > { %v7169_v47 = vpop.f32.mrf.mxu1  ;;  %v7396_v43 = vpop.f32.mrf.mxu0  ;;  %7578 = vmatprep.subr.bf16.mxu1 %v11154_v1 }
 0x294   : > { %v9568_v27 = vpop.f32.mrf.mxu1  ;;  %v9570_v35 = vpop.f32.mrf.mxu0  ;;  %7435 = vmatmul.mubr.msk.bf16.gmra.mxu1 %vm777_vm3, %v9217_v33 }
 0x295   : > { %11239 = vst [vmem:[#allocation87_spill] sm:$0xff] %v9570_v35  ;;  %7438 = vmatprep.mubr.msk.bf16.mxu1 %vm8307_vm1, %v11154_v1  ;;  %7579 = vmatpush3.bf16.msra.mxu1 %v8215_v29 }
 0x296   : > { %v7172_v26 = vpop.f32.mrf.mxu1  ;;  %v7397_v47 = vpop.f32.mrf.mxu0  ;;  %7580 = vmatprep.subr.bf16.mxu1 %v11154_v1 }
 0x298   : > { %v9580_v43 = vpop.f32.mrf.mxu1  ;;  %v9582_v19 = vpop.f32.mrf.mxu0  ;;  %7663 = vmatmul.mubr.msk.bf16.gmra.mxu0 %vm777_vm3, %v9235_v55 }
 0x299   : > { %11240 = vst [vmem:[#allocation88_spill] sm:$0xff] %v9580_v43  ;;  %11241 = vst [vmem:[#allocation89_spill] sm:$0xff] %v9582_v19  ;;  %7666 = vmatprep.mubr.msk.bf16.mxu0 %vm8307_vm1, %v11154_v1  ;;  %7581 = vmatpush3.bf16.msra.mxu1 %v8216_v49 }
 0x29a   : > { %v7173_v33 = vpop.f32.mrf.mxu1  ;;  %v7400_v29 = vpop.f32.mrf.mxu0  ;;  %7726 = vmatprep.subr.bf16.mxu1 %v11154_v1 }
 0x29c   : > { %v9589_v35 = vpop.f32.mrf.mxu1  ;;  %v9591_v26 = vpop.f32.mrf.mxu0  ;;  %7439 = vmatmul.mubr.msk.bf16.gmra.mxu1 %vm777_vm3, %v9247_v14 }
 0x29d   : > { %11242 = vst [vmem:[#allocation90_spill] sm:$0xff] %v9591_v26  ;;  %7442 = vmatprep.mubr.msk.bf16.mxu1 %vm8307_vm1, %v11154_v1 }
 0x29e   : > { %v7176_v47 = vpop.f32.mrf.mxu1  ;;  %v7401_v55 = vpop.f32.mrf.mxu0 }
 0x2a0   : > { %v9597_v19 = vpop.f32.mrf.mxu1  ;;  %v9599_v43 = vpop.f32.mrf.mxu0  ;;  %7667 = vmatmul.mubr.msk.bf16.gmra.mxu0 %vm777_vm3, %v9260_v21 }
 0x2a1   : > { %11243 = vst [vmem:[#allocation91_spill] sm:$0xff] %v9599_v43  ;;  %7670 = vmatprep.mubr.msk.bf16.mxu0 %vm8307_vm1, %v11154_v1 }
 0x2a2   : > { %v7177_v49 = vpop.f32.mrf.mxu1  ;;  %v7404_v33 = vpop.f32.mrf.mxu0 }
 0x2a4   : > { %v9605_v29 = vpop.f32.mrf.mxu1  ;;  %v9607_v14 = vpop.f32.mrf.mxu0  ;;  %7443 = vmatmul.mubr.msk.bf16.gmra.mxu1 %vm777_vm3, %v9271_v9 }
 0x2a5   : > { %11244 = vst [vmem:[#allocation92_spill] sm:$0xff] %v9607_v14  ;;  %7446 = vmatprep.mubr.msk.bf16.mxu1 %vm8307_vm1, %v11154_v1 }
 0x2a6   : > { %v7180_v47 = vpop.f32.mrf.mxu1  ;;  %v7405_v55 = vpop.f32.mrf.mxu0 }
 0x2a8   : > { %v9613_v43 = vpop.f32.mrf.mxu1  ;;  %v9615_v21 = vpop.f32.mrf.mxu0  ;;  %7671 = vmatmul.mubr.msk.bf16.gmra.mxu0 %vm777_vm3, %v9284_v41 }
 0x2a9   : > { %11245 = vst [vmem:[#allocation93_spill] sm:$0xff] %v9615_v21  ;;  %7674 = vmatprep.mubr.msk.bf16.mxu0 %vm8307_vm1, %v11154_v1 }
 0x2aa   : > { %v7181_v49 = vpop.f32.mrf.mxu1  ;;  %v7408_v33 = vpop.f32.mrf.mxu0 }
 0x2ac   : > { %v9621_v14 = vpop.f32.mrf.mxu1  ;;  %v9623_v9 = vpop.f32.mrf.mxu0  ;;  %7447 = vmatmul.mubr.msk.bf16.gmra.mxu1 %vm777_vm3, %v9295_v23 }
 0x2ad   : > { %11246 = vst [vmem:[#allocation94_spill] sm:$0xff] %v9623_v9  ;;  %7450 = vmatprep.mubr.msk.bf16.mxu1 %vm8307_vm1, %v11154_v1 }
 0x2ae   : > { %v7184_v47 = vpop.f32.mrf.mxu1  ;;  %v7409_v55 = vpop.f32.mrf.mxu0 }
 0x2b0   : > { %v9629_v21 = vpop.f32.mrf.mxu1  ;;  %v9631_v41 = vpop.f32.mrf.mxu0  ;;  %7675 = vmatmul.mubr.msk.bf16.gmra.mxu0 %vm777_vm3, %v9308_v28 }
 0x2b1   : > { %11247 = vst [vmem:[#allocation95_spill] sm:$0xff] %v9631_v41  ;;  %7678 = vmatprep.mubr.msk.bf16.mxu0 %vm8307_vm1, %v11154_v1 }
 0x2b2   : > { %v7185_v49 = vpop.f32.mrf.mxu1  ;;  %v7412_v33 = vpop.f32.mrf.mxu0 }
 0x2b4   : > { %v9637_v9 = vpop.f32.mrf.mxu1  ;;  %v9639_v23 = vpop.f32.mrf.mxu0  ;;  %7451 = vmatmul.mubr.msk.bf16.gmra.mxu1 %vm777_vm3, %v9319_v24 }
 0x2b5   : > { %11248 = vst [vmem:[#allocation96_spill] sm:$0xff] %v9639_v23  ;;  %7454 = vmatprep.mubr.msk.bf16.mxu1 %vm8307_vm1, %v11154_v1 }
 0x2b6   : > { %v7188_v47 = vpop.f32.mrf.mxu1  ;;  %v7413_v55 = vpop.f32.mrf.mxu0 }
 0x2b8   : > { %v9645_v41 = vpop.f32.mrf.mxu1  ;;  %v9647_v28 = vpop.f32.mrf.mxu0  ;;  %7679 = vmatmul.mubr.msk.bf16.gmra.mxu0 %vm777_vm3, %v9332_v13  ;;  %v1265_v13 = vadd.f32 %v9343_v46, %v8975_v22 }
 0x2b9   : > { %11249 = vst [vmem:[#allocation97_spill] sm:$0xff] %v9647_v28  ;;  %7682 = vmatprep.mubr.msk.bf16.mxu0 %vm8307_vm1, %v11154_v1 }
 0x2ba   : > { %v7189_v49 = vpop.f32.mrf.mxu1  ;;  %v7416_v33 = vpop.f32.mrf.mxu0 }
 0x2bc   : > { %v9653_v23 = vpop.f32.mrf.mxu1  ;;  %v9655_v24 = vpop.f32.mrf.mxu0  ;;  %7455 = vmatmul.mubr.msk.bf16.gmra.mxu1 %vm777_vm3, %v9341_v10  ;;  %v1268_v10 = vadd.f32 %v9351_v62, %v8981_v51 }
 0x2bd   : > { %11250 = vst [vmem:[#allocation98_spill] sm:$0xff] %v9655_v24  ;;  %7458 = vmatprep.mubr.msk.bf16.mxu1 %vm8307_vm1, %v11154_v1 }
 0x2be   : > { %v7192_v47 = vpop.f32.mrf.mxu1  ;;  %v7417_v55 = vpop.f32.mrf.mxu0 }
 0x2bf   : > { %v1700_v47 = vadd.f32 %v8983_v61, %v1265_v13  ;;  %v1276_v13 = vadd.f32 %v9372_v32, %v8997_v59 }
 0x2c0   : > { %v1395_v28 = vpop.f32.mrf.mxu1  ;;  %v9663_v26 = vpop.f32.mrf.mxu0  ;;  %7683 = vmatmul.mubr.msk.bf16.gmra.mxu0 %vm777_vm3, %v9349_v48 }
 0x2c1   : > { %7686 = vmatprep.mubr.msk.bf16.mxu0 %vm8307_vm1, %v11154_v1  ;;  %v1273_v28 = vadd.f32 %v9362_v45, %v8989_v56  ;;  %v1703_v59 = vadd.f32 %v9009_v2, %v1276_v13 }
 0x2c2   : > { %v7193_v49 = vpop.f32.mrf.mxu1  ;;  %v7420_v33 = vpop.f32.mrf.mxu0 }
 0x2c3   : > { %v1701_v49 = vadd.f32 %v8993_v11, %v1268_v10  ;;  %v1702_v56 = vadd.f32 %v8999_v60, %v1273_v28 }
 0x2c4   : > { %v1901_v55 = vpop.f32.mrf.mxu1  ;;  %v2367_v24 = vpop.f32.mrf.mxu0  ;;  %7459 = vmatmul.mubr.msk.bf16.gmra.mxu1 %vm777_vm3, %v9360_v0 }
 0x2c5   : > { %v9674_v22 = vadd.f32 %v1901_v55, %v1700_v47  ;;  %7462 = vmatprep.mubr.msk.bf16.mxu1 %vm8307_vm1, %v11154_v1  ;;  %v1281_v47 = vadd.f32 %v9383_v44, %v9005_v25  ;;  %v9714_v44 = vld [vmem:[#allocation2 + $0x118] sm:$0xff] }
 0x2c6   : > { %v7280_v48 = vpop.f32.mrf.mxu1  ;;  %v7421_v46 = vpop.f32.mrf.mxu0 }
 0x2c7   : > { %v1284_v46 = vadd.f32 %v9393_v53, %v9013_v6  ;;  %v1704_v25 = vadd.f32 %v9015_v7, %v1281_v47  ;;  %v3450_v6 = vpack.c.bf16 %v9714_v44, %v9410_v36  ;;  %v1289_v7 = vadd.f32 %v9404_v30, %v9021_v38  ;;  %v9739_v38 = vld [vmem:[#allocation2 + $0x128] sm:$0xff] }
 0x2c8   : > { %v1904_v51 = vpop.f32.mrf.mxu1  ;;  %v9681_v62 = vpop.f32.mrf.mxu0  ;;  %7687 = vmatmul.mubr.msk.bf16.gmra.mxu0 %vm777_vm3, %v9370_v40 }
 0x2c9   : > { %v9685_v61 = vadd.f32 %v1904_v51, %v1701_v49  ;;  %7690 = vmatprep.mubr.msk.bf16.mxu0 %vm8307_vm1, %v11154_v1  ;;  %v1705_v53 = vadd.f32 %v9025_v12, %v1284_v46 }
 0x2ca   : > { %v7281_v0 = vpop.f32.mrf.mxu1  ;;  %v7508_v24 = vpop.f32.mrf.mxu0 }
 0x2cc   : > { %v1909_v45 = vpop.f32.mrf.mxu1  ;;  %7463 = vmatmul.mubr.msk.bf16.gmra.mxu1 %vm777_vm3, %v9381_v54  ;;  %v9694_v11 = vpop.f32.mrf.mxu0 }
 0x2cd   : > { %v9696_v33 = vadd.f32 %v1909_v45, %v1702_v56  ;;  %7466 = vmatprep.mubr.msk.bf16.mxu1 %vm8307_vm1, %v11154_v1  ;;  %v11251_v45 = vld [vmem:[#allocation66_spill] sm:$0xff] }
 0x2ce   : > { %v7284_v40 = vpop.f32.mrf.mxu1  ;;  %v7509_v10 = vpop.f32.mrf.mxu0  ;;  %v1292_v36 = vadd.f32 %v11251_v45, %v9029_v16 }
 0x2cf   : > { %v11252_v40 = vld [vmem:[#allocation8_spill] sm:$0xff] }
 0x2d0   : > { %v1912_v32 = vpop.f32.mrf.mxu1  ;;  %v9703_v60 = vpop.f32.mrf.mxu0  ;;  %7691 = vmatmul.mubr.msk.bf16.gmra.mxu0 %vm777_vm3, %v9391_v31  ;;  %v1706_v10 = vadd.f32 %v11252_v40, %v1289_v7 }
 0x2d1   : > { %v9707_v54 = vadd.f32 %v1912_v32, %v1703_v59  ;;  %7694 = vmatprep.mubr.msk.bf16.mxu0 %vm8307_vm1, %v11154_v1  ;;  %v3428_v59 = vld [vmem:[#allocation2 + $0x120] sm:$0xff] }
 0x2d2   : > { %v7285_v55 = vpop.f32.mrf.mxu1  ;;  %v7512_v48 = vpop.f32.mrf.mxu0  ;;  %v3451_v16 = vpack.c.bf16 %v9739_v38, %v3428_v59 }
 0x2d3   : > { %v11253_v48 = vld [vmem:[#allocation9_spill] sm:$0xff] }
 0x2d4   : > { %v1917_v2 = vpop.f32.mrf.mxu1  ;;  %7467 = vmatmul.mubr.msk.bf16.gmra.mxu1 %vm777_vm3, %v9402_v17  ;;  %v9718_v28 = vpop.f32.mrf.mxu0  ;;  %v1297_v46 = vadd.f32 %v9425_v18, %v11253_v48  ;;  %v9763_v18 = vld [vmem:[#allocation2 + $0x138] sm:$0xff] }
 0x2d5   : > { %v9720_v31 = vadd.f32 %v1917_v2, %v1704_v25  ;;  %7470 = vmatprep.mubr.msk.bf16.mxu1 %vm8307_vm1, %v11154_v1  ;;  %v11254_v25 = vld [vmem:[#allocation10_spill] sm:$0xff] }
 0x2d6   : > { %v7288_v49 = vpop.f32.mrf.mxu1  ;;  %v7513_v51 = vpop.f32.mrf.mxu0  ;;  %v1707_v2 = vadd.f32 %v11254_v25, %v1292_v36  ;;  %v11259_v48 = vld [vmem:[#allocation14_spill] sm:$0xff] }
 0x2d8   : > { %v1920_v0 = vpop.f32.mrf.mxu1  ;;  %v9729_v24 = vpop.f32.mrf.mxu0  ;;  %7695 = vmatmul.mubr.msk.bf16.gmra.mxu0 %vm777_vm3, %v3450_v6 }
 0x2d9   : > { %v9732_v17 = vadd.f32 %v1920_v0, %v1705_v53  ;;  %7698 = vmatprep.mubr.msk.bf16.mxu0 %vm8307_vm1, %v11154_v1  ;;  %v11255_v53 = vld [vmem:[#allocation11_spill] sm:$0xff] }
 0x2da   : > { %v7289_v13 = vpop.f32.mrf.mxu1  ;;  %v7516_v56 = vpop.f32.mrf.mxu0  ;;  %v1300_v0 = vadd.f32 %v9433_v37, %v11255_v53  ;;  %v11262_v53 = vld [vmem:[#allocation71_spill] sm:$0xff] }
 0x2db   : > { %v11256_v13 = vld [vmem:[#allocation12_spill] sm:$0xff] }
 0x2dc   : > { %v1925_v12 = vpop.f32.mrf.mxu1  ;;  %7471 = vmatmul.mubr.msk.bf16.gmra.mxu1 %vm777_vm3, %v9423_v52  ;;  %v9743_v30 = vpop.f32.mrf.mxu0  ;;  %v1708_v56 = vadd.f32 %v11256_v13, %v1297_v46  ;;  %v1709_v46 = vadd.f32 %v11259_v48, %v1300_v0 }
 0x2dd   : > { %v9745_v47 = vadd.f32 %v1925_v12, %v1706_v10  ;;  %7474 = vmatprep.mubr.msk.bf16.mxu1 %vm8307_vm1, %v11154_v1  ;;  %v3430_v10 = vld [vmem:[#allocation2 + $0x130] sm:$0xff] }
 0x2de   : > { %v7292_v32 = vpop.f32.mrf.mxu1  ;;  %v7517_v55 = vpop.f32.mrf.mxu0  ;;  %v3452_v37 = vpack.c.bf16 %v9763_v18, %v3430_v10 }
 0x2df   : > { %v11258_v55 = vld [vmem:[#allocation13_spill] sm:$0xff] }
 0x2e0   : > { %v1928_v49 = vpop.f32.mrf.mxu1  ;;  %v9753_v51 = vpop.f32.mrf.mxu0  ;;  %7699 = vmatmul.mubr.msk.bf16.gmra.mxu0 %vm777_vm3, %v3451_v16  ;;  %v1305_v16 = vadd.f32 %v9443_v58, %v11258_v55 }
 0x2e1   : > { %v9756_v52 = vadd.f32 %v1928_v49, %v1707_v2  ;;  %7702 = vmatprep.mubr.msk.bf16.mxu0 %vm8307_vm1, %v11154_v1 }
 0x2e2   : > { %v7293_v6 = vpop.f32.mrf.mxu1  ;;  %v7520_v7 = vpop.f32.mrf.mxu0 }
 0x2e3   : > { %v11261_v7 = vld [vmem:[#allocation15_spill] sm:$0xff] }
 0x2e4   : > { %v1933_v45 = vpop.f32.mrf.mxu1  ;;  %7475 = vmatmul.mubr.msk.bf16.gmra.mxu1 %vm777_vm3, %v9441_v3  ;;  %v9767_v36 = vpop.f32.mrf.mxu0  ;;  %v1308_v13 = vadd.f32 %v11262_v53, %v11261_v7 }
 0x2e5   : > { %11257 = vst [vmem:[#allocation66_spill] sm:$0xff] %v9767_v36  ;;  %v9769_v40 = vadd.f32 %v1933_v45, %v1708_v56  ;;  %7478 = vmatprep.mubr.msk.bf16.mxu1 %vm8307_vm1, %v11154_v1  ;;  %v11263_v56 = vld [vmem:[#allocation16_spill] sm:$0xff] }
 0x2e6   : > { %v7296_v12 = vpop.f32.mrf.mxu1  ;;  %v7521_v32 = vpop.f32.mrf.mxu0  ;;  %v1710_v45 = vadd.f32 %v11263_v56, %v1305_v16  ;;  %v11268_v16 = vld [vmem:[#allocation18_spill] sm:$0xff] }
 0x2e7   : > { %v11264_v12 = vld [vmem:[#allocation73_spill] sm:$0xff]  ;;  %v1711_v7 = vadd.f32 %v11268_v16, %v1308_v13 }
 0x2e8   : > { %v1936_v25 = vpop.f32.mrf.mxu1  ;;  %v9777_v2 = vpop.f32.mrf.mxu0  ;;  %7703 = vmatmul.mubr.msk.bf16.gmra.mxu0 %vm777_vm3, %v3452_v37  ;;  %v3432_v37 = vld [vmem:[#allocation2 + $0x140] sm:$0xff] }
 0x2e9   : > { %11260 = vst [vmem:[#allocation8_spill] sm:$0xff] %v9777_v2  ;;  %v9780_v3 = vadd.f32 %v1936_v25, %v1709_v46  ;;  %7706 = vmatprep.mubr.msk.bf16.mxu0 %vm8307_vm1, %v11154_v1  ;;  %v3453_v46 = vpack.c.bf16 %v9462_v5, %v3432_v37  ;;  %v11266_v25 = vld [vmem:[#allocation17_spill] sm:$0xff] }
 0x2ea   : > { %v7297_v49 = vpop.f32.mrf.mxu1  ;;  %v7524_v6 = vpop.f32.mrf.mxu0 }
 0x2eb   : > { %v11267_v49 = vld [vmem:[#allocation74_spill] sm:$0xff] }
 0x2ec   : > { %v1941_v58 = vpop.f32.mrf.mxu1  ;;  %7479 = vmatmul.mubr.msk.bf16.gmra.mxu1 %vm777_vm3, %v11264_v12  ;;  %v9789_v0 = vpop.f32.mrf.mxu0  ;;  %v1313_v6 = vadd.f32 %v11267_v49, %v11266_v25  ;;  %v11271_v49 = vld [vmem:[#allocation20_spill] sm:$0xff] }
 0x2ed   : > { %11265 = vst [vmem:[#allocation9_spill] sm:$0xff] %v9789_v0  ;;  %v9791_v32 = vadd.f32 %v1941_v58, %v1710_v45  ;;  %7482 = vmatprep.mubr.msk.bf16.mxu1 %vm8307_vm1, %v11154_v1 }
 0x2ee   : > { %v7300_v55 = vpop.f32.mrf.mxu1  ;;  %v7525_v48 = vpop.f32.mrf.mxu0  ;;  %v1712_v13 = vadd.f32 %v11271_v49, %v1313_v6 }
 0x2ef   : > { %v9807_v55 = vpack.c.bf16 %v3428_v59, %v9714_v44  ;;  %v11270_v48 = vld [vmem:[#allocation19_spill] sm:$0xff]  ;;  %v11273_v44 = vld [vmem:[#allocation21_spill] sm:$0xff] }
 0x2f0   : > { %v1944_v53 = vpop.f32.mrf.mxu1  ;;  %v9799_v56 = vpop.f32.mrf.mxu0  ;;  %7707 = vmatmul.mubr.msk.bf16.gmra.mxu0 %vm777_vm3, %v3453_v46  ;;  %v1316_v25 = vadd.f32 %v9474_v50, %v11270_v48  ;;  %v11274_v59 = vld [vmem:[#allocation77_spill] sm:$0xff] }
 0x2f1   : > { %11269 = vst [vmem:[#allocation10_spill] sm:$0xff] %v9799_v56  ;;  %v9802_v45 = vadd.f32 %v1944_v53, %v1711_v7  ;;  %7710 = vmatprep.mubr.msk.bf16.mxu0 %vm8307_vm1, %v11154_v1  ;;  %v11275_v56 = vld [vmem:[#allocation22_spill] sm:$0xff] }
 0x2f2   : > { %v7301_v58 = vpop.f32.mrf.mxu1  ;;  %v7528_v12 = vpop.f32.mrf.mxu0  ;;  %v1713_v50 = vadd.f32 %v11275_v56, %v1316_v25  ;;  %v11278_v56 = vld [vmem:[#allocation24_spill] sm:$0xff] }
 0x2f3   : > { %v1321_v12 = vadd.f32 %v11274_v59, %v11273_v44 }
 0x2f4   : > { %v1949_v16 = vpop.f32.mrf.mxu1  ;;  %7483 = vmatmul.mubr.msk.bf16.gmra.mxu1 %vm777_vm3, %v9807_v55  ;;  %v9814_v46 = vpop.f32.mrf.mxu0 }
 0x2f5   : > { %11272 = vst [vmem:[#allocation11_spill] sm:$0xff] %v9814_v46  ;;  %v9816_v7 = vadd.f32 %v1949_v16, %v1712_v13  ;;  %7486 = vmatprep.mubr.msk.bf16.mxu1 %vm8307_vm1, %v11154_v1  ;;  %v1714_v25 = vadd.f32 %v11278_v56, %v1321_v12  ;;  %v11304_v46 = vld [vmem:[#allocation40_spill] sm:$0xff] }
 0x2f6   : > { %v7304_v53 = vpop.f32.mrf.mxu1  ;;  %v7529_v58 = vpop.f32.mrf.mxu0 }
 0x2f7   : > { %v9832_v53 = vpack.c.bf16 %v3430_v10, %v9739_v38  ;;  %v11277_v58 = vld [vmem:[#allocation23_spill] sm:$0xff]  ;;  %v11280_v38 = vld [vmem:[#allocation25_spill] sm:$0xff] }
 0x2f8   : > { %v1952_v48 = vpop.f32.mrf.mxu1  ;;  %v9823_v6 = vpop.f32.mrf.mxu0  ;;  %7711 = vmatmul.mubr.msk.bf16.gmra.mxu0 %vm777_vm3, %v9491_v39  ;;  %v1324_v44 = vadd.f32 %v9493_v8, %v11277_v58  ;;  %v1329_v10 = vadd.f32 %v9501_v57, %v11280_v38 }
 0x2f9   : > { %11276 = vst [vmem:[#allocation12_spill] sm:$0xff] %v9823_v6  ;;  %v9827_v49 = vadd.f32 %v1952_v48, %v1713_v50  ;;  %7714 = vmatprep.mubr.msk.bf16.mxu0 %vm8307_vm1, %v11154_v1 }
 0x2fa   : > { %v7305_v13 = vpop.f32.mrf.mxu1  ;;  %v7532_v16 = vpop.f32.mrf.mxu0 }
 0x2fb   : > { %v11281_v16 = vld [vmem:[#allocation26_spill] sm:$0xff] }
 0x2fc   : > { %v1957_v59 = vpop.f32.mrf.mxu1  ;;  %7487 = vmatmul.mubr.msk.bf16.gmra.mxu1 %vm777_vm3, %v9832_v53  ;;  %v9839_v39 = vpop.f32.mrf.mxu0  ;;  %v1715_v8 = vadd.f32 %v11281_v16, %v1324_v44  ;;  %v11284_v44 = vld [vmem:[#allocation28_spill] sm:$0xff]  ;;  %v9862_v16 = vld [vmem:[#allocation2 + $0x178] sm:$0xff] }
 0x2fd   : > { %11279 = vst [vmem:[#allocation13_spill] sm:$0xff] %v9839_v39  ;;  %v9841_v50 = vadd.f32 %v1957_v59, %v1714_v25  ;;  %7490 = vmatprep.mubr.msk.bf16.mxu1 %vm8307_vm1, %v11154_v1  ;;  %v1716_v38 = vadd.f32 %v11284_v44, %v1329_v10 }
 0x2fe   : > { %v7308_v48 = vpop.f32.mrf.mxu1  ;;  %v7533_v13 = vpop.f32.mrf.mxu0 }
 0x2ff   : > { %v9857_v48 = vpack.c.bf16 %v3432_v37, %v9763_v18  ;;  %v11283_v13 = vld [vmem:[#allocation27_spill] sm:$0xff] }
 0x300   : > { %v1960_v58 = vpop.f32.mrf.mxu1  ;;  %v9848_v12 = vpop.f32.mrf.mxu0  ;;  %7715 = vmatmul.mubr.msk.bf16.gmra.mxu0 %vm777_vm3, %v9511_v20  ;;  %v1332_v57 = vadd.f32 %v9513_v42, %v11283_v13  ;;  %v3456_v42 = vpack.c.bf16 %v9862_v16, %v9523_v34  ;;  %v2452_v34 = vpack.c.bf16 %v9462_v5, %v9462_v5  ;;  %v11293_v5 = vld [vmem:[#allocation33_spill] sm:$0xff] }
 0x301   : > { %11282 = vst [vmem:[#allocation14_spill] sm:$0xff] %v9848_v12  ;;  %v9852_v56 = vadd.f32 %v1960_v58, %v1715_v8  ;;  %7718 = vmatprep.mubr.msk.bf16.mxu0 %vm8307_vm1, %v11154_v1  ;;  %v11286_v58 = vld [vmem:[#allocation29_spill] sm:$0xff] }
 0x302   : > { %v7309_v25 = vpop.f32.mrf.mxu1  ;;  %v7536_v59 = vpop.f32.mrf.mxu0  ;;  %v1337_v10 = vadd.f32 %v9525_v4, %v11286_v58  ;;  %v11291_v58 = vld [vmem:[#allocation32_spill] sm:$0xff] }
 0x303   : > { %v11287_v25 = vld [vmem:[#allocation30_spill] sm:$0xff] }
 0x304   : > { %v1965_v12 = vpop.f32.mrf.mxu1  ;;  %7491 = vmatmul.mubr.msk.bf16.gmra.mxu1 %vm777_vm3, %v9857_v48  ;;  %v9866_v20 = vpop.f32.mrf.mxu0  ;;  %v1717_v59 = vadd.f32 %v11287_v25, %v1332_v57  ;;  %v1718_v57 = vadd.f32 %v11291_v58, %v1337_v10  ;;  %v3440_v25 = vld [vmem:[#allocation2 + $0x180] sm:$0xff] }
 0x305   : > { %11285 = vst [vmem:[#allocation15_spill] sm:$0xff] %v9866_v20  ;;  %v9868_v8 = vadd.f32 %v1965_v12, %v1716_v38  ;;  %7494 = vmatprep.mubr.msk.bf16.mxu1 %vm8307_vm1, %v11154_v1  ;;  %v11290_v20 = vld [vmem:[#allocation83_spill] sm:$0xff] }
 0x306   : > { %v7312_v18 = vpop.f32.mrf.mxu1  ;;  %v7537_v37 = vpop.f32.mrf.mxu0  ;;  %v3074_v10 = vld [vmem:[#allocation2 + $0x80] sm:$0xff] }
 0x307   : > { %v11289_v37 = vld [vmem:[#allocation31_spill] sm:$0xff] }
 0x308   : > { %v1968_v13 = vpop.f32.mrf.mxu1  ;;  %v9877_v44 = vpop.f32.mrf.mxu0  ;;  %7719 = vmatmul.mubr.msk.bf16.gmra.mxu0 %vm777_vm3, %v3456_v42  ;;  %v1340_v4 = vadd.f32 %v11290_v20, %v11289_v37  ;;  %v11294_v20 = vld [vmem:[#allocation34_spill] sm:$0xff] }
 0x309   : > { %11288 = vst [vmem:[#allocation71_spill] sm:$0xff] %v9877_v44  ;;  %v9880_v12 = vadd.f32 %v1968_v13, %v1717_v59  ;;  %7722 = vmatprep.mubr.msk.bf16.mxu0 %vm8307_vm1, %v11154_v1  ;;  %v1345_v44 = vadd.f32 %v9544_v15, %v11293_v5  ;;  %v11297_v5 = vld [vmem:[#allocation36_spill] sm:$0xff] }
 0x30a   : > { %v7313_v38 = vpop.f32.mrf.mxu1  ;;  %v7540_v18 = vpop.f32.mrf.mxu0  ;;  %v1719_v37 = vadd.f32 %v11294_v20, %v1340_v4  ;;  %v11296_v4 = vld [vmem:[#allocation35_spill] sm:$0xff] }
 0x30b   : > { %v3457_v18 = vpack.c.bf16 %v3440_v25, %v3440_v25  ;;  %v1720_v20 = vadd.f32 %v11297_v5, %v1345_v44 }
 0x30c   : > { %v1973_v39 = vpop.f32.mrf.mxu1  ;;  %7495 = vmatmul.mubr.msk.bf16.gmra.mxu1 %vm777_vm3, %v2452_v34  ;;  %v9890_v42 = vpop.f32.mrf.mxu0 }
 0x30d   : > { %11292 = vst [vmem:[#allocation16_spill] sm:$0xff] %v9890_v42  ;;  %v9892_v59 = vadd.f32 %v1973_v39, %v1718_v57  ;;  %7582 = vmatprep.mubr.msk.bf16.mxu1 %vm8307_vm1, %v11154_v1  ;;  %v3073_v39 = vld [vmem:[#allocation2 + $0x78] sm:$0xff] }
 0x30e   : > { %v7316_v13 = vpop.f32.mrf.mxu1  ;;  %v7541_v38 = vpop.f32.mrf.mxu0  ;;  %v8217_v57 = vld [vmem:[%s11148_s5 + $0x18] sm:$0xff]  }
 0x30f   : > { %v3106_v13 = vpack.c.bf16 %v3074_v10, %v3073_v39  ;;  %v1348_v38 = vadd.f32 %v9556_v63, %v11296_v4  ;;  %v11299_v10 = vld [vmem:[#allocation37_spill] sm:$0xff]  ;;  %v11300_v39 = vld [vmem:[#allocation38_spill] sm:$0xff] }
 0x310   : > { %v1976_v58 = vpop.f32.mrf.mxu1  ;;  %v9899_v6 = vpop.f32.mrf.mxu0  ;;  %7723 = vmatmul.mubr.msk.bf16.gmra.mxu0 %vm777_vm3, %v3457_v18  ;;  %v1353_v63 = vadd.f32 %v9568_v27, %v11299_v10 }
 0x311   : > { %11295 = vst [vmem:[#allocation73_spill] sm:$0xff] %v9899_v6  ;;  %v9902_v34 = vadd.f32 %v1976_v58, %v1719_v37  ;;  %7770 = vmatprep.mubr.msk.bf16.mxu0 %vm8307_vm1, %v11154_v1  ;;  %v1721_v44 = vadd.f32 %v11300_v39, %v1348_v38  ;;  %v11306_v38 = vmov 0.0  }
 0x312   : > { %v7317_v25 = vpop.f32.mrf.mxu1  ;;  %v7544_v15 = vpop.f32.mrf.mxu0 }
 0x313   : > { %v3076_v15 = vld [vmem:[#allocation2 + $0x90] sm:$0xff] }
 0x314   : > { %v1981_v6 = vpop.f32.mrf.mxu1  ;;  %v9912_v18 = vpop.f32.mrf.mxu0  ;;  %7583 = vmatmul.mubr.msk.bf16.vlgmr.msra.gmra.mxu1 %vm777_vm3, %v3106_v13 }
 0x315   : > { %11298 = vst [vmem:[#allocation17_spill] sm:$0xff] %v9912_v18  ;;  %v9915_v37 = vadd.f32 %v1981_v6, %v1720_v20  ;;  %7586 = vmatprep.mubr.msk.bf16.mxu1 %vm8307_vm1, %v11154_v1  ;;  %7727 = vmatpush3.bf16.msra.mxu1 %v8217_v57  ;;  %v3075_v6 = vld [vmem:[#allocation2 + $0x88] sm:$0xff]  ;;  %v11302_v57 = vld [vmem:[#allocation39_spill] sm:$0xff] }
 0x316   : > { %v7320_v58 = vpop.f32.mrf.mxu1  ;;  %v7545_v25 = vpop.f32.mrf.mxu0  ;;  %7728 = vmatprep.subr.bf16.mxu1 %v11154_v1  ;;  %v3107_v42 = vpack.c.bf16 %v3076_v15, %v3075_v6  ;;  %v1722_v1 = vadd.f32 %v11304_v46, %v1353_v63  ;;  %v11308_v15 = vld [vmem:[#allocation42_spill] sm:$0xff]  ;;  %v3078_v6 = vld [vmem:[#allocation2 + $0xa0] sm:$0xff] }
 0x317   : > { %v11303_v58 = vld [vmem:[#allocation88_spill] sm:$0xff] }
 0x318   : > { %v1984_v4 = vpop.f32.mrf.mxu1  ;;  %v9923_v5 = vpop.f32.mrf.mxu0  ;;  %v1356_v25 = vadd.f32 %v11303_v58, %v11302_v57  ;;  %v3077_v57 = vld [vmem:[#allocation2 + $0x98] sm:$0xff]  ;;  %v11310_v58 = vld [vmem:[#allocation43_spill] sm:$0xff] }
 0x319   : > { %11301 = vst [vmem:[#allocation74_spill] sm:$0xff] %v9923_v5  ;;  %v9925_v13 = vadd.f32 %v1984_v4, %v1721_v44  ;;  %v11307_v44 = vld [vmem:[#allocation41_spill] sm:$0xff] }
 0x31a   : > { %v7321_v20 = vpop.f32.mrf.mxu1  ;;  %v7548_v18 = vpop.f32.mrf.mxu0  ;;  %v1723_v4 = vadd.f32 %v11308_v15, %v1356_v25  ;;  %v11313_v15 = vld [vmem:[#allocation45_spill] sm:$0xff] }
 0x31b   : > { %v1361_v18 = vadd.f32 %v9589_v35, %v11307_v44 }
 0x31c   : > { %v1989_v0 = vpop.f32.mrf.mxu1  ;;  %v9930_v2 = vpop.f32.mrf.mxu0  ;;  %7587 = vmatmul.mubr.msk.bf16.gmra.mxu1 %vm777_vm3, %v3107_v42 }
 0x31d   : > { %11305 = vst [vmem:[#allocation18_spill] sm:$0xff] %v9930_v2  ;;  %v9933_v27 = vadd.f32 %v1989_v0, %v1722_v1  ;;  %7590 = vmatprep.mubr.msk.bf16.mxu1 %vm8307_vm1, %v11306_v38  ;;  %v3108_v0 = vpack.c.bf16 %v3078_v6, %v3077_v57  ;;  %v1364_v2 = vadd.f32 %v9597_v19, %v11310_v58  ;;  %v11314_v6 = vld [vmem:[#allocation46_spill] sm:$0xff]  ;;  %v3080_v19 = vld [vmem:[#allocation2 + $0xb0] sm:$0xff] }
 0x31e   : > { %v7324_v10 = vpop.f32.mrf.mxu1  ;;  %v7549_v39 = vpop.f32.mrf.mxu0 }
 0x31f   : > { %v11311_v10 = vld [vmem:[#allocation44_spill] sm:$0xff] }
 0x320   : > { %v1992_v20 = vpop.f32.mrf.mxu1  ;;  %v9940_v46 = vpop.f32.mrf.mxu0  ;;  %v1724_v39 = vadd.f32 %v11311_v10, %v1361_v18  ;;  %v8218_v10 = vld [vmem:[%s11148_s5 + $0x10] sm:$0xff]  }
 0x321   : > { %11309 = vst [vmem:[#allocation19_spill] sm:$0xff] %v9940_v46  ;;  %v9942_v63 = vadd.f32 %v1992_v20, %v1723_v4  ;;  %v1369_v4 = vadd.f32 %v9605_v29, %v11313_v15  ;;  %v1725_v20 = vadd.f32 %v11314_v6, %v1364_v2  ;;  %v11317_v29 = vld [vmem:[#allocation48_spill] sm:$0xff]  ;;  %7729 = vmatpush3.bf16.msra.mxu1 %v8218_v10 }
 0x322   : > { %v7325_v42 = vpop.f32.mrf.mxu1  ;;  %v7552_v1 = vpop.f32.mrf.mxu0  ;;  %7806 = vmatprep.subr.bf16.mxu1 %v11306_v38 }
 0x323   : > { %v3079_v1 = vld [vmem:[#allocation2 + $0xa8] sm:$0xff] }
 0x324   : > { %v1997_v5 = vpop.f32.mrf.mxu1  ;;  %v9947_v36 = vpop.f32.mrf.mxu0  ;;  %7591 = vmatmul.mubr.msk.bf16.gmra.mxu1 %vm777_vm3, %v3108_v0  ;;  %v3109_v58 = vpack.c.bf16 %v3080_v19, %v3079_v1  ;;  %v11320_v1 = vld [vmem:[#allocation50_spill] sm:$0xff] }
 0x325   : > { %11312 = vst [vmem:[#allocation20_spill] sm:$0xff] %v9947_v36  ;;  %v9950_v35 = vadd.f32 %v1997_v5, %v1724_v39  ;;  %7594 = vmatprep.mubr.msk.bf16.mxu1 %vm8307_vm1, %v11306_v38  ;;  %v11316_v39 = vld [vmem:[#allocation47_spill] sm:$0xff] }
 0x326   : > { %v7328_v25 = vpop.f32.mrf.mxu1  ;;  %v7553_v44 = vpop.f32.mrf.mxu0 }
 0x327   : > { %v1372_v25 = vadd.f32 %v9613_v43, %v11316_v39  ;;  %v1726_v44 = vadd.f32 %v11317_v29, %v1369_v4  ;;  %v11319_v43 = vld [vmem:[#allocation49_spill] sm:$0xff]  ;;  %v3081_v29 = vld [vmem:[#allocation2 + $0xb8] sm:$0xff] }
 0x328   : > { %v2000_v57 = vpop.f32.mrf.mxu1  ;;  %v9957_v18 = vpop.f32.mrf.mxu0  ;;  %v1377_v4 = vadd.f32 %v9621_v14, %v11319_v43 }
 0x329   : > { %11315 = vst [vmem:[#allocation21_spill] sm:$0xff] %v9957_v18  ;;  %v9959_v42 = vadd.f32 %v2000_v57, %v1725_v20  ;;  %v8219_v20 = vld [vmem:[%s11148_s5 + $0x8] sm:$0xff]  }
 0x32a   : > { %v7329_v0 = vpop.f32.mrf.mxu1  ;;  %v7556_v5 = vpop.f32.mrf.mxu0  ;;  %7767 = vmatpush3.bf16.msra.mxu0 %v8219_v20  ;;  %v11323_v18 = vld [vmem:[#allocation52_spill] sm:$0xff] }
 0x32b   : > { %v1727_v0 = vadd.f32 %v11320_v1, %v1372_v25  ;;  %v3082_v5 = vld [vmem:[#allocation2 + $0xc0] sm:$0xff]  ;;  %7768 = vmatprep.subr.bf16.mxu0 %v11306_v38  ;;  %v1728_v14 = vadd.f32 %v11323_v18, %v1377_v4 }
 0x32c   : > { %v2005_v2 = vpop.f32.mrf.mxu1  ;;  %v9967_v15 = vpop.f32.mrf.mxu0  ;;  %7595 = vmatmul.mubr.msk.bf16.gmra.mxu1 %vm777_vm3, %v3109_v58 }
 0x32d   : > { %11318 = vst [vmem:[#allocation77_spill] sm:$0xff] %v9967_v15  ;;  %v9970_v6 = vadd.f32 %v2005_v2, %v1726_v44  ;;  %7598 = vmatprep.mubr.msk.bf16.mxu1 %vm8307_vm1, %v11306_v38 }
 0x32e   : > { %v7332_v19 = vpop.f32.mrf.mxu1  ;;  %v7557_v57 = vpop.f32.mrf.mxu0 }
 0x32f   : > { %v3110_v19 = vpack.c.bf16 %v3082_v5, %v3081_v29  ;;  %v11322_v57 = vld [vmem:[#allocation51_spill] sm:$0xff]  ;;  %v11326_v29 = vld [vmem:[#allocation54_spill] sm:$0xff] }
 0x330   : > { %v2008_v58 = vpop.f32.mrf.mxu1  ;;  %v9981_v39 = vpop.f32.mrf.mxu0  ;;  %v1380_v15 = vadd.f32 %v9629_v21, %v11322_v57  ;;  %v3084_v21 = vld [vmem:[#allocation2 + $0xd0] sm:$0xff]  ;;  %v3083_v57 = vld [vmem:[#allocation2 + $0xc8] sm:$0xff] }
 0x331   : > { %11321 = vst [vmem:[#allocation22_spill] sm:$0xff] %v9981_v39  ;;  %v9984_v10 = vadd.f32 %v2008_v58, %v1727_v0  ;;  %v11325_v58 = vld [vmem:[#allocation53_spill] sm:$0xff] }
 0x332   : > { %v7333_v44 = vpop.f32.mrf.mxu1  ;;  %v7560_v2 = vpop.f32.mrf.mxu0  ;;  %v1385_v5 = vadd.f32 %v9637_v9, %v11325_v58 }
 0x333   : > { %v1729_v44 = vadd.f32 %v11326_v29, %v1380_v15  ;;  %v11331_v29 = vld [vmem:[#allocation57_spill] sm:$0xff] }
 0x334   : > { %v2013_v43 = vpop.f32.mrf.mxu1  ;;  %v9989_v25 = vpop.f32.mrf.mxu0  ;;  %7599 = vmatmul.mubr.msk.bf16.gmra.mxu1 %vm777_vm3, %v3110_v19 }
 0x335   : > { %11324 = vst [vmem:[#allocation23_spill] sm:$0xff] %v9989_v25  ;;  %v9992_v20 = vadd.f32 %v2013_v43, %v1728_v14  ;;  %7602 = vmatprep.mubr.msk.bf16.mxu1 %vm8307_vm1, %v11306_v38  ;;  %v3111_v43 = vpack.c.bf16 %v3084_v21, %v3083_v57  ;;  %v11328_v25 = vld [vmem:[#allocation55_spill] sm:$0xff]  ;;  %v11332_v21 = vld [vmem:[#allocation58_spill] sm:$0xff] }
 0x336   : > { %v7336_v1 = vpop.f32.mrf.mxu1  ;;  %v7561_v0 = vpop.f32.mrf.mxu0  ;;  %v1388_v39 = vadd.f32 %v9645_v41, %v11328_v25  ;;  %v3086_v41 = vld [vmem:[#allocation2 + $0xe0] sm:$0xff] }
 0x337   : > { %v11329_v1 = vld [vmem:[#allocation56_spill] sm:$0xff] }
 0x338   : > { %v2016_v2 = vpop.f32.mrf.mxu1  ;;  %v9999_v18 = vpop.f32.mrf.mxu0  ;;  %v1730_v0 = vadd.f32 %v11329_v1, %v1385_v5  ;;  %v11334_v1 = vld [vmem:[#allocation59_spill] sm:$0xff] }
 0x339   : > { %11327 = vst [vmem:[#allocation24_spill] sm:$0xff] %v9999_v18  ;;  %v10001_v4 = vadd.f32 %v2016_v2, %v1729_v44  ;;  %v1393_v44 = vadd.f32 %v9653_v23, %v11331_v29  ;;  %v1731_v2 = vadd.f32 %v11332_v21, %v1388_v39  ;;  %v3088_v29 = vld [vmem:[#allocation2 + $0xf0] sm:$0xff] }
 0x33a   : > { %v7337_v19 = vpop.f32.mrf.mxu1  ;;  %v7564_v14 = vpop.f32.mrf.mxu0 }
 0x33b   : > { %v3085_v19 = vld [vmem:[#allocation2 + $0xd8] sm:$0xff] }
 0x33c   : > { %v2021_v36 = vpop.f32.mrf.mxu1  ;;  %v10006_v46 = vpop.f32.mrf.mxu0  ;;  %7603 = vmatmul.mubr.msk.bf16.gmra.mxu1 %vm777_vm3, %v3111_v43  ;;  %v3112_v43 = vpack.c.bf16 %v3086_v41, %v3085_v19 }
 0x33d   : > { %11330 = vst [vmem:[#allocation25_spill] sm:$0xff] %v10006_v46  ;;  %v10009_v9 = vadd.f32 %v2021_v36, %v1730_v0  ;;  %7606 = vmatprep.mubr.msk.bf16.mxu1 %vm8307_vm1, %v11306_v38  ;;  %v1732_v0 = vadd.f32 %v11334_v1, %v1393_v44 }
 0x33e   : > { %v7340_v15 = vpop.f32.mrf.mxu1  ;;  %v7565_v58 = vpop.f32.mrf.mxu0 }
 0x340   : > { %v2024_v25 = vpop.f32.mrf.mxu1  ;;  %v10016_v5 = vpop.f32.mrf.mxu0 }
 0x341   : > { %11333 = vst [vmem:[#allocation26_spill] sm:$0xff] %v10016_v5  ;;  %v10018_v57 = vadd.f32 %v2024_v25, %v1731_v2  ;;  %v3087_v25 = vld [vmem:[#allocation2 + $0xe8] sm:$0xff] }
 0x342   : > { %v7341_v14 = vpop.f32.mrf.mxu1  ;;  %v7568_v36 = vpop.f32.mrf.mxu0  ;;  %v3113_v44 = vpack.c.bf16 %v3088_v29, %v3087_v25 }
 0x343   : > { %v11337_v14 = vld [vmem:[#allocation60_spill] sm:$0xff] }
 0x344   : > { %v2029_v46 = vpop.f32.mrf.mxu1  ;;  %v10021_v15 = vpop.f32.mrf.mxu0  ;;  %7607 = vmatmul.mubr.msk.bf16.gmra.mxu1 %vm777_vm3, %v3112_v43  ;;  %v2370_v36 = vadd.f32 %v11337_v14, %v9674_v22  ;;  %v3089_v22 = vld [vmem:[#allocation2 + $0xf8] sm:$0xff] }
 0x345   : > { %11335 = vst [vmem:[#allocation27_spill] sm:$0xff] %v10021_v15  ;;  %v10024_v23 = vadd.f32 %v2029_v46, %v1732_v0  ;;  %7610 = vmatprep.mubr.msk.bf16.mxu1 %vm8307_vm1, %v11306_v38 }
 0x346   : > { %v7344_v39 = vpop.f32.mrf.mxu1  ;;  %v7569_v58 = vpop.f32.mrf.mxu0 }
 0x347   : > { %v11338_v58 = vld [vmem:[#allocation61_spill] sm:$0xff] }
 0x348   : > { %v2032_v21 = vpop.f32.mrf.mxu1  ;;  %v10028_v2 = vpop.f32.mrf.mxu0 }
 0x349   : > { %11336 = vst [vmem:[#allocation28_spill] sm:$0xff] %v10028_v2  ;;  %v2371_v21 = vadd.f32 %v11338_v58, %v9685_v61 }
 0x34a   : > { %v7345_v41 = vpop.f32.mrf.mxu1  ;;  %v7572_v19 = vpop.f32.mrf.mxu0 }
 0x34b   : > { %v3090_v41 = vld [vmem:[#allocation2 + $0x100] sm:$0xff] }
 0x34c   : > { %v2571_v1 = vpop.f32.mrf.mxu1  ;;  %v3037_v43 = vpop.f32.mrf.mxu0  ;;  %7611 = vmatmul.mubr.msk.bf16.gmra.mxu1 %vm777_vm3, %v3113_v44  ;;  %v3114_v44 = vpack.c.bf16 %v3090_v41, %v3089_v22 }
 0x34d   : > { %v10033_v46 = vadd.f32 %v2571_v1, %v2370_v36  ;;  %7614 = vmatprep.mubr.msk.bf16.mxu1 %vm8307_vm1, %v11306_v38  ;;  %v11339_v36 = vld [vmem:[#allocation62_spill] sm:$0xff] }
 0x34e   : > { %v7432_v0 = vpop.f32.mrf.mxu1  ;;  %v7573_v39 = vpop.f32.mrf.mxu0  ;;  %v2372_v1 = vadd.f32 %v11339_v36, %v9696_v33 }
 0x350   : > { %v2574_v19 = vpop.f32.mrf.mxu1  ;;  %v10039_v29 = vpop.f32.mrf.mxu0 }
 0x351   : > { %v10041_v25 = vadd.f32 %v2574_v19, %v2371_v21  ;;  %v11340_v21 = vld [vmem:[#allocation63_spill] sm:$0xff] }
 0x352   : > { %v7433_v14 = vpop.f32.mrf.mxu1  ;;  %v7660_v43 = vpop.f32.mrf.mxu0  ;;  %v2373_v19 = vadd.f32 %v11340_v21, %v9707_v54 }
 0x353   : > { %v3092_v14 = vld [vmem:[#allocation2 + $0x110] sm:$0xff]  ;;  %v3091_v43 = vld [vmem:[#allocation2 + $0x108] sm:$0xff] }
 0x354   : > { %v2579_v2 = vpop.f32.mrf.mxu1  ;;  %7615 = vmatmul.mubr.msk.bf16.gmra.mxu1 %vm777_vm3, %v3114_v44  ;;  %v10046_v0 = vpop.f32.mrf.mxu0  ;;  %v3115_v15 = vpack.c.bf16 %v3092_v14, %v3091_v43 }
 0x355   : > { %v10048_v39 = vadd.f32 %v2579_v2, %v2372_v1  ;;  %7618 = vmatprep.mubr.msk.bf16.mxu1 %vm8307_vm1, %v11306_v38  ;;  %v11341_v2 = vld [vmem:[#allocation64_spill] sm:$0xff] }
 0x356   : > { %v7436_v61 = vpop.f32.mrf.mxu1  ;;  %v7661_v58 = vpop.f32.mrf.mxu0  ;;  %v2374_v1 = vadd.f32 %v11341_v2, %v9720_v31 }
 0x358   : > { %v2582_v41 = vpop.f32.mrf.mxu1  ;;  %v10054_v22 = vpop.f32.mrf.mxu0 }
 0x359   : > { %v10056_v33 = vadd.f32 %v2582_v41, %v2373_v19  ;;  %v11342_v19 = vld [vmem:[#allocation65_spill] sm:$0xff] }
 0x35a   : > { %v7437_v44 = vpop.f32.mrf.mxu1  ;;  %v7664_v36 = vpop.f32.mrf.mxu0  ;;  %v2375_v41 = vadd.f32 %v11342_v19, %v9732_v17  ;;  %v11344_v19 = vld [vmem:[#allocation68_spill] sm:$0xff] }
 0x35c   : > { %v2587_v5 = vpop.f32.mrf.mxu1  ;;  %7619 = vmatmul.mubr.msk.bf16.gmra.mxu1 %vm777_vm3, %v3115_v15  ;;  %v10061_v61 = vpop.f32.mrf.mxu0  ;;  %v11343_v15 = vld [vmem:[#allocation67_spill] sm:$0xff] }
 0x35d   : > { %v10063_v58 = vadd.f32 %v2587_v5, %v2374_v1  ;;  %7622 = vmatprep.mubr.msk.bf16.mxu1 %vm8307_vm1, %v11306_v38  ;;  %v2376_v2 = vadd.f32 %v11343_v15, %v9745_v47  ;;  %v8220_v47 = vld [vmem:[%s11148_s5] sm:$0xff]  }
 0x35e   : > { %v7440_v54 = vpop.f32.mrf.mxu1  ;;  %v7665_v21 = vpop.f32.mrf.mxu0  ;;  %7769 = vmatpush3.bf16.msra.mxu0 %v8220_v47  ;;  %v11347_v47 = vld [vmem:[#allocation70_spill] sm:$0xff] }
 0x35f   : > { %7846 = vmatprep.subr.bf16.mxu0 %v11306_v38 }
 0x360   : > { %v2590_v44 = vpop.f32.mrf.mxu1  ;;  %v10069_v14 = vpop.f32.mrf.mxu0 }
 0x361   : > { %v10071_v43 = vadd.f32 %v2590_v44, %v2375_v41  ;;  %v2377_v41 = vadd.f32 %v11344_v19, %v9756_v52 }
 0x362   : > { %v7441_v31 = vpop.f32.mrf.mxu1  ;;  %v7668_v36 = vpop.f32.mrf.mxu0 }
 0x364   : > { %v2595_v5 = vpop.f32.mrf.mxu1  ;;  %7623 = vmatmul.mubr.msk.bf16.gmra.mxu1 %vm777_vm3, %v9807_v55  ;;  %v10077_v1 = vpop.f32.mrf.mxu0 }
 0x365   : > { %v10079_v54 = vadd.f32 %v2595_v5, %v2376_v2  ;;  %7626 = vmatprep.mubr.msk.bf16.mxu1 %vm8307_vm1, %v11306_v38  ;;  %v11345_v2 = vld [vmem:[#allocation69_spill] sm:$0xff] }
 0x366   : > { %v7444_v17 = vpop.f32.mrf.mxu1  ;;  %v7669_v21 = vpop.f32.mrf.mxu0  ;;  %v2378_v5 = vadd.f32 %v11345_v2, %v9769_v40 }
 0x368   : > { %v2598_v44 = vpop.f32.mrf.mxu1  ;;  %v10088_v31 = vpop.f32.mrf.mxu0 }
 0x369   : > { %v10090_v55 = vadd.f32 %v2598_v44, %v2377_v41  ;;  %v2379_v44 = vadd.f32 %v11347_v47, %v9780_v3  ;;  %v11352_v47 = vld [vmem:[#allocation75_spill] sm:$0xff] }
 0x36a   : > { %v7445_v36 = vpop.f32.mrf.mxu1  ;;  %v7672_v15 = vpop.f32.mrf.mxu0 }
 0x36c   : > { %v2603_v17 = vpop.f32.mrf.mxu1  ;;  %7627 = vmatmul.mubr.msk.bf16.gmra.mxu1 %vm777_vm3, %v9832_v53  ;;  %v10097_v52 = vpop.f32.mrf.mxu0  ;;  %v11349_v53 = vld [vmem:[#allocation72_spill] sm:$0xff] }
 0x36d   : > { %11346 = vst [vmem:[#allocation29_spill] sm:$0xff] %v10097_v52  ;;  %v10099_v21 = vadd.f32 %v2603_v17, %v2378_v5  ;;  %7630 = vmatprep.mubr.msk.bf16.mxu1 %vm8307_vm1, %v11306_v38  ;;  %v2380_v52 = vadd.f32 %v11349_v53, %v9791_v32 }
 0x36e   : > { %v7448_v19 = vpop.f32.mrf.mxu1  ;;  %v7673_v41 = vpop.f32.mrf.mxu0 }
 0x370   : > { %v2606_v36 = vpop.f32.mrf.mxu1  ;;  %v10105_v15 = vpop.f32.mrf.mxu0 }
 0x371   : > { %v10107_v40 = vadd.f32 %v2606_v36, %v2379_v44  ;;  %v2381_v44 = vadd.f32 %v11352_v47, %v9802_v45  ;;  %v3100_v36 = vld [vmem:[#allocation2 + $0x150] sm:$0xff] }
 0x372   : > { %v7449_v2 = vpop.f32.mrf.mxu1  ;;  %v7676_v18 = vpop.f32.mrf.mxu0 }
 0x373   : > { %11348 = vst [vmem:[#allocation30_spill] sm:$0xff] %v10107_v40  ;;  %v3099_v18 = vld [vmem:[#allocation2 + $0x148] sm:$0xff] }
 0x374   : > { %v2611_v5 = vpop.f32.mrf.mxu1  ;;  %7631 = vmatmul.mubr.msk.bf16.gmra.mxu1 %vm777_vm3, %v9857_v48  ;;  %v10113_v17 = vpop.f32.mrf.mxu0 }
 0x375   : > { %11350 = vst [vmem:[#allocation31_spill] sm:$0xff] %v10113_v17  ;;  %v10115_v19 = vadd.f32 %v2611_v5, %v2380_v52  ;;  %7634 = vmatprep.mubr.msk.bf16.mxu1 %vm8307_vm1, %v11306_v38  ;;  %v3119_v17 = vpack.c.bf16 %v3100_v36, %v3099_v18  ;;  %v11353_v52 = vld [vmem:[#allocation76_spill] sm:$0xff]  ;;  %v3102_v18 = vld [vmem:[#allocation2 + $0x160] sm:$0xff] }
 0x376   : > { %v7452_v3 = vpop.f32.mrf.mxu1  ;;  %v7677_v41 = vpop.f32.mrf.mxu0  ;;  %v2382_v5 = vadd.f32 %v11353_v52, %v9816_v7 }
 0x377   : > { %11351 = vst [vmem:[#allocation83_spill] sm:$0xff] %v10115_v19 }
 0x378   : > { %v2614_v2 = vpop.f32.mrf.mxu1  ;;  %v10121_v32 = vpop.f32.mrf.mxu0 }
 0x379   : > { %v10123_v53 = vadd.f32 %v2614_v2, %v2381_v44  ;;  %v11356_v44 = vld [vmem:[#allocation78_spill] sm:$0xff] }
 0x37a   : > { %v7453_v48 = vpop.f32.mrf.mxu1  ;;  %v7680_v40 = vpop.f32.mrf.mxu0  ;;  %v2383_v2 = vadd.f32 %v11356_v44, %v9827_v49 }
 0x37b   : > { %v3101_v40 = vld [vmem:[#allocation2 + $0x158] sm:$0xff] }
 0x37c   : > { %v2619_v19 = vpop.f32.mrf.mxu1  ;;  %7635 = vmatmul.mubr.msk.bf16.gmra.mxu1 %vm777_vm3, %v3119_v17  ;;  %v10128_v3 = vpop.f32.mrf.mxu0 }
 0x37d   : > { %11354 = vst [vmem:[#allocation32_spill] sm:$0xff] %v10128_v3  ;;  %v10130_v41 = vadd.f32 %v2619_v19, %v2382_v5  ;;  %7638 = vmatprep.mubr.msk.bf16.mxu1 %vm8307_vm1, %v11306_v38  ;;  %v3120_v3 = vpack.c.bf16 %v3102_v18, %v3101_v40  ;;  %v11357_v19 = vld [vmem:[#allocation79_spill] sm:$0xff]  ;;  %v3104_v40 = vld [vmem:[#allocation2 + $0x170] sm:$0xff] }
 0x37e   : > { %v7456_v45 = vpop.f32.mrf.mxu1  ;;  %v7681_v47 = vpop.f32.mrf.mxu0  ;;  %v2384_v5 = vadd.f32 %v11357_v19, %v9841_v50 }
 0x37f   : > { %11355 = vst [vmem:[#allocation33_spill] sm:$0xff] %v10130_v41 }
 0x380   : > { %v2622_v36 = vpop.f32.mrf.mxu1  ;;  %v10136_v48 = vpop.f32.mrf.mxu0 }
 0x381   : > { %v10138_v7 = vadd.f32 %v2622_v36, %v2383_v2  ;;  %v11360_v2 = vld [vmem:[#allocation80_spill] sm:$0xff] }
 0x382   : > { %v7457_v17 = vpop.f32.mrf.mxu1  ;;  %v7684_v52 = vpop.f32.mrf.mxu0  ;;  %v2385_v36 = vadd.f32 %v11360_v2, %v9852_v56 }
 0x383   : > { %v3103_v17 = vld [vmem:[#allocation2 + $0x168] sm:$0xff] }
 0x384   : > { %v2627_v41 = vpop.f32.mrf.mxu1  ;;  %7639 = vmatmul.mubr.msk.bf16.gmra.mxu1 %vm777_vm3, %v3120_v3  ;;  %v10143_v45 = vpop.f32.mrf.mxu0 }
 0x385   : > { %11358 = vst [vmem:[#allocation34_spill] sm:$0xff] %v10143_v45  ;;  %v10145_v47 = vadd.f32 %v2627_v41, %v2384_v5  ;;  %7642 = vmatprep.mubr.msk.bf16.mxu1 %vm8307_vm1, %v11306_v38  ;;  %v3121_v45 = vpack.c.bf16 %v3104_v40, %v3103_v17  ;;  %v11361_v41 = vld [vmem:[#allocation81_spill] sm:$0xff] }
 0x386   : > { %v7460_v49 = vpop.f32.mrf.mxu1  ;;  %v7685_v44 = vpop.f32.mrf.mxu0  ;;  %v2386_v5 = vadd.f32 %v11361_v41, %v9868_v8 }
 0x387   : > { %11359 = vst [vmem:[#allocation35_spill] sm:$0xff] %v10145_v47 }
 0x388   : > { %v2630_v18 = vpop.f32.mrf.mxu1  ;;  %v10151_v52 = vpop.f32.mrf.mxu0 }
 0x389   : > { %v10153_v50 = vadd.f32 %v2630_v18, %v2385_v36  ;;  %v11362_v36 = vld [vmem:[#allocation82_spill] sm:$0xff] }
 0x38a   : > { %v7461_v3 = vpop.f32.mrf.mxu1  ;;  %v7688_v19 = vpop.f32.mrf.mxu0  ;;  %v2387_v18 = vadd.f32 %v11362_v36, %v9880_v12 }
 0x38c   : > { %v2635_v47 = vpop.f32.mrf.mxu1  ;;  %7643 = vmatmul.mubr.msk.bf16.gmra.mxu1 %vm777_vm3, %v3121_v45  ;;  %v10158_v49 = vpop.f32.mrf.mxu0  ;;  %v3122_v45 = vpack.c.bf16 %v9862_v16, %v9862_v16 }
 0x38d   : > { %v10160_v44 = vadd.f32 %v2635_v47, %v2386_v5  ;;  %7646 = vmatprep.mubr.msk.bf16.mxu1 %vm8307_vm1, %v11306_v38  ;;  %v11365_v47 = vld [vmem:[#allocation84_spill] sm:$0xff] }
 0x38e   : > { %v7464_v56 = vpop.f32.mrf.mxu1  ;;  %v7689_v2 = vpop.f32.mrf.mxu0  ;;  %v2388_v41 = vadd.f32 %v11365_v47, %v9892_v59 }
 0x390   : > { %v2638_v3 = vpop.f32.mrf.mxu1  ;;  %v10166_v17 = vpop.f32.mrf.mxu0 }
 0x391   : > { %11363 = vst [vmem:[#allocation36_spill] sm:$0xff] %v10166_v17  ;;  %v10168_v40 = vadd.f32 %v2638_v3, %v2387_v18  ;;  %v11368_v18 = vld [vmem:[#allocation85_spill] sm:$0xff] }
 0x392   : > { %v7465_v8 = vpop.f32.mrf.mxu1  ;;  %v7692_v19 = vpop.f32.mrf.mxu0  ;;  %v2389_v3 = vadd.f32 %v11368_v18, %v9902_v34 }
 0x393   : > { %11364 = vst [vmem:[#allocation37_spill] sm:$0xff] %v10168_v40  ;;  %v11372_v40 = vld [vmem:[#allocation87_spill] sm:$0xff] }
 0x394   : > { %v2643_v5 = vpop.f32.mrf.mxu1  ;;  %7647 = vmatmul.mubr.msk.bf16.gmra.mxu1 %vm777_vm3, %v3122_v45  ;;  %v10175_v56 = vpop.f32.mrf.mxu0  ;;  %v11370_v45 = vld [vmem:[#allocation86_spill] sm:$0xff]  ;;  %v2391_v34 = vadd.f32 %v11372_v40, %v9925_v13 }
 0x395   : > { %11366 = vst [vmem:[#allocation38_spill] sm:$0xff] %v10175_v56  ;;  %v10177_v2 = vadd.f32 %v2643_v5, %v2388_v41  ;;  %7730 = vmatprep.mubr.msk.bf16.mxu1 %vm8307_vm1, %v11306_v38  ;;  %v2390_v56 = vadd.f32 %v11370_v45, %v9915_v37 }
 0x396   : > { %v7468_v12 = vpop.f32.mrf.mxu1  ;;  %v7693_v36 = vpop.f32.mrf.mxu0 }
 0x397   : > { %11367 = vst [vmem:[#allocation39_spill] sm:$0xff] %v10177_v2 }
 0x398   : > { %v2646_v8 = vpop.f32.mrf.mxu1  ;;  %v10183_v16 = vpop.f32.mrf.mxu0 }
 0x399   : > { %v10185_v19 = vadd.f32 %v2646_v8, %v2389_v3 }
 0x39a   : > { %v7469_v59 = vpop.f32.mrf.mxu1  ;;  %v7696_v47 = vpop.f32.mrf.mxu0 }
 0x39b   : > { %11369 = vst [vmem:[#allocation88_spill] sm:$0xff] %v10185_v19  ;;  %v11374_v47 = vld [vmem:[#allocation89_spill] sm:$0xff] }
 0x39c   : > { %v2651_v41 = vpop.f32.mrf.mxu1  ;;  %v10189_v5 = vpop.f32.mrf.mxu0  ;;  %v2392_v37 = vadd.f32 %v11374_v47, %v9933_v27 }
 0x39d   : > { %v10191_v2 = vadd.f32 %v2651_v41, %v2390_v56 }
 0x39e   : > { %v7472_v12 = vpop.f32.mrf.mxu1  ;;  %v7697_v36 = vpop.f32.mrf.mxu0 }
 0x39f   : > { %11371 = vst [vmem:[#allocation40_spill] sm:$0xff] %v10191_v2  ;;  %v11376_v36 = vld [vmem:[#allocation90_spill] sm:$0xff] }
 0x3a0   : > { %v2654_v18 = vpop.f32.mrf.mxu1  ;;  %v10195_v17 = vpop.f32.mrf.mxu0  ;;  %v2393_v13 = vadd.f32 %v11376_v36, %v9942_v63 }
 0x3a1   : > { %v10197_v3 = vadd.f32 %v2654_v18, %v2391_v34 }
 0x3a2   : > { %v7473_v8 = vpop.f32.mrf.mxu1  ;;  %v7700_v59 = vpop.f32.mrf.mxu0 }
 0x3a3   : > { %11373 = vst [vmem:[#allocation41_spill] sm:$0xff] %v10197_v3  ;;  %v11378_v59 = vld [vmem:[#allocation91_spill] sm:$0xff] }
 0x3a4   : > { %v2659_v45 = vpop.f32.mrf.mxu1  ;;  %v10201_v19 = vpop.f32.mrf.mxu0  ;;  %v2394_v27 = vadd.f32 %v11378_v59, %v9950_v35 }
 0x3a5   : > { %v10203_v56 = vadd.f32 %v2659_v45, %v2392_v37 }
 0x3a6   : > { %v7476_v41 = vpop.f32.mrf.mxu1  ;;  %v7701_v12 = vpop.f32.mrf.mxu0 }
 0x3a7   : > { %11375 = vst [vmem:[#allocation42_spill] sm:$0xff] %v10203_v56  ;;  %v11380_v12 = vld [vmem:[#allocation92_spill] sm:$0xff] }
 0x3a8   : > { %v2662_v40 = vpop.f32.mrf.mxu1  ;;  %v10207_v2 = vpop.f32.mrf.mxu0  ;;  %v2395_v63 = vadd.f32 %v11380_v12, %v9959_v42 }
 0x3a9   : > { %v10209_v34 = vadd.f32 %v2662_v40, %v2393_v13 }
 0x3aa   : > { %v7477_v18 = vpop.f32.mrf.mxu1  ;;  %v7704_v8 = vpop.f32.mrf.mxu0 }
 0x3ab   : > { %11377 = vst [vmem:[#allocation43_spill] sm:$0xff] %v10209_v34  ;;  %v11382_v8 = vld [vmem:[#allocation93_spill] sm:$0xff] }
 0x3ac   : > { %v2667_v47 = vpop.f32.mrf.mxu1  ;;  %v10213_v3 = vpop.f32.mrf.mxu0  ;;  %v2396_v35 = vadd.f32 %v11382_v8, %v9970_v6 }
 0x3ad   : > { %v10215_v37 = vadd.f32 %v2667_v47, %v2394_v27 }
 0x3ae   : > { %v7480_v45 = vpop.f32.mrf.mxu1  ;;  %v7705_v41 = vpop.f32.mrf.mxu0 }
 0x3af   : > { %11379 = vst [vmem:[#allocation44_spill] sm:$0xff] %v10215_v37  ;;  %v11384_v41 = vld [vmem:[#allocation94_spill] sm:$0xff] }
 0x3b0   : > { %v2670_v36 = vpop.f32.mrf.mxu1  ;;  %v10219_v56 = vpop.f32.mrf.mxu0  ;;  %v2397_v42 = vadd.f32 %v11384_v41, %v9984_v10 }
 0x3b1   : > { %v10221_v13 = vadd.f32 %v2670_v36, %v2395_v63 }
 0x3b2   : > { %v7481_v40 = vpop.f32.mrf.mxu1  ;;  %v7708_v18 = vpop.f32.mrf.mxu0 }
 0x3b3   : > { %11381 = vst [vmem:[#allocation45_spill] sm:$0xff] %v10221_v13  ;;  %v11386_v18 = vld [vmem:[#allocation95_spill] sm:$0xff] }
 0x3b4   : > { %v2675_v59 = vpop.f32.mrf.mxu1  ;;  %v10225_v34 = vpop.f32.mrf.mxu0  ;;  %v2398_v6 = vadd.f32 %v11386_v18, %v9992_v20 }
 0x3b5   : > { %v10227_v27 = vadd.f32 %v2675_v59, %v2396_v35 }
 0x3b6   : > { %v7484_v47 = vpop.f32.mrf.mxu1  ;;  %v7709_v45 = vpop.f32.mrf.mxu0 }
 0x3b7   : > { %11383 = vst [vmem:[#allocation46_spill] sm:$0xff] %v10227_v27  ;;  %v11388_v45 = vld [vmem:[#allocation96_spill] sm:$0xff] }
 0x3b8   : > { %v2678_v12 = vpop.f32.mrf.mxu1  ;;  %v10231_v37 = vpop.f32.mrf.mxu0  ;;  %v2399_v10 = vadd.f32 %v11388_v45, %v10001_v4 }
 0x3b9   : > { %v10233_v63 = vadd.f32 %v2678_v12, %v2397_v42 }
 0x3ba   : > { %v7485_v36 = vpop.f32.mrf.mxu1  ;;  %v7712_v40 = vpop.f32.mrf.mxu0 }
 0x3bb   : > { %11385 = vst [vmem:[#allocation47_spill] sm:$0xff] %v10233_v63  ;;  %v11389_v40 = vld [vmem:[#allocation97_spill] sm:$0xff] }
 0x3bc   : > { %v2683_v8 = vpop.f32.mrf.mxu1  ;;  %v10237_v13 = vpop.f32.mrf.mxu0  ;;  %v2400_v20 = vadd.f32 %v11389_v40, %v10009_v9  ;;  %v2402_v9 = vadd.f32 %v9663_v26, %v10024_v23  ;;  %v10272_v26 = vld [vmem:[%s11147_s4] ss:$0 sm:$0xff] }
 0x3bd   : > { %v10239_v35 = vadd.f32 %v2683_v8, %v2398_v6 }
 0x3be   : > { %v7488_v59 = vpop.f32.mrf.mxu1  ;;  %v7713_v47 = vpop.f32.mrf.mxu0 }
 0x3bf   : > { %11387 = vst [vmem:[#allocation48_spill] sm:$0xff] %v10239_v35  ;;  %v11391_v47 = vld [vmem:[#allocation98_spill] sm:$0xff] }
 0x3c0   : > { %v2686_v41 = vpop.f32.mrf.mxu1  ;;  %v10243_v27 = vpop.f32.mrf.mxu0  ;;  %v2401_v4 = vadd.f32 %v11391_v47, %v10018_v57 }
 0x3c1   : > { %v10245_v42 = vadd.f32 %v2686_v41, %v2399_v10 }
 0x3c2   : > { %v7489_v12 = vpop.f32.mrf.mxu1  ;;  %v7716_v36 = vpop.f32.mrf.mxu0 }
 0x3c4   : > { %v2691_v18 = vpop.f32.mrf.mxu1  ;;  %v10249_v63 = vpop.f32.mrf.mxu0 }
 0x3c5   : > { %v10251_v6 = vadd.f32 %v2691_v18, %v2400_v20 }
 0x3c6   : > { %v7492_v8 = vpop.f32.mrf.mxu1  ;;  %v7717_v59 = vpop.f32.mrf.mxu0 }
 0x3c7   : > { %11390 = vst [vmem:[#allocation49_spill] sm:$0xff] %v10251_v6 }
 0x3c8   : > { %v2694_v45 = vpop.f32.mrf.mxu1  ;;  %v10255_v35 = vpop.f32.mrf.mxu0 }
 0x3c9   : > { %v10257_v10 = vadd.f32 %v2694_v45, %v2401_v4  ;;  %v3040_v4 = vadd.f32 %v9681_v62, %v10033_v46 }
 0x3ca   : > { %v7493_v41 = vpop.f32.mrf.mxu1  ;;  %v7720_v12 = vpop.f32.mrf.mxu0 }
 0x3cc   : > { %v2699_v36 = vpop.f32.mrf.mxu1  ;;  %v10261_v40 = vpop.f32.mrf.mxu0 }
 0x3cd   : > { %v10263_v20 = vadd.f32 %v2699_v36, %v2402_v9 }
 0x3ce   : > { %v7496_v18 = vpop.f32.mrf.mxu1  ;;  %v7721_v8 = vpop.f32.mrf.mxu0 }
 0x3cf   : > { %v3041_v18 = vadd.f32 %v9694_v11, %v10041_v25 }
 0x3d0   : > { %v2702_v59 = vpop.f32.mrf.mxu1  ;;  %v10265_v6 = vpop.f32.mrf.mxu0 }
 0x3d2   : > { %v7497_v57 = vpop.f32.mrf.mxu1  ;;  %v7724_v47 = vpop.f32.mrf.mxu0 }
 0x3d4   : > { %v3241_v45 = vpop.f32.mrf.mxu1  ;;  %v3707_v41 = vpop.f32.mrf.mxu0 }
 0x3d5   : > { %v3375_v12 = vadd.f32 %v3241_v45, %v3040_v4  ;;  %v3042_v4 = vadd.f32 %v9703_v60, %v10048_v39 }
 0x3d6   : > { %v7584_v23 = vpop.f32.mrf.mxu1  ;;  %v7725_v9 = vpop.f32.mrf.mxu0 }
 0x3d7   : > { %v3710_v36 = vadd.f32 %v10039_v29, %v3375_v12  ;;  %v3043_v23 = vadd.f32 %v9718_v28, %v10056_v33 }
 0x3d8   : > { %v3244_v8 = vpop.f32.mrf.mxu1 }
 0x3d9   : > { %v3750_v59 = vadd.f32 %v10272_v26, %v3710_v36  ;;  %v3376_v57 = vadd.f32 %v3244_v8, %v3041_v18  ;;  %v3044_v8 = vadd.f32 %v9729_v24, %v10063_v58  ;;  %v8223_v24 = vld [vmem:[%s11148_s5 + $0x38] sm:$0xff]  }
 0x3da   : > { %v7585_v62 = vpop.f32.mrf.mxu1 }
 0x3db   : > { %v3783_v46 = vmax.f32 %v3750_v59, 0.0  ;;  %v3711_v47 = vadd.f32 %v10046_v0, %v3376_v57 }
 0x3dc   : > { %v3249_v45 = vpop.f32.mrf.mxu1 }
 0x3dd   : > { %3817 = vst.msk [vmem:[#allocation3] sm:$0xff] %vm3816_vm4, %v3783_v46  ;;  %v3751_v29 = vadd.f32 %v10272_v26, %v3711_v47  ;;  %v3377_v41 = vadd.f32 %v3249_v45, %v3042_v4  ;;  %v3045_v46 = vadd.f32 %v9743_v30, %v10071_v43  ;;  %v3046_v30 = vadd.f32 %v9753_v51, %v10079_v54  ;;  %v8224_v51 = vld [vmem:[%s11148_s5 + $0x30] sm:$0xff]  }
 0x3de   : > { %v7588_v12 = vpop.f32.mrf.mxu1 }
 0x3df   : > { %v3784_v11 = vmax.f32 %v3751_v29, 0.0  ;;  %v3712_v25 = vadd.f32 %v10054_v22, %v3377_v41 }
 0x3e0   : > { %v3252_v9 = vpop.f32.mrf.mxu1 }
 0x3e1   : > { %3818 = vst.msk [vmem:[#allocation3 + $0x8] sm:$0xff] %vm3816_vm4, %v3784_v11  ;;  %v3752_v0 = vadd.f32 %v10272_v26, %v3712_v25  ;;  %v3378_v36 = vadd.f32 %v3252_v9, %v3043_v23  ;;  %v8221_v25 = vld [vmem:[%s11148_s5 + $0x28] sm:$0xff]  }
 0x3e2   : > { %v7589_v60 = vpop.f32.mrf.mxu1 }
 0x3e3   : > { %v3785_v39 = vmax.f32 %v3752_v0, 0.0  ;;  %v3713_v18 = vadd.f32 %v10061_v61, %v3378_v36  ;;  %v11392_v60 = vld [vmem:[#allocation66_spill] sm:$0xff] }
 0x3e4   : > { %v3257_v59 = vpop.f32.mrf.mxu1  ;;  %v3850_v4 = vld [vmem:[#allocation3] sm:$0xff] }
 0x3e5   : > { %3819 = vst.msk [vmem:[#allocation3 + $0x10] sm:$0xff] %vm3816_vm4, %v3785_v39  ;;  %v3753_v22 = vadd.f32 %v10272_v26, %v3713_v18  ;;  %v3379_v57 = vadd.f32 %v3257_v59, %v3044_v8  ;;  %v3047_v39 = vadd.f32 %v11392_v60, %v10090_v55  ;;  %v8222_v59 = vld [vmem:[%s11148_s5 + $0x20] sm:$0xff]  }
 0x3e6   : > { %v7592_v28 = vpop.f32.mrf.mxu1 }
 0x3e7   : > { %v3786_v33 = vmax.f32 %v3753_v22, 0.0  ;;  %v3714_v62 = vadd.f32 %v10069_v14, %v3379_v57 }
 0x3e8   : > { %v3260_v47 = vpop.f32.mrf.mxu1  ;;  %v3851_v45 = vld [vmem:[#allocation3 + $0x8] sm:$0xff] }
 0x3e9   : > { %3820 = vst.msk [vmem:[#allocation3 + $0x18] sm:$0xff] %vm3816_vm4, %v3786_v33  ;;  %v3754_v61 = vadd.f32 %v10272_v26, %v3714_v62  ;;  %v3380_v58 = vadd.f32 %v3260_v47, %v3045_v46  ;;  %v3867_v29 = vpack.c.bf16 %v3851_v45, %v3850_v4  ;;  %v11393_v33 = vld [vmem:[#allocation29_spill] sm:$0xff]  ;;  %v11394_v46 = vld [vmem:[#allocation8_spill] sm:$0xff] }
 0x3ea   : > { %v7593_v41 = vpop.f32.mrf.mxu1  ;;  %v3048_v47 = vadd.f32 %v11394_v46, %v10099_v21  ;;  %v11395_v21 = vld [vmem:[#allocation30_spill] sm:$0xff] }
 0x3eb   : > { %v3787_v12 = vmax.f32 %v3754_v61, 0.0  ;;  %v3715_v14 = vadd.f32 %v10077_v1, %v3380_v58  ;;  %7771 = vmatmul.mubr.msk.bf16.vlgmr.msra.gmra.mxu0 %vm3816_vm4, %v3867_v29 }
 0x3ec   : > { %v3265_v43 = vpop.f32.mrf.mxu1  ;;  %v3852_v11 = vld [vmem:[#allocation3 + $0x10] sm:$0xff]  ;;  %7774 = vmatprep.mubr.msk.bf16.mxu0 %vm8307_vm1, %v11306_v38  ;;  %7847 = vmatpush3.bf16.msra.mxu0 %v8223_v24 }
 0x3ed   : > { %3821 = vst.msk [vmem:[#allocation3 + $0x20] sm:$0xff] %vm3816_vm4, %v3787_v12  ;;  %v3755_v23 = vadd.f32 %v10272_v26, %v3715_v14  ;;  %v3381_v1 = vadd.f32 %v3265_v43, %v3046_v30  ;;  %v3881_v9 = vpack.c.bf16 %v3852_v11, %v3851_v45  ;;  %7848 = vmatprep.subr.bf16.mxu0 %v11306_v38  ;;  %v11396_v14 = vld [vmem:[#allocation9_spill] sm:$0xff] }
 0x3ee   : > { %v7596_v54 = vpop.f32.mrf.mxu1  ;;  %v3049_v30 = vadd.f32 %v11396_v14, %v11395_v21 }
 0x3ef   : > { %v3788_v0 = vmax.f32 %v3755_v23, 0.0  ;;  %v3716_v36 = vadd.f32 %v10088_v31, %v3381_v1  ;;  %7731 = vmatmul.mubr.msk.bf16.vlgmr.msra.gmra.mxu1 %vm3816_vm4, %v3881_v9 }
 0x3f0   : > { %7807 = vmatpush3.bf16.msra.mxu1 %v8221_v25  ;;  %v3268_v18 = vpop.f32.mrf.mxu1  ;;  %v3853_v8 = vld [vmem:[#allocation3 + $0x18] sm:$0xff]  ;;  %7734 = vmatprep.mubr.msk.bf16.mxu1 %vm8307_vm1, %v11306_v38 }
 0x3f1   : > { %3822 = vst.msk [vmem:[#allocation3 + $0x28] sm:$0xff] %vm3816_vm4, %v3788_v0  ;;  %v3756_v22 = vadd.f32 %v10272_v26, %v3716_v36  ;;  %v3382_v31 = vadd.f32 %v3268_v18, %v3047_v39  ;;  %v10327_v57 = vpack.c.bf16 %v3853_v8, %v3852_v11  ;;  %7808 = vmatprep.subr.bf16.mxu1 %v11306_v38  ;;  %v11398_v0 = vld [vmem:[#allocation83_spill] sm:$0xff]  ;;  %v11399_v36 = vld [vmem:[#allocation10_spill] sm:$0xff] }
 0x3f2   : > { %7849 = vmatpush3.bf16.msra.mxu0 %v8224_v51  ;;  %v7597_v55 = vpop.f32.mrf.mxu1  ;;  %v3050_v60 = vadd.f32 %v11399_v36, %v11398_v0 }
 0x3f3   : > { %7926 = vmatprep.subr.bf16.mxu0 %v11306_v38  ;;  %v3789_v28 = vmax.f32 %v3756_v22, 0.0  ;;  %v3717_v62 = vadd.f32 %v11393_v33, %v3382_v31  ;;  %7775 = vmatmul.mubr.msk.bf16.gmra.mxu0 %vm3816_vm4, %v10327_v57  ;;  %v11400_v33 = vld [vmem:[#allocation11_spill] sm:$0xff] }
 0x3f4   : > { %v3273_v4 = vpop.f32.mrf.mxu1  ;;  %v3854_v45 = vld [vmem:[#allocation3 + $0x20] sm:$0xff]  ;;  %7778 = vmatprep.mubr.msk.bf16.mxu0 %vm8307_vm1, %v11306_v38  ;;  %7809 = vmatpush3.bf16.msra.mxu1 %v8222_v59 }
 0x3f5   : > { %3823 = vst.msk [vmem:[#allocation3 + $0x30] sm:$0xff] %vm3816_vm4, %v3789_v28  ;;  %v3757_v24 = vadd.f32 %v10272_v26, %v3717_v62  ;;  %v3383_v61 = vadd.f32 %v3273_v4, %v3048_v47  ;;  %v3882_v58 = vpack.c.bf16 %v3854_v45, %v3853_v8  ;;  %7886 = vmatprep.subr.bf16.mxu1 %v11306_v38 }
 0x3f6   : > { %v7600_v29 = vpop.f32.mrf.mxu1  ;;  %v3051_v62 = vadd.f32 %v11400_v33, %v10123_v53  ;;  %v11402_v53 = vld [vmem:[#allocation33_spill] sm:$0xff] }
 0x3f7   : > { %v3790_v41 = vmax.f32 %v3757_v24, 0.0  ;;  %v3718_v12 = vadd.f32 %v10105_v15, %v3383_v61  ;;  %7735 = vmatmul.mubr.msk.bf16.gmra.mxu1 %vm3816_vm4, %v3882_v58  ;;  %v11397_v15 = vld [vmem:[#allocation31_spill] sm:$0xff] }
 0x3f8   : > { %v3276_v43 = vpop.f32.mrf.mxu1  ;;  %v3855_v11 = vld [vmem:[#allocation3 + $0x28] sm:$0xff]  ;;  %7738 = vmatprep.mubr.msk.bf16.mxu1 %vm8307_vm1, %v11306_v38 }
 0x3f9   : > { %3824 = vst.msk [vmem:[#allocation3 + $0x38] sm:$0xff] %vm3816_vm4, %v3790_v41  ;;  %v3758_v25 = vadd.f32 %v10272_v26, %v3718_v12  ;;  %v3384_v23 = vadd.f32 %v3276_v43, %v3049_v30  ;;  %v10349_v1 = vpack.c.bf16 %v3855_v11, %v3854_v45  ;;  %v11403_v41 = vld [vmem:[#allocation12_spill] sm:$0xff] }
 0x3fa   : > { %v7601_v9 = vpop.f32.mrf.mxu1  ;;  %v3052_v12 = vadd.f32 %v11403_v41, %v11402_v53 }
 0x3fb   : > { %v3791_v51 = vmax.f32 %v3758_v25, 0.0  ;;  %v3719_v54 = vadd.f32 %v11397_v15, %v3384_v23  ;;  %7779 = vmatmul.mubr.msk.bf16.gmra.mxu0 %vm3816_vm4, %v10349_v1 }
 0x3fc   : > { %v3281_v39 = vpop.f32.mrf.mxu1  ;;  %v3856_v18 = vld [vmem:[#allocation3 + $0x30] sm:$0xff]  ;;  %7782 = vmatprep.mubr.msk.bf16.mxu0 %vm8307_vm1, %v11306_v38 }
 0x3fd   : > { %3825 = vst.msk [vmem:[#allocation3 + $0x40] sm:$0xff] %vm3816_vm4, %v3791_v51  ;;  %v3759_v8 = vadd.f32 %v10272_v26, %v3719_v54  ;;  %v3385_v59 = vadd.f32 %v3281_v39, %v3050_v60  ;;  %v3883_v22 = vpack.c.bf16 %v3856_v18, %v3855_v11  ;;  %v11404_v51 = vld [vmem:[#allocation13_spill] sm:$0xff] }
 0x3fe   : > { %v7604_v31 = vpop.f32.mrf.mxu1  ;;  %v3053_v15 = vadd.f32 %v11404_v51, %v10138_v7  ;;  %v11406_v7 = vld [vmem:[#allocation35_spill] sm:$0xff] }
 0x3ff   : > { %v3792_v55 = vmax.f32 %v3759_v8, 0.0  ;;  %v3720_v28 = vadd.f32 %v10121_v32, %v3385_v59  ;;  %7739 = vmatmul.mubr.msk.bf16.gmra.mxu1 %vm3816_vm4, %v3883_v22  ;;  %v11401_v32 = vld [vmem:[#allocation32_spill] sm:$0xff]  ;;  %v11405_v8 = vld [vmem:[#allocation34_spill] sm:$0xff] }
 0x400   : > { %v3284_v46 = vpop.f32.mrf.mxu1  ;;  %v3857_v47 = vld [vmem:[#allocation3 + $0x38] sm:$0xff]  ;;  %7742 = vmatprep.mubr.msk.bf16.mxu1 %vm8307_vm1, %v11306_v38  ;;  %v11407_v22 = vld [vmem:[#allocation14_spill] sm:$0xff] }
 0x401   : > { %3826 = vst.msk [vmem:[#allocation3 + $0x48] sm:$0xff] %vm3816_vm4, %v3792_v55  ;;  %v3760_v4 = vadd.f32 %v10272_v26, %v3720_v28  ;;  %v3386_v45 = vadd.f32 %v3284_v46, %v3051_v62  ;;  %v10368_v24 = vpack.c.bf16 %v3857_v47, %v3856_v18  ;;  %v3054_v31 = vadd.f32 %v11407_v22, %v11406_v7 }
 0x402   : > { %v7605_v61 = vpop.f32.mrf.mxu1 }
 0x403   : > { %v3793_v58 = vmax.f32 %v3760_v4, 0.0  ;;  %v3721_v29 = vadd.f32 %v11401_v32, %v3386_v45  ;;  %7783 = vmatmul.mubr.msk.bf16.gmra.mxu0 %vm3816_vm4, %v10368_v24  ;;  %v11408_v61 = vld [vmem:[#allocation15_spill] sm:$0xff] }
 0x404   : > { %v3289_v21 = vpop.f32.mrf.mxu1  ;;  %v3858_v14 = vld [vmem:[#allocation3 + $0x40] sm:$0xff]  ;;  %7786 = vmatprep.mubr.msk.bf16.mxu0 %vm8307_vm1, %v11306_v38 }
 0x405   : > { %3827 = vst.msk [vmem:[#allocation3 + $0x50] sm:$0xff] %vm3816_vm4, %v3793_v58  ;;  %v3761_v30 = vadd.f32 %v10272_v26, %v3721_v29  ;;  %v3387_v43 = vadd.f32 %v3289_v21, %v3052_v12  ;;  %v10379_v11 = vpack.c.bf16 %v3858_v14, %v3857_v47  ;;  %v3055_v58 = vadd.f32 %v11408_v61, %v10153_v50  ;;  %v11409_v50 = vld [vmem:[#allocation71_spill] sm:$0xff] }
 0x406   : > { %v7608_v25 = vpop.f32.mrf.mxu1 }
 0x407   : > { %v3794_v23 = vmax.f32 %v3761_v30, 0.0  ;;  %v3722_v9 = vadd.f32 %v10136_v48, %v3387_v43  ;;  %7743 = vmatmul.mubr.msk.bf16.gmra.mxu1 %vm3816_vm4, %v10379_v11  ;;  %v3056_v30 = vadd.f32 %v11409_v50, %v10160_v44  ;;  %v11411_v44 = vld [vmem:[#allocation37_spill] sm:$0xff] }
 0x408   : > { %v3292_v54 = vpop.f32.mrf.mxu1  ;;  %v3859_v0 = vld [vmem:[#allocation3 + $0x48] sm:$0xff]  ;;  %7746 = vmatprep.mubr.msk.bf16.mxu1 %vm8307_vm1, %v11306_v38 }
 0x409   : > { %3828 = vst.msk [vmem:[#allocation3 + $0x58] sm:$0xff] %vm3816_vm4, %v3794_v23  ;;  %v3762_v36 = vadd.f32 %v10272_v26, %v3722_v9  ;;  %v3388_v60 = vadd.f32 %v3292_v54, %v3053_v15  ;;  %v10390_v39 = vpack.c.bf16 %v3859_v0, %v3858_v14  ;;  %v11410_v54 = vld [vmem:[#allocation36_spill] sm:$0xff] }
 0x40a   : > { %v7609_v18 = vpop.f32.mrf.mxu1 }
 0x40b   : > { %v3795_v48 = vmax.f32 %v3762_v36, 0.0  ;;  %v3723_v59 = vadd.f32 %v11405_v8, %v3388_v60  ;;  %7787 = vmatmul.mubr.msk.bf16.gmra.mxu0 %vm3816_vm4, %v10390_v39  ;;  %v11412_v36 = vld [vmem:[#allocation16_spill] sm:$0xff] }
 0x40c   : > { %v3297_v55 = vpop.f32.mrf.mxu1  ;;  %v3860_v28 = vld [vmem:[#allocation3 + $0x50] sm:$0xff]  ;;  %7790 = vmatprep.mubr.msk.bf16.mxu0 %vm8307_vm1, %v11306_v38  ;;  %v3057_v60 = vadd.f32 %v11412_v36, %v11411_v44 }
 0x40d   : > { %3829 = vst.msk [vmem:[#allocation3 + $0x60] sm:$0xff] %vm3816_vm4, %v3795_v48  ;;  %v3763_v33 = vadd.f32 %v10272_v26, %v3723_v59  ;;  %v3389_v62 = vadd.f32 %v3297_v55, %v3054_v31  ;;  %v10401_v46 = vpack.c.bf16 %v3860_v28, %v3859_v0  ;;  %v11413_v55 = vld [vmem:[#allocation38_spill] sm:$0xff] }
 0x40e   : > { %v7612_v47 = vpop.f32.mrf.mxu1 }
 0x40f   : > { %v3796_v4 = vmax.f32 %v3763_v33, 0.0  ;;  %v3724_v45 = vadd.f32 %v10151_v52, %v3389_v62  ;;  %7747 = vmatmul.mubr.msk.bf16.gmra.mxu1 %vm3816_vm4, %v10401_v46  ;;  %v11414_v33 = vld [vmem:[#allocation39_spill] sm:$0xff]  ;;  %v11415_v62 = vld [vmem:[#allocation73_spill] sm:$0xff] }
 0x410   : > { %v3300_v32 = vpop.f32.mrf.mxu1  ;;  %v3861_v29 = vld [vmem:[#allocation3 + $0x58] sm:$0xff]  ;;  %7750 = vmatprep.mubr.msk.bf16.mxu1 %vm8307_vm1, %v11306_v38  ;;  %v3058_v47 = vadd.f32 %v11415_v62, %v11414_v33 }
 0x411   : > { %3830 = vst.msk [vmem:[#allocation3 + $0x68] sm:$0xff] %vm3816_vm4, %v3796_v4  ;;  %v3764_v53 = vadd.f32 %v10272_v26, %v3724_v45  ;;  %v3390_v41 = vadd.f32 %v3300_v32, %v3055_v58  ;;  %v10412_v12 = vpack.c.bf16 %v3861_v29, %v3860_v28 }
 0x412   : > { %v7613_v21 = vpop.f32.mrf.mxu1 }
 0x413   : > { %v3797_v52 = vmax.f32 %v3764_v53, 0.0  ;;  %v3725_v14 = vadd.f32 %v10158_v49, %v3390_v41  ;;  %7791 = vmatmul.mubr.msk.bf16.gmra.mxu0 %vm3816_vm4, %v10412_v12  ;;  %v11416_v21 = vld [vmem:[#allocation88_spill] sm:$0xff] }
 0x414   : > { %v3305_v43 = vpop.f32.mrf.mxu1  ;;  %v3862_v25 = vld [vmem:[#allocation3 + $0x60] sm:$0xff]  ;;  %7794 = vmatprep.mubr.msk.bf16.mxu0 %vm8307_vm1, %v11306_v38 }
 0x415   : > { %3831 = vst.msk [vmem:[#allocation3 + $0x70] sm:$0xff] %vm3816_vm4, %v3797_v52  ;;  %v3765_v23 = vadd.f32 %v10272_v26, %v3725_v14  ;;  %v3391_v9 = vadd.f32 %v3305_v43, %v3056_v30  ;;  %v10423_v51 = vpack.c.bf16 %v3862_v25, %v3861_v29  ;;  %v11417_v52 = vld [vmem:[#allocation17_spill] sm:$0xff] }
 0x416   : > { %v7616_v15 = vpop.f32.mrf.mxu1  ;;  %v3059_v14 = vadd.f32 %v11417_v52, %v11416_v21 }
 0x417   : > { %v3798_v49 = vmax.f32 %v3765_v23, 0.0  ;;  %v3726_v0 = vadd.f32 %v11410_v54, %v3391_v9  ;;  %7751 = vmatmul.mubr.msk.bf16.gmra.mxu1 %vm3816_vm4, %v10423_v51  ;;  %v11419_v54 = vld [vmem:[#allocation74_spill] sm:$0xff] }
 0x418   : > { %v3308_v18 = vpop.f32.mrf.mxu1  ;;  %v3863_v48 = vld [vmem:[#allocation3 + $0x68] sm:$0xff]  ;;  %7754 = vmatprep.mubr.msk.bf16.mxu1 %vm8307_vm1, %v11306_v38 }
 0x419   : > { %3832 = vst.msk [vmem:[#allocation3 + $0x78] sm:$0xff] %vm3816_vm4, %v3798_v49  ;;  %v3766_v8 = vadd.f32 %v10272_v26, %v3726_v0  ;;  %v3392_v59 = vadd.f32 %v3308_v18, %v3057_v60  ;;  %v10434_v7 = vpack.c.bf16 %v3863_v48, %v3862_v25  ;;  %v11418_v49 = vld [vmem:[#allocation40_spill] sm:$0xff] }
 0x41a   : > { %v7617_v22 = vpop.f32.mrf.mxu1  ;;  %v3060_v0 = vadd.f32 %v11419_v54, %v11418_v49 }
 0x41b   : > { %v3799_v31 = vmax.f32 %v3766_v8, 0.0  ;;  %v3727_v28 = vadd.f32 %v11413_v55, %v3392_v59  ;;  %7795 = vmatmul.mubr.msk.bf16.gmra.mxu0 %vm3816_vm4, %v10434_v7  ;;  %v11420_v22 = vld [vmem:[#allocation41_spill] sm:$0xff] }
 0x41c   : > { %v3313_v4 = vpop.f32.mrf.mxu1  ;;  %v3864_v45 = vld [vmem:[#allocation3 + $0x70] sm:$0xff]  ;;  %7798 = vmatprep.mubr.msk.bf16.mxu0 %vm8307_vm1, %v11306_v38 }
 0x41d   : > { %3833 = vst.msk [vmem:[#allocation3 + $0x80] sm:$0xff] %vm3816_vm4, %v3799_v31  ;;  %v3767_v61 = vadd.f32 %v10272_v26, %v3727_v28  ;;  %v3393_v58 = vadd.f32 %v3313_v4, %v3058_v47  ;;  %v10445_v32 = vpack.c.bf16 %v3864_v45, %v3863_v48  ;;  %v11421_v31 = vld [vmem:[#allocation18_spill] sm:$0xff] }
 0x41e   : > { %v7620_v29 = vpop.f32.mrf.mxu1  ;;  %v3061_v55 = vadd.f32 %v11421_v31, %v11420_v22 }
 0x41f   : > { %v3800_v53 = vmax.f32 %v3767_v61, 0.0  ;;  %v3728_v41 = vadd.f32 %v10183_v16, %v3393_v58  ;;  %7755 = vmatmul.mubr.msk.bf16.gmra.mxu1 %vm3816_vm4, %v10445_v32  ;;  %v11422_v29 = vld [vmem:[#allocation42_spill] sm:$0xff] }
 0x420   : > { %v3316_v50 = vpop.f32.mrf.mxu1  ;;  %v3865_v30 = vld [vmem:[#allocation3 + $0x78] sm:$0xff]  ;;  %7758 = vmatprep.mubr.msk.bf16.mxu1 %vm8307_vm1, %v11306_v38 }
 0x421   : > { %3834 = vst.msk [vmem:[#allocation3 + $0x88] sm:$0xff] %vm3816_vm4, %v3800_v53  ;;  %v3768_v43 = vadd.f32 %v10272_v26, %v3728_v41  ;;  %v3394_v25 = vadd.f32 %v3316_v50, %v3059_v14  ;;  %v10456_v23 = vpack.c.bf16 %v3865_v30, %v3864_v45  ;;  %v11423_v53 = vld [vmem:[#allocation19_spill] sm:$0xff] }
 0x422   : > { %v7621_v9 = vpop.f32.mrf.mxu1  ;;  %v3062_v41 = vadd.f32 %v11423_v53, %v11422_v29  ;;  %v8226_v53 = vld [vmem:[%s11148_s5 + $0x40] sm:$0xff]  }
 0x423   : > { %v3801_v16 = vmax.f32 %v3768_v43, 0.0  ;;  %v3729_v15 = vadd.f32 %v10189_v5, %v3394_v25  ;;  %7799 = vmatmul.mubr.msk.bf16.gmra.mxu0 %vm3816_vm4, %v10456_v23  ;;  %v11424_v25 = vld [vmem:[#allocation43_spill] sm:$0xff]  ;;  %v11425_v9 = vld [vmem:[#allocation20_spill] sm:$0xff] }
 0x424   : > { %v3321_v44 = vpop.f32.mrf.mxu1  ;;  %v3866_v36 = vld [vmem:[#allocation3 + $0x80] sm:$0xff]  ;;  %7802 = vmatprep.mubr.msk.bf16.mxu0 %vm8307_vm1, %v11306_v38 }
 0x425   : > { %3835 = vst.msk [vmem:[#allocation3 + $0x90] sm:$0xff] %vm3816_vm4, %v3801_v16  ;;  %v3769_v60 = vadd.f32 %v10272_v26, %v3729_v15  ;;  %v3395_v18 = vadd.f32 %v3321_v44, %v3060_v0  ;;  %v10467_v48 = vpack.c.bf16 %v3866_v36, %v3865_v30  ;;  %v3875_v4 = vpack.c.bf16 %v3866_v36, %v3866_v36  ;;  %v8227_v0 = vld [vmem:[%s11148_s5 + $0x58] sm:$0xff]  }
 0x426   : > { %v7624_v8 = vpop.f32.mrf.mxu1  ;;  %v3063_v16 = vadd.f32 %v11425_v9, %v11424_v25 }
 0x427   : > { %v3802_v5 = vmax.f32 %v3769_v60, 0.0  ;;  %v3730_v59 = vadd.f32 %v10195_v17, %v3395_v18  ;;  %7759 = vmatmul.mubr.msk.bf16.gmra.mxu1 %vm3816_vm4, %v10467_v48 }
 0x428   : > { %v3324_v28 = vpop.f32.mrf.mxu1  ;;  %7762 = vmatprep.mubr.msk.bf16.mxu1 %vm8307_vm1, %v11306_v38  ;;  %v10476_v33 = vld [vmem:[#allocation3 + $0x88] sm:$0xff] }
 0x429   : > { %3836 = vst.msk [vmem:[#allocation3 + $0x98] sm:$0xff] %vm3816_vm4, %v3802_v5  ;;  %v3770_v62 = vadd.f32 %v10272_v26, %v3730_v59  ;;  %v3396_v47 = vadd.f32 %v3324_v28, %v3061_v55  ;;  %v10481_v17 = vpack.c.bf16 %v10476_v33, %v3866_v36  ;;  %v3889_v50 = vpack.c.bf16 %v10476_v33, %v10476_v33  ;;  %v11426_v5 = vld [vmem:[#allocation44_spill] sm:$0xff]  ;;  %v11427_v59 = vld [vmem:[#allocation21_spill] sm:$0xff] }
 0x42a   : > { %v7625_v45 = vpop.f32.mrf.mxu1  ;;  %v3064_v22 = vadd.f32 %v11427_v59, %v11426_v5  ;;  %v8225_v55 = vld [vmem:[%s11148_s5 + $0x48] sm:$0xff]  }
 0x42b   : > { %v3803_v61 = vmax.f32 %v3770_v62, 0.0  ;;  %v3731_v58 = vadd.f32 %v10201_v19, %v3396_v47  ;;  %7803 = vmatmul.mubr.msk.bf16.gmra.mxu0 %vm3816_vm4, %v3875_v4  ;;  %v11428_v45 = vld [vmem:[#allocation45_spill] sm:$0xff] }
 0x42c   : > { %v3329_v21 = vpop.f32.mrf.mxu1  ;;  %7850 = vmatprep.mubr.msk.bf16.mxu0 %vm8307_vm1, %v11306_v38  ;;  %v10499_v49 = vld [vmem:[#allocation3 + $0x90] sm:$0xff] }
 0x42d   : > { %3837 = vst.msk [vmem:[#allocation3 + $0xa0] sm:$0xff] %vm3816_vm4, %v3803_v61  ;;  %v3771_v52 = vadd.f32 %v10272_v26, %v3731_v58  ;;  %v3397_v14 = vadd.f32 %v3329_v21, %v3062_v41  ;;  %v11429_v61 = vld [vmem:[#allocation77_spill] sm:$0xff] }
 0x42e   : > { %v7628_v30 = vpop.f32.mrf.mxu1  ;;  %v3065_v58 = vadd.f32 %v11429_v61, %v11428_v45 }
 0x42f   : > { %v3804_v43 = vmax.f32 %v3771_v52, 0.0  ;;  %v3732_v19 = vadd.f32 %v10207_v2, %v3397_v14  ;;  %7763 = vmatmul.mubr.msk.bf16.gmra.mxu1 %vm3816_vm4, %v3889_v50 }
 0x430   : > { %v3332_v15 = vpop.f32.mrf.mxu1  ;;  %7810 = vmatprep.mubr.msk.bf16.mxu1 %vm8307_vm1, %v11306_v38  ;;  %v10501_v54 = vld [vmem:[#allocation3 + $0x98] sm:$0xff] }
 0x431   : > { %3838 = vst.msk [vmem:[#allocation3 + $0xa8] sm:$0xff] %vm3816_vm4, %v3804_v43  ;;  %v3772_v2 = vadd.f32 %v10272_v26, %v3732_v19  ;;  %v3398_v44 = vadd.f32 %v3332_v15, %v3063_v16  ;;  %v10510_v36 = vpack.c.bf16 %v10501_v54, %v10499_v49  ;;  %v11430_v43 = vld [vmem:[#allocation46_spill] sm:$0xff] }
 0x432   : > { %v7629_v60 = vpop.f32.mrf.mxu1  ;;  %v11431_v19 = vld [vmem:[#allocation22_spill] sm:$0xff] }
 0x433   : > { %v3805_v18 = vmax.f32 %v3772_v2, 0.0  ;;  %v3733_v8 = vadd.f32 %v10213_v3, %v3398_v44  ;;  %7851 = vmatmul.mubr.msk.bf16.vlgmr.msra.gmra.mxu0 %vm3816_vm4, %v10379_v11  ;;  %v8228_v11 = vld [vmem:[%s11148_s5 + $0x50] sm:$0xff]   ;;  %v3066_v25 = vadd.f32 %v11431_v19, %v11430_v43  ;;  %v11432_v44 = vld [vmem:[#allocation47_spill] sm:$0xff] }
 0x434   : > { %v3337_v31 = vpop.f32.mrf.mxu1  ;;  %7854 = vmatprep.mubr.msk.bf16.mxu0 %vm8307_vm1, %v11306_v38  ;;  %7927 = vmatpush3.bf16.msra.mxu0 %v8227_v0  ;;  %v10538_v41 = vld [vmem:[#allocation3 + $0xa0] sm:$0xff]  ;;  %v11433_v60 = vld [vmem:[#allocation23_spill] sm:$0xff] }
 0x435   : > { %3839 = vst.msk [vmem:[#allocation3 + $0xb0] sm:$0xff] %vm3816_vm4, %v3805_v18  ;;  %v3773_v28 = vadd.f32 %v10272_v26, %v3733_v8  ;;  %v3399_v3 = vadd.f32 %v3337_v31, %v3064_v22  ;;  %7928 = vmatprep.subr.bf16.mxu0 %v11306_v38  ;;  %v3067_v18 = vadd.f32 %v11433_v60, %v11432_v44 }
 0x436   : > { %v7632_v62 = vpop.f32.mrf.mxu1 }
 0x437   : > { %v3806_v47 = vmax.f32 %v3773_v28, 0.0  ;;  %v3734_v4 = vadd.f32 %v10219_v56, %v3399_v3  ;;  %7811 = vmatmul.mubr.msk.bf16.vlgmr.msra.gmra.mxu1 %vm3816_vm4, %v10327_v57  ;;  %v11434_v3 = vld [vmem:[#allocation48_spill] sm:$0xff] }
 0x438   : > { %7887 = vmatpush3.bf16.msra.mxu1 %v8225_v55  ;;  %v3340_v29 = vpop.f32.mrf.mxu1  ;;  %7814 = vmatprep.mubr.msk.bf16.mxu1 %vm8307_vm1, %v11306_v38  ;;  %v10540_v21 = vld [vmem:[#allocation3 + $0xa8] sm:$0xff] }
 0x439   : > { %3840 = vst.msk [vmem:[#allocation3 + $0xb8] sm:$0xff] %vm3816_vm4, %v3806_v47  ;;  %v3774_v56 = vadd.f32 %v10272_v26, %v3734_v4  ;;  %v3400_v57 = vadd.f32 %v3340_v29, %v3065_v58  ;;  %7888 = vmatprep.subr.bf16.mxu1 %v11306_v38  ;;  %7929 = vmatpush3.bf16.msra.mxu0 %v8228_v11  ;;  %v11435_v11 = vld [vmem:[#allocation24_spill] sm:$0xff] }
 0x43a   : > { %v10547_v52 = vpack.c.bf16 %v10540_v21, %v10538_v41  ;;  %v7633_v14 = vpop.f32.mrf.mxu1  ;;  %8006 = vmatprep.subr.bf16.mxu0 %v11306_v38  ;;  %v3068_v62 = vadd.f32 %v11435_v11, %v11434_v3 }
 0x43b   : > { %v3807_v50 = vmax.f32 %v3774_v56, 0.0  ;;  %v3735_v30 = vadd.f32 %v10225_v34, %v3400_v57  ;;  %7855 = vmatmul.mubr.msk.bf16.gmra.mxu0 %vm3816_vm4, %v10401_v46 }
 0x43c   : > { %v3345_v9 = vpop.f32.mrf.mxu1  ;;  %7858 = vmatprep.mubr.msk.bf16.mxu0 %vm8307_vm1, %v11306_v38  ;;  %7889 = vmatpush3.bf16.msra.mxu1 %v8226_v53  ;;  %v10567_v5 = vld [vmem:[#allocation3 + $0xb0] sm:$0xff] }
 0x43d   : > { %3841 = vst.msk [vmem:[#allocation3 + $0xc0] sm:$0xff] %vm3816_vm4, %v3807_v50  ;;  %v3775_v16 = vadd.f32 %v10272_v26, %v3735_v30  ;;  %v3401_v15 = vadd.f32 %v3345_v9, %v3066_v25  ;;  %7966 = vmatprep.subr.bf16.mxu1 %v11306_v38 }
 0x43e   : > { %v7636_v0 = vpop.f32.mrf.mxu1 }
 0x43f   : > { %v3808_v34 = vmax.f32 %v3775_v16, 0.0  ;;  %v3736_v2 = vadd.f32 %v10231_v37, %v3401_v15  ;;  %7815 = vmatmul.mubr.msk.bf16.gmra.mxu1 %vm3816_vm4, %v10349_v1 }
 0x440   : > { %v3348_v8 = vpop.f32.mrf.mxu1  ;;  %7818 = vmatprep.mubr.msk.bf16.mxu1 %vm8307_vm1, %v11306_v38  ;;  %v10569_v59 = vld [vmem:[#allocation3 + $0xb8] sm:$0xff] }
 0x441   : > { %3842 = vst.msk [vmem:[#allocation3 + $0xc8] sm:$0xff] %vm3816_vm4, %v3808_v34  ;;  %v3776_v22 = vadd.f32 %v10272_v26, %v3736_v2  ;;  %v3402_v31 = vadd.f32 %v3348_v8, %v3067_v18  ;;  %v10575_v37 = vpack.c.bf16 %v10569_v59, %v10567_v5 }
 0x442   : > { %v7637_v1 = vpop.f32.mrf.mxu1 }
 0x443   : > { %v3809_v55 = vmax.f32 %v3776_v22, 0.0  ;;  %v3737_v28 = vadd.f32 %v10237_v13, %v3402_v31  ;;  %7859 = vmatmul.mubr.msk.bf16.gmra.mxu0 %vm3816_vm4, %v10423_v51  ;;  %v11436_v13 = vld [vmem:[#allocation25_spill] sm:$0xff] }
 0x444   : > { %v3353_v47 = vpop.f32.mrf.mxu1  ;;  %7862 = vmatprep.mubr.msk.bf16.mxu0 %vm8307_vm1, %v11306_v38  ;;  %v3069_v53 = vadd.f32 %v11436_v13, %v10245_v42 }
 0x445   : > { %3843 = vst.msk [vmem:[#allocation3 + $0xd0] sm:$0xff] %vm3816_vm4, %v3809_v55  ;;  %v3777_v4 = vadd.f32 %v10272_v26, %v3737_v28  ;;  %v3403_v45 = vadd.f32 %v3353_v47, %v3068_v62  ;;  %v10631_v62 = vpack.c.bf16 %v10499_v49, %v10476_v33  ;;  %v10648_v33 = vpack.c.bf16 %v10538_v41, %v10501_v54 }
 0x446   : > { %v7640_v61 = vpop.f32.mrf.mxu1  ;;  %v4397_v54 = vpack.c.bf16 %v10569_v59, %v10569_v59  ;;  %v4206_v41 = vpack.c.bf16 %v10499_v49, %v10499_v49  ;;  %v8232_v49 = vld [vmem:[%s11148_s5 + $0x70] sm:$0xff]  }
 0x447   : > { %v3810_v58 = vmax.f32 %v3777_v4, 0.0  ;;  %v3738_v29 = vadd.f32 %v10243_v27, %v3403_v45  ;;  %7819 = vmatmul.mubr.msk.bf16.gmra.mxu1 %vm3816_vm4, %v10368_v24  ;;  %v11437_v27 = vld [vmem:[#allocation49_spill] sm:$0xff]  ;;  %v11438_v24 = vld [vmem:[#allocation26_spill] sm:$0xff]  ;;  %v10662_v61 = vpack.c.bf16 %v10567_v5, %v10540_v21  ;;  %v8229_v5 = vld [vmem:[%s11148_s5 + $0x68] sm:$0xff]  }
 0x448   : > { %v3356_v56 = vpop.f32.mrf.mxu1  ;;  %7822 = vmatprep.mubr.msk.bf16.mxu1 %vm8307_vm1, %v11306_v38  ;;  %v3070_v19 = vadd.f32 %v11438_v24, %v11437_v27  ;;  %v8231_v21 = vld [vmem:[%s11148_s5 + $0x78] sm:$0xff]  }
 0x449   : > { %3844 = vst.msk [vmem:[#allocation3 + $0xd8] sm:$0xff] %vm3816_vm4, %v3810_v58  ;;  %v3778_v57 = vadd.f32 %v10272_v26, %v3738_v29  ;;  %v3404_v14 = vadd.f32 %v3356_v56, %v3069_v53 }
 0x44a   : > { %v7641_v50 = vpop.f32.mrf.mxu1 }
 0x44b   : > { %v3811_v30 = vmax.f32 %v3778_v57, 0.0  ;;  %v3739_v43 = vadd.f32 %v10249_v63, %v3404_v14  ;;  %7863 = vmatmul.mubr.msk.bf16.gmra.mxu0 %vm3816_vm4, %v10445_v32  ;;  %v11439_v63 = vld [vmem:[#allocation27_spill] sm:$0xff] }
 0x44c   : > { %v3361_v42 = vpop.f32.mrf.mxu1  ;;  %7866 = vmatprep.mubr.msk.bf16.mxu0 %vm8307_vm1, %v11306_v38  ;;  %v3071_v34 = vadd.f32 %v11439_v63, %v10257_v10 }
 0x44d   : > { %3845 = vst.msk [vmem:[#allocation3 + $0xe0] sm:$0xff] %vm3816_vm4, %v3811_v30  ;;  %v3779_v25 = vadd.f32 %v10272_v26, %v3739_v43  ;;  %v3405_v9 = vadd.f32 %v3361_v42, %v3070_v19  ;;  %v10768_v43 = vld [vmem:[#allocation3 + $0xc8] sm:$0xff] }
 0x44e   : > { %v7644_v16 = vpop.f32.mrf.mxu1 }
 0x44f   : > { %v3812_v15 = vmax.f32 %v3779_v25, 0.0  ;;  %v3740_v0 = vadd.f32 %v10255_v35, %v3405_v9  ;;  %7823 = vmatmul.mubr.msk.bf16.gmra.mxu1 %vm3816_vm4, %v10390_v39  ;;  %v11440_v35 = vld [vmem:[#allocation28_spill] sm:$0xff]  ;;  %v4779_v25 = vpack.c.bf16 %v10768_v43, %v10768_v43 }
 0x450   : > { %v3364_v2 = vpop.f32.mrf.mxu1  ;;  %7826 = vmatprep.mubr.msk.bf16.mxu1 %vm8307_vm1, %v11306_v38  ;;  %v3072_v31 = vadd.f32 %v11440_v35, %v10263_v20 }
 0x451   : > { %3846 = vst.msk [vmem:[#allocation3 + $0xe8] sm:$0xff] %vm3816_vm4, %v3812_v15  ;;  %v3780_v44 = vadd.f32 %v10272_v26, %v3740_v0  ;;  %v3406_v60 = vadd.f32 %v3364_v2, %v3071_v34 }
 0x452   : > { %v7645_v18 = vpop.f32.mrf.mxu1 }
 0x453   : > { %v3813_v8 = vmax.f32 %v3780_v44, 0.0  ;;  %v3741_v22 = vadd.f32 %v10261_v40, %v3406_v60  ;;  %7867 = vmatmul.mubr.msk.bf16.gmra.mxu0 %vm3816_vm4, %v10467_v48 }
 0x454   : > { %v3369_v10 = vpop.f32.mrf.mxu1  ;;  %7870 = vmatprep.mubr.msk.bf16.mxu0 %vm8307_vm1, %v11306_v38 }
 0x455   : > { %3847 = vst.msk [vmem:[#allocation3 + $0xf0] sm:$0xff] %vm3816_vm4, %v3813_v8  ;;  %v3781_v1 = vadd.f32 %v10272_v26, %v3741_v22  ;;  %v3407_v55 = vadd.f32 %v3369_v10, %v3072_v31  ;;  %v8233_v22 = vld [vmem:[%s11148_s5 + $0x88] sm:$0xff]  }
 0x456   : > { %v7648_v28 = vpop.f32.mrf.mxu1 }
 0x457   : > { %v3814_v3 = vmax.f32 %v3781_v1, 0.0  ;;  %v3742_v11 = vadd.f32 %v10265_v6, %v3407_v55  ;;  %7827 = vmatmul.mubr.msk.bf16.gmra.mxu1 %vm3816_vm4, %v10412_v12 }
 0x458   : > { %v3372_v40 = vpop.f32.mrf.mxu1  ;;  %7830 = vmatprep.mubr.msk.bf16.mxu1 %vm8307_vm1, %v11306_v38 }
 0x459   : > { %3848 = vst.msk [vmem:[#allocation3 + $0xf8] sm:$0xff] %vm3816_vm4, %v3814_v3  ;;  %v3782_v20 = vadd.f32 %v10272_v26, %v3742_v11 }
 0x45a   : > { %v7649_v47 = vpop.f32.mrf.mxu1 }
 0x45b   : > { %v3815_v4 = vmax.f32 %v3782_v20, 0.0  ;;  %7871 = vmatmul.mubr.msk.bf16.gmra.mxu0 %vm3816_vm4, %v10631_v62 }
 0x45c   : > { %7874 = vmatprep.mubr.msk.bf16.mxu0 %vm8307_vm1, %v11306_v38  ;;  %v10642_v6 = vld [vmem:[#allocation3 + $0xf0] sm:$0xff] }
 0x45d   : > { %3849 = vst.msk [vmem:[#allocation3 + $0x100] sm:$0xff] %vm3816_vm4, %v3815_v4 }
 0x45f   : > { %7831 = vmatmul.mubr.msk.bf16.gmra.mxu1 %vm3816_vm4, %v10434_v7 }
 0x460   : > { %7834 = vmatprep.mubr.msk.bf16.mxu1 %vm8307_vm1, %v11306_v38  ;;  %v10644_v26 = vld [vmem:[#allocation3 + $0xf8] sm:$0xff] }
 0x461   : > { %v5351_v45 = vpack.c.bf16 %v10644_v26, %v10642_v6 }
 0x463   : > { %7875 = vmatmul.mubr.msk.bf16.gmra.mxu0 %vm3816_vm4, %v10648_v33 }
 0x464   : > { %7878 = vmatprep.mubr.msk.bf16.mxu0 %vm8307_vm1, %v11306_v38 }
 0x467   : > { %7835 = vmatmul.mubr.msk.bf16.gmra.mxu1 %vm3816_vm4, %v10456_v23 }
 0x468   : > { %7838 = vmatprep.mubr.msk.bf16.mxu1 %vm8307_vm1, %v11306_v38 }
 0x46b   : > { %7879 = vmatmul.mubr.msk.bf16.gmra.mxu0 %vm3816_vm4, %v10662_v61 }
 0x46c   : > { %7882 = vmatprep.mubr.msk.bf16.mxu0 %vm8307_vm1, %v11306_v38 }
 0x46f   : > { %7839 = vmatmul.mubr.msk.bf16.gmra.mxu1 %vm3816_vm4, %v10481_v17 }
 0x470   : > { %7842 = vmatprep.mubr.msk.bf16.mxu1 %vm8307_vm1, %v11306_v38 }
 0x473   : > { %7883 = vmatmul.mubr.msk.bf16.gmra.mxu0 %vm3816_vm4, %v4397_v54 }
 0x474   : > { %7930 = vmatprep.mubr.msk.bf16.mxu0 %vm8307_vm1, %v11306_v38 }
 0x477   : > { %7843 = vmatmul.mubr.msk.bf16.gmra.mxu1 %vm3816_vm4, %v4206_v41 }
 0x478   : > { %7890 = vmatprep.mubr.msk.bf16.mxu1 %vm8307_vm1, %v11306_v38 }
 0x47b   : > { %7931 = vmatmul.mubr.msk.bf16.vlgmr.msra.gmra.mxu0 %vm3816_vm4, %v10401_v46  ;;  %v8230_v46 = vld [vmem:[%s11148_s5 + $0x60] sm:$0xff]  }
 0x47c   : > { %7934 = vmatprep.mubr.msk.bf16.mxu0 %vm8307_vm1, %v11306_v38  ;;  %8007 = vmatpush3.bf16.msra.mxu0 %v8231_v21 }
 0x47d   : > { %8008 = vmatprep.subr.bf16.mxu0 %v11306_v38 }
 0x47f   : > { %7891 = vmatmul.mubr.msk.bf16.vlgmr.msra.gmra.mxu1 %vm3816_vm4, %v10390_v39 }
 0x480   : > { %7967 = vmatpush3.bf16.msra.mxu1 %v8229_v5  ;;  %7894 = vmatprep.mubr.msk.bf16.mxu1 %vm8307_vm1, %v11306_v38 }
 0x481   : > { %7968 = vmatprep.subr.bf16.mxu1 %v11306_v38  ;;  %8009 = vmatpush3.bf16.msra.mxu0 %v8232_v49 }
 0x482   : > { %8086 = vmatprep.subr.bf16.mxu0 %v11306_v38 }
 0x483   : > { %7935 = vmatmul.mubr.msk.bf16.gmra.mxu0 %vm3816_vm4, %v10423_v51  ;;  %v10750_v51 = vld [vmem:[#allocation3 + $0xc0] sm:$0xff] }
 0x484   : > { %7938 = vmatprep.mubr.msk.bf16.mxu0 %vm8307_vm1, %v11306_v38  ;;  %7969 = vmatpush3.bf16.msra.mxu1 %v8230_v46  ;;  %v10760_v53 = vpack.c.bf16 %v10750_v51, %v10569_v59  ;;  %v4588_v63 = vpack.c.bf16 %v10750_v51, %v10750_v51 }
 0x485   : > { %8046 = vmatprep.subr.bf16.mxu1 %v11306_v38 }
 0x487   : > { %7895 = vmatmul.mubr.msk.bf16.gmra.mxu1 %vm3816_vm4, %v10412_v12 }
 0x488   : > { %7898 = vmatprep.mubr.msk.bf16.mxu1 %vm8307_vm1, %v11306_v38 }
 0x48b   : > { %7939 = vmatmul.mubr.msk.bf16.gmra.mxu0 %vm3816_vm4, %v10445_v32 }
 0x48c   : > { %7942 = vmatprep.mubr.msk.bf16.mxu0 %vm8307_vm1, %v11306_v38 }
 0x48f   : > { %7899 = vmatmul.mubr.msk.bf16.gmra.mxu1 %vm3816_vm4, %v10434_v7 }
 0x490   : > { %7902 = vmatprep.mubr.msk.bf16.mxu1 %vm8307_vm1, %v11306_v38 }
 0x493   : > { %7943 = vmatmul.mubr.msk.bf16.gmra.mxu0 %vm3816_vm4, %v10467_v48 }
 0x494   : > { %7946 = vmatprep.mubr.msk.bf16.mxu0 %vm8307_vm1, %v11306_v38 }
 0x497   : > { %7903 = vmatmul.mubr.msk.bf16.gmra.mxu1 %vm3816_vm4, %v10456_v23 }
 0x498   : > { %7906 = vmatprep.mubr.msk.bf16.mxu1 %vm8307_vm1, %v11306_v38 }
 0x49b   : > { %7947 = vmatmul.mubr.msk.bf16.gmra.mxu0 %vm3816_vm4, %v10631_v62 }
 0x49c   : > { %7950 = vmatprep.mubr.msk.bf16.mxu0 %vm8307_vm1, %v11306_v38 }
 0x49f   : > { %7907 = vmatmul.mubr.msk.bf16.gmra.mxu1 %vm3816_vm4, %v10481_v17 }
 0x4a0   : > { %7910 = vmatprep.mubr.msk.bf16.mxu1 %vm8307_vm1, %v11306_v38 }
 0x4a3   : > { %7951 = vmatmul.mubr.msk.bf16.gmra.mxu0 %vm3816_vm4, %v10648_v33 }
 0x4a4   : > { %7954 = vmatprep.mubr.msk.bf16.mxu0 %vm8307_vm1, %v11306_v38 }
 0x4a7   : > { %7911 = vmatmul.mubr.msk.bf16.gmra.mxu1 %vm3816_vm4, %v10510_v36 }
 0x4a8   : > { %7914 = vmatprep.mubr.msk.bf16.mxu1 %vm8307_vm1, %v11306_v38 }
 0x4ab   : > { %v4111_v39 = vpop.f32.mrf.mxu0  ;;  %7955 = vmatmul.mubr.msk.bf16.gmra.mxu0 %vm3816_vm4, %v10662_v61 }
 0x4ac   : > { %7958 = vmatprep.mubr.msk.bf16.mxu0 %vm8307_vm1, %v11306_v38 }
 0x4ad   : > { %v7772_v12 = vpop.f32.mrf.mxu0 }
 0x4af   : > { %v3968_v7 = vpop.f32.mrf.mxu1  ;;  %v4114_v32 = vpop.f32.mrf.mxu0  ;;  %7915 = vmatmul.mubr.msk.bf16.gmra.mxu1 %vm3816_vm4, %v10547_v52 }
 0x4b0   : > { %v10754_v58 = vadd.f32 %v4111_v39, %v3968_v7  ;;  %7918 = vmatprep.mubr.msk.bf16.mxu1 %vm8307_vm1, %v11306_v38 }
 0x4b1   : > { %v7732_v29 = vpop.f32.mrf.mxu1  ;;  %v7773_v13 = vpop.f32.mrf.mxu0 }
 0x4b3   : > { %v3971_v56 = vpop.f32.mrf.mxu1  ;;  %v4119_v57 = vpop.f32.mrf.mxu0  ;;  %7959 = vmatmul.mubr.msk.bf16.gmra.mxu0 %vm3816_vm4, %v10760_v53 }
 0x4b4   : > { %v10764_v14 = vadd.f32 %v4114_v32, %v3971_v56  ;;  %7962 = vmatprep.mubr.msk.bf16.mxu0 %vm8307_vm1, %v11306_v38 }
 0x4b5   : > { %v7733_v50 = vpop.f32.mrf.mxu1  ;;  %v7776_v30 = vpop.f32.mrf.mxu0 }
 0x4b7   : > { %v3976_v27 = vpop.f32.mrf.mxu1  ;;  %v4122_v24 = vpop.f32.mrf.mxu0  ;;  %7919 = vmatmul.mubr.msk.bf16.gmra.mxu1 %vm3816_vm4, %v10575_v37 }
 0x4b8   : > { %v10772_v59 = vadd.f32 %v4119_v57, %v3976_v27  ;;  %7922 = vmatprep.mubr.msk.bf16.mxu1 %vm8307_vm1, %v11306_v38 }
 0x4b9   : > { %v7736_v19 = vpop.f32.mrf.mxu1  ;;  %v7777_v42 = vpop.f32.mrf.mxu0 }
 0x4bb   : > { %v3979_v9 = vpop.f32.mrf.mxu1  ;;  %v4127_v16 = vpop.f32.mrf.mxu0  ;;  %7963 = vmatmul.mubr.msk.bf16.gmra.mxu0 %vm3816_vm4, %v4779_v25  ;;  %v5147_v25 = vld [vmem:[#allocation3 + $0xd0] sm:$0xff] }
 0x4bc   : > { %8010 = vmatprep.mubr.msk.bf16.mxu0 %vm8307_vm1, %v11306_v38 }
 0x4bd   : > { %v7737_v15 = vpop.f32.mrf.mxu1  ;;  %v7780_v0 = vpop.f32.mrf.mxu0 }
 0x4bf   : > { %v3984_v34 = vpop.f32.mrf.mxu1  ;;  %v4130_v2 = vpop.f32.mrf.mxu0  ;;  %7923 = vmatmul.mubr.msk.bf16.gmra.mxu1 %vm3816_vm4, %v4588_v63 }
 0x4c0   : > { %7970 = vmatprep.mubr.msk.bf16.mxu1 %vm8307_vm1, %v11306_v38 }
 0x4c1   : > { %v7740_v44 = vpop.f32.mrf.mxu1  ;;  %v7781_v60 = vpop.f32.mrf.mxu0 }
 0x4c3   : > { %v3987_v18 = vpop.f32.mrf.mxu1  ;;  %v4135_v8 = vpop.f32.mrf.mxu0  ;;  %8011 = vmatmul.mubr.msk.bf16.vlgmr.msra.gmra.mxu0 %vm3816_vm4, %v10467_v48  ;;  %v8234_v48 = vld [vmem:[%s11148_s5 + $0x80] sm:$0xff]  }
 0x4c4   : > { %8014 = vmatprep.mubr.msk.bf16.mxu0 %vm8307_vm1, %v11306_v38  ;;  %v10850_v8 = vpack.c.bf16 %v10768_v43, %v10750_v51 }
 0x4c5   : > { %v7741_v35 = vpop.f32.mrf.mxu1  ;;  %v7784_v31 = vpop.f32.mrf.mxu0 }
 0x4c7   : > { %v3992_v10 = vpop.f32.mrf.mxu1  ;;  %v4138_v1 = vpop.f32.mrf.mxu0  ;;  %7971 = vmatmul.mubr.msk.bf16.vlgmr.msra.gmra.mxu1 %vm3816_vm4, %v10456_v23 }
 0x4c8   : > { %8047 = vmatpush3.bf16.msra.mxu1 %v8233_v22  ;;  %7974 = vmatprep.mubr.msk.bf16.mxu1 %vm8307_vm1, %v11306_v38  ;;  %v5149_v22 = vld [vmem:[#allocation3 + $0xe0] sm:$0xff] }
 0x4c9   : > { %v7744_v55 = vpop.f32.mrf.mxu1  ;;  %v7785_v28 = vpop.f32.mrf.mxu0  ;;  %8048 = vmatprep.subr.bf16.mxu1 %v11306_v38 }
 0x4cb   : > { %v3995_v3 = vpop.f32.mrf.mxu1  ;;  %v4143_v11 = vpop.f32.mrf.mxu0  ;;  %8015 = vmatmul.mubr.msk.bf16.gmra.mxu0 %vm3816_vm4, %v10631_v62 }
 0x4cc   : > { %v10803_v40 = vadd.f32 %v4138_v1, %v3995_v3  ;;  %8018 = vmatprep.mubr.msk.bf16.mxu0 %vm8307_vm1, %v11306_v38  ;;  %8049 = vmatpush3.bf16.msra.mxu1 %v8234_v48  ;;  %v5148_v1 = vld [vmem:[#allocation3 + $0xd8] sm:$0xff] }
 0x4cd   : > { %v7745_v23 = vpop.f32.mrf.mxu1  ;;  %v7788_v20 = vpop.f32.mrf.mxu0  ;;  %8104 = vmatprep.subr.bf16.mxu1 %v11306_v38  ;;  %v5159_v28 = vpack.c.bf16 %v5149_v22, %v5148_v1 }
 0x4ce   : > { %v10861_v23 = vpack.c.bf16 %v5148_v1, %v5147_v25 }
 0x4cf   : > { %v4000_v47 = vpop.f32.mrf.mxu1  ;;  %v4146_v4 = vpop.f32.mrf.mxu0  ;;  %7975 = vmatmul.mubr.msk.bf16.gmra.mxu1 %vm3816_vm4, %v10481_v17 }
 0x4d0   : > { %v10810_v54 = vadd.f32 %v4143_v11, %v4000_v47  ;;  %7978 = vmatprep.mubr.msk.bf16.mxu1 %vm8307_vm1, %v11306_v38 }
 0x4d1   : > { %v7748_v62 = vpop.f32.mrf.mxu1  ;;  %v7789_v41 = vpop.f32.mrf.mxu0 }
 0x4d2   : > { %v5150_v62 = vld [vmem:[#allocation3 + $0xe8] sm:$0xff] }
 0x4d3   : > { %v4003_v21 = vpop.f32.mrf.mxu1  ;;  %v4151_v5 = vpop.f32.mrf.mxu0  ;;  %8019 = vmatmul.mubr.msk.bf16.gmra.mxu0 %vm3816_vm4, %v10648_v33 }
 0x4d4   : > { %v10816_v49 = vadd.f32 %v4146_v4, %v4003_v21  ;;  %8022 = vmatprep.mubr.msk.bf16.mxu0 %vm8307_vm1, %v11306_v38  ;;  %v5160_v5 = vpack.c.bf16 %v10642_v6, %v5150_v62 }
 0x4d5   : > { %v7749_v46 = vpop.f32.mrf.mxu1  ;;  %v7792_v39 = vpop.f32.mrf.mxu0 }
 0x4d7   : > { %v4008_v17 = vpop.f32.mrf.mxu1  ;;  %v4154_v12 = vpop.f32.mrf.mxu0  ;;  %7979 = vmatmul.mubr.msk.bf16.gmra.mxu1 %vm3816_vm4, %v10510_v36 }
 0x4d8   : > { %7982 = vmatprep.mubr.msk.bf16.mxu1 %vm8307_vm1, %v11306_v38 }
 0x4d9   : > { %v7752_v7 = vpop.f32.mrf.mxu1  ;;  %v7793_v32 = vpop.f32.mrf.mxu0 }
 0x4da   : > { %v10875_v32 = vpack.c.bf16 %v5150_v62, %v5149_v22 }
 0x4db   : > { %v4011_v29 = vpop.f32.mrf.mxu1  ;;  %v4159_v13 = vpop.f32.mrf.mxu0  ;;  %8023 = vmatmul.mubr.msk.bf16.gmra.mxu0 %vm3816_vm4, %v10662_v61 }
 0x4dc   : > { %8026 = vmatprep.mubr.msk.bf16.mxu0 %vm8307_vm1, %v11306_v38 }
 0x4dd   : > { %v7753_v33 = vpop.f32.mrf.mxu1  ;;  %v7796_v56 = vpop.f32.mrf.mxu0 }
 0x4df   : > { %v4016_v57 = vpop.f32.mrf.mxu1  ;;  %v4162_v50 = vpop.f32.mrf.mxu0  ;;  %7983 = vmatmul.mubr.msk.bf16.gmra.mxu1 %vm3816_vm4, %v10547_v52 }
 0x4e0   : > { %7986 = vmatprep.mubr.msk.bf16.mxu1 %vm8307_vm1, %v11306_v38  ;;  %v5161_v50 = vpack.c.bf16 %v10644_v26, %v10644_v26 }
 0x4e1   : > { %v7756_v30 = vpop.f32.mrf.mxu1  ;;  %v7797_v27 = vpop.f32.mrf.mxu0 }
 0x4e3   : > { %v4019_v24 = vpop.f32.mrf.mxu1  ;;  %v4167_v19 = vpop.f32.mrf.mxu0  ;;  %8027 = vmatmul.mubr.msk.bf16.gmra.mxu0 %vm3816_vm4, %v10760_v53  ;;  %v5158_v53 = vpack.c.bf16 %v5147_v25, %v10768_v43 }
 0x4e4   : > { %8030 = vmatprep.mubr.msk.bf16.mxu0 %vm8307_vm1, %v11306_v38 }
 0x4e5   : > { %v7757_v61 = vpop.f32.mrf.mxu1  ;;  %v7800_v42 = vpop.f32.mrf.mxu0 }
 0x4e7   : > { %v4024_v9 = vpop.f32.mrf.mxu1  ;;  %v4170_v16 = vpop.f32.mrf.mxu0  ;;  %7987 = vmatmul.mubr.msk.bf16.gmra.mxu1 %vm3816_vm4, %v10575_v37 }
 0x4e8   : > { %v10838_v15 = vadd.f32 %v4167_v19, %v4024_v9  ;;  %7990 = vmatprep.mubr.msk.bf16.mxu1 %vm8307_vm1, %v11306_v38 }
 0x4e9   : > { %v7760_v0 = vpop.f32.mrf.mxu1  ;;  %v7801_v63 = vpop.f32.mrf.mxu0 }
 0x4ea   : > { %v5328_v0 = vld [vmem:[#allocation3 + $0x88] sm:$0xff] }
 0x4eb   : > { %v4027_v34 = vpop.f32.mrf.mxu1  ;;  %v4175_v2 = vpop.f32.mrf.mxu0  ;;  %8031 = vmatmul.mubr.msk.bf16.gmra.mxu0 %vm3816_vm4, %v5158_v53 }
 0x4ec   : > { %v10844_v44 = vadd.f32 %v4170_v16, %v4027_v34  ;;  %8034 = vmatprep.mubr.msk.bf16.mxu0 %vm8307_vm1, %v11306_v38  ;;  %v5327_v34 = vld [vmem:[#allocation3 + $0x80] sm:$0xff] }
 0x4ed   : > { %v7761_v60 = vpop.f32.mrf.mxu1  ;;  %v7804_v18 = vpop.f32.mrf.mxu0 }
 0x4ee   : > { %v5344_v18 = vpack.c.bf16 %v5328_v0, %v5327_v34 }
 0x4ef   : > { %v4032_v35 = vpop.f32.mrf.mxu1  ;;  %v4178_v31 = vpop.f32.mrf.mxu0  ;;  %7991 = vmatmul.mubr.msk.bf16.gmra.mxu1 %vm3816_vm4, %v10850_v8 }
 0x4f0   : > { %v10854_v10 = vadd.f32 %v4175_v2, %v4032_v35  ;;  %7994 = vmatprep.mubr.msk.bf16.mxu1 %vm8307_vm1, %v11306_v38 }
 0x4f1   : > { %v7764_v48 = vpop.f32.mrf.mxu1  ;;  %v7805_v55 = vpop.f32.mrf.mxu0 }
 0x4f3   : > { %v4035_v3 = vpop.f32.mrf.mxu1  ;;  %v4476_v11 = vpop.f32.mrf.mxu0  ;;  %8035 = vmatmul.mubr.msk.bf16.gmra.mxu0 %vm3816_vm4, %v5159_v28 }
 0x4f4   : > { %8038 = vmatprep.mubr.msk.bf16.mxu0 %vm8307_vm1, %v11306_v38 }
 0x4f5   : > { %v7765_v51 = vpop.f32.mrf.mxu1  ;;  %v7852_v43 = vpop.f32.mrf.mxu0 }
 0x4f7   : > { %v4285_v20 = vpop.f32.mrf.mxu1  ;;  %v4479_v47 = vpop.f32.mrf.mxu0  ;;  %7995 = vmatmul.mubr.msk.bf16.gmra.mxu1 %vm3816_vm4, %v10861_v23 }
 0x4f8   : > { %v4355_v4 = vadd.f32 %v4285_v20, %v10754_v58  ;;  %7998 = vmatprep.mubr.msk.bf16.mxu1 %vm8307_vm1, %v11306_v38 }
 0x4f9   : > { %v7812_v41 = vpop.f32.mrf.mxu1  ;;  %v7853_v21 = vpop.f32.mrf.mxu0 }
 0x4fa   : > { %v10869_v46 = vadd.f32 %v4476_v11, %v4355_v4 }
 0x4fb   : > { %v4288_v39 = vpop.f32.mrf.mxu1  ;;  %v4484_v17 = vpop.f32.mrf.mxu0  ;;  %8039 = vmatmul.mubr.msk.bf16.gmra.mxu0 %vm3816_vm4, %v5160_v5 }
 0x4fc   : > { %v4356_v12 = vadd.f32 %v4288_v39, %v10764_v14  ;;  %8042 = vmatprep.mubr.msk.bf16.mxu0 %vm8307_vm1, %v11306_v38 }
 0x4fd   : > { %v7813_v58 = vpop.f32.mrf.mxu1  ;;  %v7856_v7 = vpop.f32.mrf.mxu0 }
 0x4fe   : > { %v10877_v29 = vadd.f32 %v4479_v47, %v4356_v12 }
 0x4ff   : > { %v4293_v13 = vpop.f32.mrf.mxu1  ;;  %v4487_v33 = vpop.f32.mrf.mxu0  ;;  %7999 = vmatmul.mubr.msk.bf16.gmra.mxu1 %vm3816_vm4, %v10875_v32 }
 0x500   : > { %v4357_v56 = vadd.f32 %v4293_v13, %v10772_v59  ;;  %8002 = vmatprep.mubr.msk.bf16.mxu1 %vm8307_vm1, %v11306_v38  ;;  %v4970_v59 = vpack.c.bf16 %v10642_v6, %v10642_v6 }
 0x501   : > { %v7816_v14 = vpop.f32.mrf.mxu1  ;;  %v7857_v57 = vpop.f32.mrf.mxu0 }
 0x502   : > { %v10886_v30 = vadd.f32 %v4484_v17, %v4357_v56 }
 0x503   : > { %v4296_v27 = vpop.f32.mrf.mxu1  ;;  %v4492_v24 = vpop.f32.mrf.mxu0  ;;  %8043 = vmatmul.mubr.msk.bf16.gmra.mxu0 %vm3816_vm4, %v5161_v50 }
 0x504   : > { %8088 = vmatprep.mubr.msk.bf16.mxu0 %vm8307_vm1, %v11306_v38 }
 0x505   : > { %v7817_v19 = vpop.f32.mrf.mxu1  ;;  %v7860_v61 = vpop.f32.mrf.mxu0 }
 0x507   : > { %v4301_v42 = vpop.f32.mrf.mxu1  ;;  %v4495_v25 = vpop.f32.mrf.mxu0  ;;  %8003 = vmatmul.mubr.msk.bf16.gmra.mxu1 %vm3816_vm4, %v4970_v59 }
 0x508   : > { %8050 = vmatprep.mubr.msk.bf16.mxu1 %vm8307_vm1, %v11306_v38 }
 0x509   : > { %v7820_v9 = vpop.f32.mrf.mxu1  ;;  %v7861_v16 = vpop.f32.mrf.mxu0 }
 0x50b   : > { %v4304_v63 = vpop.f32.mrf.mxu1  ;;  %v4500_v53 = vpop.f32.mrf.mxu0 }
 0x50d   : > { %v7821_v2 = vpop.f32.mrf.mxu1  ;;  %v7864_v60 = vpop.f32.mrf.mxu0 }
 0x50f   : > { %v4309_v22 = vpop.f32.mrf.mxu1  ;;  %v4503_v35 = vpop.f32.mrf.mxu0  ;;  %8051 = vmatmul.mubr.msk.bf16.vlgmr.msra.gmra.mxu1 %vm3816_vm4, %v5344_v18 }
 0x510   : > { %8054 = vmatprep.mubr.msk.bf16.mxu1 %vm8307_vm1, %v11306_v38 }
 0x511   : > { %v7824_v31 = vpop.f32.mrf.mxu1  ;;  %v7865_v1 = vpop.f32.mrf.mxu0 }
 0x513   : > { %v4312_v48 = vpop.f32.mrf.mxu1  ;;  %v4508_v55 = vpop.f32.mrf.mxu0 }
 0x514   : > { %v4362_v28 = vadd.f32 %v4312_v48, %v10803_v40 }
 0x515   : > { %v7825_v3 = vpop.f32.mrf.mxu1  ;;  %v7868_v11 = vpop.f32.mrf.mxu0 }
 0x516   : > { %v10900_v51 = vadd.f32 %v4503_v35, %v4362_v28 }
 0x517   : > { %v4317_v43 = vpop.f32.mrf.mxu1  ;;  %v4511_v20 = vpop.f32.mrf.mxu0  ;;  %8055 = vmatmul.mubr.msk.bf16.gmra.mxu1 %vm3816_vm4, %v10510_v36 }
 0x518   : > { %v4363_v47 = vadd.f32 %v4317_v43, %v10810_v54  ;;  %8058 = vmatprep.mubr.msk.bf16.mxu1 %vm8307_vm1, %v11306_v38 }
 0x519   : > { %v7828_v4 = vpop.f32.mrf.mxu1  ;;  %v7869_v62 = vpop.f32.mrf.mxu0 }
 0x51a   : > { %v10907_v41 = vadd.f32 %v4508_v55, %v4363_v47 }
 0x51b   : > { %v4320_v21 = vpop.f32.mrf.mxu1  ;;  %v4516_v40 = vpop.f32.mrf.mxu0 }
 0x51c   : > { %v4364_v5 = vadd.f32 %v4320_v21, %v10816_v49 }
 0x51d   : > { %v7829_v39 = vpop.f32.mrf.mxu1  ;;  %v7872_v17 = vpop.f32.mrf.mxu0 }
 0x51e   : > { %v10910_v12 = vadd.f32 %v4511_v20, %v4364_v5  ;;  %v8236_v5 = vld [vmem:[%s11150_s7 + $0x18] sm:$0xff]  }
 0x51f   : > { %v4325_v58 = vpop.f32.mrf.mxu1  ;;  %v4519_v7 = vpop.f32.mrf.mxu0  ;;  %8059 = vmatmul.mubr.msk.bf16.gmra.mxu1 %vm3816_vm4, %v10547_v52 }
 0x520   : > { %8062 = vmatprep.mubr.msk.bf16.mxu1 %vm8307_vm1, %v11306_v38  ;;  %8105 = vmatpush3.bf16.msra.mxu1 %v8236_v5  ;;  %v5343_v7 = vld [vmem:[#allocation3 + $0x100] sm:$0xff] }
 0x521   : > { %v7832_v36 = vpop.f32.mrf.mxu1  ;;  %v7873_v54 = vpop.f32.mrf.mxu0  ;;  %8116 = vmatprep.subr.bf16.mxu1 %v11306_v38  ;;  %v5352_v6 = vpack.c.bf16 %v5343_v7, %v5343_v7 }
 0x523   : > { %v4328_v13 = vpop.f32.mrf.mxu1  ;;  %v4524_v33 = vpop.f32.mrf.mxu0 }
 0x525   : > { %v7833_v56 = vpop.f32.mrf.mxu1  ;;  %v7876_v14 = vpop.f32.mrf.mxu0 }
 0x527   : > { %v4333_v57 = vpop.f32.mrf.mxu1  ;;  %v4527_v49 = vpop.f32.mrf.mxu0  ;;  %8063 = vmatmul.mubr.msk.bf16.gmra.mxu1 %vm3816_vm4, %v10575_v37  ;;  %v8235_v37 = vld [vmem:[%s11150_s7 + $0x8] sm:$0xff]  }
 0x528   : > { %8066 = vmatprep.mubr.msk.bf16.mxu1 %vm8307_vm1, %v11306_v38  ;;  %8087 = vmatpush3.bf16.msra.mxu0 %v8235_v37 }
 0x529   : > { %v7836_v50 = vpop.f32.mrf.mxu1  ;;  %v7877_v27 = vpop.f32.mrf.mxu0  ;;  %8092 = vmatprep.subr.bf16.mxu0 %v11306_v38 }
 0x52b   : > { %v4336_v52 = vpop.f32.mrf.mxu1  ;;  %v4532_v24 = vpop.f32.mrf.mxu0 }
 0x52d   : > { %v7837_v19 = vpop.f32.mrf.mxu1  ;;  %v7880_v61 = vpop.f32.mrf.mxu0 }
 0x52f   : > { %v4341_v59 = vpop.f32.mrf.mxu1  ;;  %v4535_v42 = vpop.f32.mrf.mxu0  ;;  %8067 = vmatmul.mubr.msk.bf16.gmra.mxu1 %vm3816_vm4, %v10850_v8 }
 0x530   : > { %v4369_v25 = vadd.f32 %v4341_v59, %v10838_v15  ;;  %8070 = vmatprep.mubr.msk.bf16.mxu1 %vm8307_vm1, %v11306_v38 }
 0x531   : > { %v7840_v9 = vpop.f32.mrf.mxu1  ;;  %v7881_v16 = vpop.f32.mrf.mxu0 }
 0x532   : > { %v10928_v0 = vadd.f32 %v4532_v24, %v4369_v25 }
 0x533   : > { %v4344_v63 = vpop.f32.mrf.mxu1  ;;  %v4540_v53 = vpop.f32.mrf.mxu0 }
 0x534   : > { %v4370_v8 = vadd.f32 %v4344_v63, %v10844_v44 }
 0x535   : > { %v7841_v34 = vpop.f32.mrf.mxu1  ;;  %v7884_v15 = vpop.f32.mrf.mxu0 }
 0x536   : > { %v10932_v2 = vadd.f32 %v4535_v42, %v4370_v8 }
 0x537   : > { %v4349_v60 = vpop.f32.mrf.mxu1  ;;  %v4543_v18 = vpop.f32.mrf.mxu0  ;;  %8071 = vmatmul.mubr.msk.bf16.gmra.mxu1 %vm3816_vm4, %v10861_v23 }
 0x538   : > { %v4371_v22 = vadd.f32 %v4349_v60, %v10854_v10  ;;  %8074 = vmatprep.mubr.msk.bf16.mxu1 %vm8307_vm1, %v11306_v38 }
 0x539   : > { %v7844_v35 = vpop.f32.mrf.mxu1  ;;  %v7885_v31 = vpop.f32.mrf.mxu0 }
 0x53a   : > { %v10939_v1 = vadd.f32 %v4540_v53, %v4371_v22 }
 0x53b   : > { %v4352_v48 = vpop.f32.mrf.mxu1  ;;  %v4858_v44 = vpop.f32.mrf.mxu0 }
 0x53d   : > { %v7845_v55 = vpop.f32.mrf.mxu1  ;;  %v7932_v28 = vpop.f32.mrf.mxu0 }
 0x53f   : > { %v4667_v3 = vpop.f32.mrf.mxu1  ;;  %v4861_v11 = vpop.f32.mrf.mxu0  ;;  %8075 = vmatmul.mubr.msk.bf16.gmra.mxu1 %vm3816_vm4, %v10875_v32 }
 0x540   : > { %v4737_v23 = vadd.f32 %v4667_v3, %v10869_v46  ;;  %8078 = vmatprep.mubr.msk.bf16.mxu1 %vm8307_vm1, %v11306_v38 }
 0x541   : > { %v7892_v10 = vpop.f32.mrf.mxu1  ;;  %v7933_v43 = vpop.f32.mrf.mxu0 }
 0x542   : > { %v10946_v20 = vadd.f32 %v4858_v44, %v4737_v23 }
 0x543   : > { %v4670_v47 = vpop.f32.mrf.mxu1  ;;  %v4866_v4 = vpop.f32.mrf.mxu0 }
 0x544   : > { %v4738_v62 = vadd.f32 %v4670_v47, %v10877_v29 }
 0x545   : > { %v7893_v21 = vpop.f32.mrf.mxu1  ;;  %v7936_v40 = vpop.f32.mrf.mxu0 }
 0x546   : > { %v10952_v32 = vadd.f32 %v4861_v11, %v4738_v62 }
 0x547   : > { %v4675_v46 = vpop.f32.mrf.mxu1  ;;  %v4869_v39 = vpop.f32.mrf.mxu0  ;;  %8079 = vmatmul.mubr.msk.bf16.gmra.mxu1 %vm3816_vm4, %v5351_v45 }
 0x548   : > { %v4739_v17 = vadd.f32 %v4675_v46, %v10886_v30  ;;  %8082 = vmatprep.mubr.msk.bf16.mxu1 %vm8307_vm1, %v11306_v38 }
 0x549   : > { %v7896_v29 = vpop.f32.mrf.mxu1  ;;  %v7937_v58 = vpop.f32.mrf.mxu0 }
 0x54a   : > { %v10962_v36 = vadd.f32 %v4866_v4, %v4739_v17 }
 0x54b   : > { %v4678_v54 = vpop.f32.mrf.mxu1  ;;  %v4874_v13 = vpop.f32.mrf.mxu0 }
 0x54d   : > { %v7897_v33 = vpop.f32.mrf.mxu1  ;;  %v7940_v56 = vpop.f32.mrf.mxu0 }
 0x54f   : > { %v4683_v26 = vpop.f32.mrf.mxu1  ;;  %v4877_v45 = vpop.f32.mrf.mxu0  ;;  %8083 = vmatmul.mubr.msk.bf16.gmra.mxu1 %vm3816_vm4, %v5352_v6 }
 0x550   : > { %8106 = vmatprep.mubr.msk.bf16.mxu1 %vm8307_vm1, %v11306_v38 }
 0x551   : > { %v7900_v30 = vpop.f32.mrf.mxu1  ;;  %v7941_v14 = vpop.f32.mrf.mxu0 }
 0x553   : > { %v4686_v57 = vpop.f32.mrf.mxu1  ;;  %v4882_v49 = vpop.f32.mrf.mxu0 }
 0x555   : > { %v7901_v50 = vpop.f32.mrf.mxu1  ;;  %v7944_v27 = vpop.f32.mrf.mxu0 }
 0x557   : > { %v4691_v52 = vpop.f32.mrf.mxu1  ;;  %v4885_v24 = vpop.f32.mrf.mxu0 }
 0x559   : > { %v7904_v19 = vpop.f32.mrf.mxu1  ;;  %v7945_v61 = vpop.f32.mrf.mxu0 }
 0x55b   : > { %v4694_v59 = vpop.f32.mrf.mxu1  ;;  %v4890_v42 = vpop.f32.mrf.mxu0 }
 0x55c   : > { %v4744_v25 = vadd.f32 %v4694_v59, %v10900_v51 }
 0x55d   : > { %v7905_v37 = vpop.f32.mrf.mxu1  ;;  %v7948_v9 = vpop.f32.mrf.mxu0 }
 0x55e   : > { %v10968_v16 = vadd.f32 %v4885_v24, %v4744_v25 }
 0x55f   : > { %v4699_v63 = vpop.f32.mrf.mxu1  ;;  %v4893_v53 = vpop.f32.mrf.mxu0 }
 0x560   : > { %v4745_v8 = vadd.f32 %v4699_v63, %v10907_v41 }
 0x561   : > { %v7908_v34 = vpop.f32.mrf.mxu1  ;;  %v7949_v15 = vpop.f32.mrf.mxu0 }
 0x562   : > { %v10971_v60 = vadd.f32 %v4890_v42, %v4745_v8 }
 0x563   : > { %v4702_v18 = vpop.f32.mrf.mxu1  ;;  %v4898_v22 = vpop.f32.mrf.mxu0 }
 0x564   : > { %v4746_v35 = vadd.f32 %v4702_v18, %v10910_v12 }
 0x565   : > { %v7909_v31 = vpop.f32.mrf.mxu1  ;;  %v7952_v48 = vpop.f32.mrf.mxu0 }
 0x566   : > { %v10974_v44 = vadd.f32 %v4893_v53, %v4746_v35 }
 0x567   : > { %v4707_v51 = vpop.f32.mrf.mxu1  ;;  %v4901_v55 = vpop.f32.mrf.mxu0 }
 0x569   : > { %v7912_v28 = vpop.f32.mrf.mxu1  ;;  %v7953_v3 = vpop.f32.mrf.mxu0 }
 0x56b   : > { %v4710_v11 = vpop.f32.mrf.mxu1  ;;  %v4906_v23 = vpop.f32.mrf.mxu0 }
 0x56d   : > { %v7913_v10 = vpop.f32.mrf.mxu1  ;;  %v7956_v41 = vpop.f32.mrf.mxu0 }
 0x56f   : > { %v4715_v43 = vpop.f32.mrf.mxu1  ;;  %v4909_v47 = vpop.f32.mrf.mxu0 }
 0x571   : > { %v7916_v4 = vpop.f32.mrf.mxu1  ;;  %v7957_v62 = vpop.f32.mrf.mxu0 }
 0x573   : > { %v4718_v21 = vpop.f32.mrf.mxu1  ;;  %v4914_v40 = vpop.f32.mrf.mxu0 }
 0x575   : > { %v7917_v5 = vpop.f32.mrf.mxu1  ;;  %v7960_v12 = vpop.f32.mrf.mxu0 }
 0x577   : > { %v4723_v46 = vpop.f32.mrf.mxu1  ;;  %v4917_v39 = vpop.f32.mrf.mxu0 }
 0x578   : > { %v4751_v17 = vadd.f32 %v4723_v46, %v10928_v0 }
 0x579   : > { %v7920_v29 = vpop.f32.mrf.mxu1  ;;  %v7961_v58 = vpop.f32.mrf.mxu0 }
 0x57a   : > { %v10977_v7 = vadd.f32 %v4914_v40, %v4751_v17 }
 0x57b   : > { %v4726_v54 = vpop.f32.mrf.mxu1  ;;  %v4922_v13 = vpop.f32.mrf.mxu0 }
 0x57c   : > { %v4752_v33 = vadd.f32 %v4726_v54, %v10932_v2 }
 0x57d   : > { %v7921_v56 = vpop.f32.mrf.mxu1  ;;  %v7964_v6 = vpop.f32.mrf.mxu0 }
 0x57e   : > { %v10980_v26 = vadd.f32 %v4917_v39, %v4752_v33 }
 0x57f   : > { %v4731_v45 = vpop.f32.mrf.mxu1  ;;  %v4925_v30 = vpop.f32.mrf.mxu0 }
 0x580   : > { %v4753_v14 = vadd.f32 %v4731_v45, %v10939_v1 }
 0x581   : > { %v7924_v57 = vpop.f32.mrf.mxu1  ;;  %v7965_v49 = vpop.f32.mrf.mxu0 }
 0x582   : > { %v10983_v50 = vadd.f32 %v4922_v13, %v4753_v14 }
 0x583   : > { %v4734_v0 = vpop.f32.mrf.mxu1  ;;  %v5240_v27 = vpop.f32.mrf.mxu0 }
 0x585   : > { %v7925_v52 = vpop.f32.mrf.mxu1  ;;  %v8012_v24 = vpop.f32.mrf.mxu0 }
 0x587   : > { %v5049_v19 = vpop.f32.mrf.mxu1  ;;  %v5243_v61 = vpop.f32.mrf.mxu0 }
 0x588   : > { %v5119_v2 = vadd.f32 %v5049_v19, %v10946_v20 }
 0x589   : > { %v7972_v59 = vpop.f32.mrf.mxu1  ;;  %v8013_v42 = vpop.f32.mrf.mxu0 }
 0x58a   : > { %v10986_v25 = vadd.f32 %v5240_v27, %v5119_v2 }
 0x58b   : > { %v5052_v37 = vpop.f32.mrf.mxu1  ;;  %v5248_v9 = vpop.f32.mrf.mxu0 }
 0x58c   : > { %v5120_v1 = vadd.f32 %v5052_v37, %v10952_v32 }
 0x58d   : > { %v7973_v63 = vpop.f32.mrf.mxu1  ;;  %v8016_v53 = vpop.f32.mrf.mxu0 }
 0x58e   : > { %v10989_v8 = vadd.f32 %v5243_v61, %v5120_v1 }
 0x58f   : > { %v5057_v34 = vpop.f32.mrf.mxu1  ;;  %v5251_v15 = vpop.f32.mrf.mxu0 }
 0x590   : > { %v5121_v18 = vadd.f32 %v5057_v34, %v10962_v36 }
 0x591   : > { %v7976_v22 = vpop.f32.mrf.mxu1  ;;  %v8017_v35 = vpop.f32.mrf.mxu0 }
 0x592   : > { %v10992_v31 = vadd.f32 %v5248_v9, %v5121_v18 }
 0x593   : > { %v5060_v20 = vpop.f32.mrf.mxu1  ;;  %v5256_v48 = vpop.f32.mrf.mxu0 }
 0x595   : > { %v7977_v51 = vpop.f32.mrf.mxu1  ;;  %v8020_v55 = vpop.f32.mrf.mxu0 }
 0x597   : > { %v5065_v28 = vpop.f32.mrf.mxu1  ;;  %v5259_v3 = vpop.f32.mrf.mxu0 }
 0x599   : > { %v7980_v11 = vpop.f32.mrf.mxu1  ;;  %v8021_v32 = vpop.f32.mrf.mxu0 }
 0x59b   : > { %v5068_v23 = vpop.f32.mrf.mxu1  ;;  %v5264_v10 = vpop.f32.mrf.mxu0 }
 0x59d   : > { %v7981_v41 = vpop.f32.mrf.mxu1  ;;  %v8024_v43 = vpop.f32.mrf.mxu0 }
 0x59f   : > { %v5073_v47 = vpop.f32.mrf.mxu1  ;;  %v5267_v4 = vpop.f32.mrf.mxu0 }
 0x5a1   : > { %v7984_v62 = vpop.f32.mrf.mxu1  ;;  %v8025_v36 = vpop.f32.mrf.mxu0 }
 0x5a3   : > { %v5076_v21 = vpop.f32.mrf.mxu1  ;;  %v5272_v40 = vpop.f32.mrf.mxu0 }
 0x5a4   : > { %v5126_v5 = vadd.f32 %v5076_v21, %v10968_v16 }
 0x5a5   : > { %v7985_v12 = vpop.f32.mrf.mxu1  ;;  %v8028_v46 = vpop.f32.mrf.mxu0 }
 0x5a6   : > { %v10995_v39 = vadd.f32 %v5267_v4, %v5126_v5  ;;  %v11015_v4 = vld [vmem:[%s11149_s6] ss:$0 sm:$0xff] }
 0x5a7   : > { %v5081_v17 = vpop.f32.mrf.mxu1  ;;  %v5275_v29 = vpop.f32.mrf.mxu0 }
 0x5a8   : > { %v5127_v58 = vadd.f32 %v5081_v17, %v10971_v60 }
 0x5a9   : > { %v7988_v54 = vpop.f32.mrf.mxu1  ;;  %v8029_v13 = vpop.f32.mrf.mxu0 }
 0x5aa   : > { %v10998_v33 = vadd.f32 %v5272_v40, %v5127_v58 }
 0x5ab   : > { %v5084_v56 = vpop.f32.mrf.mxu1  ;;  %v5280_v6 = vpop.f32.mrf.mxu0 }
 0x5ac   : > { %v5128_v45 = vadd.f32 %v5084_v56, %v10974_v44 }
 0x5ad   : > { %v7989_v30 = vpop.f32.mrf.mxu1  ;;  %v8032_v14 = vpop.f32.mrf.mxu0 }
 0x5ae   : > { %v11001_v57 = vadd.f32 %v5275_v29, %v5128_v45  ;;  %v8237_v30 = vld [vmem:[%s11150_s7] sm:$0xff]  }
 0x5af   : > { %v5089_v16 = vpop.f32.mrf.mxu1  ;;  %v5283_v49 = vpop.f32.mrf.mxu0 }
 0x5b1   : > { %v7992_v0 = vpop.f32.mrf.mxu1  ;;  %v8033_v27 = vpop.f32.mrf.mxu0 }
 0x5b3   : > { %v5092_v52 = vpop.f32.mrf.mxu1  ;;  %v5288_v24 = vpop.f32.mrf.mxu0 }
 0x5b4   : > { %v8238_v52 = vld [vmem:[%s11150_s7 + $0x10] sm:$0xff]  }
 0x5b5   : > { %v7993_v19 = vpop.f32.mrf.mxu1  ;;  %v8036_v60 = vpop.f32.mrf.mxu0 }
 0x5b7   : > { %v5097_v61 = vpop.f32.mrf.mxu1  ;;  %v5291_v2 = vpop.f32.mrf.mxu0 }
 0x5b9   : > { %v7996_v59 = vpop.f32.mrf.mxu1  ;;  %v8037_v42 = vpop.f32.mrf.mxu0 }
 0x5bb   : > { %v5100_v37 = vpop.f32.mrf.mxu1  ;;  %v5296_v9 = vpop.f32.mrf.mxu0 }
 0x5bd   : > { %v7997_v1 = vpop.f32.mrf.mxu1  ;;  %v8040_v44 = vpop.f32.mrf.mxu0 }
 0x5bf   : > { %v5105_v63 = vpop.f32.mrf.mxu1  ;;  %v5299_v53 = vpop.f32.mrf.mxu0 }
 0x5c0   : > { %v5133_v34 = vadd.f32 %v5105_v63, %v10977_v7 }
 0x5c1   : > { %v8000_v15 = vpop.f32.mrf.mxu1  ;;  %v8041_v18 = vpop.f32.mrf.mxu0 }
 0x5c2   : > { %v11004_v22 = vadd.f32 %v5296_v9, %v5133_v34 }
 0x5c3   : > { %v5108_v35 = vpop.f32.mrf.mxu1  ;;  %v5304_v20 = vpop.f32.mrf.mxu0 }
 0x5c4   : > { %v5134_v48 = vadd.f32 %v5108_v35, %v10980_v26 }
 0x5c5   : > { %v8001_v51 = vpop.f32.mrf.mxu1  ;;  %v8044_v55 = vpop.f32.mrf.mxu0 }
 0x5c6   : > { %v11007_v28 = vadd.f32 %v5299_v53, %v5134_v48 }
 0x5c7   : > { %v5113_v3 = vpop.f32.mrf.mxu1  ;;  %v5307_v11 = vpop.f32.mrf.mxu0 }
 0x5c8   : > { %v5135_v32 = vadd.f32 %v5113_v3, %v10983_v50 }
 0x5c9   : > { %v8004_v23 = vpop.f32.mrf.mxu1  ;;  %v8045_v10 = vpop.f32.mrf.mxu0 }
 0x5ca   : > { %v11010_v41 = vadd.f32 %v5304_v20, %v5135_v32  ;;  %v8241_v23 = vld [vmem:[%s11150_s7 + $0x30] sm:$0xff]  }
 0x5cb   : > { %v5116_v7 = vpop.f32.mrf.mxu1 }
 0x5cd   : > { %v8005_v43 = vpop.f32.mrf.mxu1 }
 0x5cf   : > { %v5431_v47 = vpop.f32.mrf.mxu1 }
 0x5d0   : > { %v5501_v26 = vadd.f32 %v5431_v47, %v10986_v25 }
 0x5d1   : > { %v8052_v62 = vpop.f32.mrf.mxu1 }
 0x5d2   : > { %v5525_v36 = vadd.f32 %v11015_v4, %v5501_v26  ;;  %v8242_v26 = vld [vmem:[%s11150_s7 + $0x38] sm:$0xff]  }
 0x5d3   : > { %v5434_v21 = vpop.f32.mrf.mxu1 }
 0x5d4   : > { %v5542_v50 = vmax.f32 %v5525_v36, 0.0  ;;  %v5502_v40 = vadd.f32 %v5434_v21, %v10989_v8 }
 0x5d5   : > { %v8053_v5 = vpop.f32.mrf.mxu1 }
 0x5d6   : > { %5560 = vst.msk [vmem:[#allocation4] sm:$0xff] %vm5559_vm5, %v5542_v50  ;;  %v5526_v12 = vadd.f32 %v11015_v4, %v5502_v40 }
 0x5d7   : > { %v5439_v46 = vpop.f32.mrf.mxu1 }
 0x5d8   : > { %v5543_v17 = vmax.f32 %v5526_v12, 0.0  ;;  %v5503_v29 = vadd.f32 %v5439_v46, %v10992_v31 }
 0x5d9   : > { %v8056_v58 = vpop.f32.mrf.mxu1 }
 0x5da   : > { %5561 = vst.msk [vmem:[#allocation4 + $0x8] sm:$0xff] %vm5559_vm5, %v5543_v17  ;;  %v5527_v25 = vadd.f32 %v11015_v4, %v5503_v29 }
 0x5db   : > { %v5442_v54 = vpop.f32.mrf.mxu1 }
 0x5dc   : > { %v5544_v13 = vmax.f32 %v5527_v25, 0.0 }
 0x5dd   : > { %v8057_v56 = vpop.f32.mrf.mxu1  ;;  %v5577_v0 = vld [vmem:[#allocation4] sm:$0xff] }
 0x5de   : > { %5562 = vst.msk [vmem:[#allocation4 + $0x10] sm:$0xff] %vm5559_vm5, %v5544_v13  ;;  %v5578_v24 = vpack.c.bf16 %v5577_v0, %v5577_v0 }
 0x5df   : > { %v5447_v8 = vpop.f32.mrf.mxu1 }
 0x5e1   : > { %v8060_v6 = vpop.f32.mrf.mxu1  ;;  %v5581_v45 = vld [vmem:[#allocation4 + $0x8] sm:$0xff] }
 0x5e2   : > { %v5582_v14 = vpack.c.bf16 %v5581_v45, %v5581_v45 }
 0x5e3   : > { %v5450_v16 = vpop.f32.mrf.mxu1 }
 0x5e4   : > { %8089 = vmatmul.mubr.msk.bf16.vlgmr.msra.gmra.mxu0 %vm5559_vm5, %v5582_v14 }
 0x5e5   : > { %v8061_v31 = vpop.f32.mrf.mxu1  ;;  %8093 = vmatpush3.bf16.msra.mxu0 %v8237_v30  ;;  %8094 = vmatprep.mubr.msk.bf16.mxu0 %vm8307_vm1, %v11306_v38  ;;  %v5684_v42 = vld [vmem:[#allocation4 + $0x10] sm:$0xff] }
 0x5e6   : > { %8098 = vmatprep.subr.bf16.mxu0 %v11306_v38  ;;  %v5685_v63 = vpack.c.bf16 %v5684_v42, %v5684_v42 }
 0x5e7   : > { %v5455_v49 = vpop.f32.mrf.mxu1 }
 0x5e9   : > { %v8064_v27 = vpop.f32.mrf.mxu1 }
 0x5eb   : > { %v5458_v19 = vpop.f32.mrf.mxu1 }
 0x5ec   : > { %v5508_v60 = vadd.f32 %v5458_v19, %v10995_v39  ;;  %8095 = vmatmul.mubr.msk.bf16.vlgmr.msra.gmra.mxu0 %vm5559_vm5, %v5578_v24  ;;  %v8239_v39 = vld [vmem:[%s11150_s7 + $0x20] sm:$0xff]  }
 0x5ed   : > { %v8065_v61 = vpop.f32.mrf.mxu1  ;;  %8099 = vmatpush3.bf16.msra.mxu0 %v8238_v52  ;;  %8100 = vmatprep.mubr.msk.bf16.mxu0 %vm8307_vm1, %v11306_v38 }
 0x5ee   : > { %v5532_v2 = vadd.f32 %v11015_v4, %v5508_v60  ;;  %8110 = vmatprep.subr.bf16.mxu0 %v11306_v38 }
 0x5ef   : > { %v5463_v59 = vpop.f32.mrf.mxu1 }
 0x5f0   : > { %v5549_v37 = vmax.f32 %v5532_v2, 0.0  ;;  %v5509_v9 = vadd.f32 %v5463_v59, %v10998_v33 }
 0x5f1   : > { %v8068_v1 = vpop.f32.mrf.mxu1 }
 0x5f2   : > { %5567 = vst.msk [vmem:[#allocation4 + $0x38] sm:$0xff] %vm5559_vm5, %v5549_v37  ;;  %v5533_v44 = vadd.f32 %v11015_v4, %v5509_v9 }
 0x5f3   : > { %v5466_v53 = vpop.f32.mrf.mxu1 }
 0x5f4   : > { %v5550_v34 = vmax.f32 %v5533_v44, 0.0  ;;  %v5510_v15 = vadd.f32 %v5466_v53, %v11001_v57  ;;  %8101 = vmatmul.mubr.msk.bf16.vlgmr.msra.gmra.mxu0 %vm5559_vm5, %v5685_v63  ;;  %v8240_v57 = vld [vmem:[%s11150_s7 + $0x28] sm:$0xff]  }
 0x5f5   : > { %v8069_v18 = vpop.f32.mrf.mxu1  ;;  %8111 = vmatpush3.bf16.msra.mxu0 %v8239_v39  ;;  %8112 = vmatprep.mubr.msk.bf16.mxu0 %vm8307_vm1, %v11306_v38 }
 0x5f6   : > { %5568 = vst.msk [vmem:[#allocation4 + $0x40] sm:$0xff] %vm5559_vm5, %v5550_v34  ;;  %v5534_v33 = vadd.f32 %v11015_v4, %v5510_v15  ;;  %8122 = vmatprep.subr.bf16.mxu0 %v11306_v38 }
 0x5f7   : > { %v5471_v35 = vpop.f32.mrf.mxu1 }
 0x5f8   : > { %v5551_v20 = vmax.f32 %v5534_v33, 0.0 }
 0x5f9   : > { %v8072_v48 = vpop.f32.mrf.mxu1  ;;  %v5739_v51 = vld [vmem:[#allocation4 + $0x38] sm:$0xff] }
 0x5fa   : > { %5569 = vst.msk [vmem:[#allocation4 + $0x48] sm:$0xff] %vm5559_vm5, %v5551_v20  ;;  %v5740_v55 = vpack.c.bf16 %v5739_v51, %v5739_v51 }
 0x5fb   : > { %v5474_v3 = vpop.f32.mrf.mxu1 }
 0x5fc   : > { %8107 = vmatmul.mubr.msk.bf16.vlgmr.msra.gmra.mxu1 %vm5559_vm5, %v5740_v55 }
 0x5fd   : > { %v8073_v11 = vpop.f32.mrf.mxu1  ;;  %v5794_v32 = vld [vmem:[#allocation4 + $0x40] sm:$0xff]  ;;  %8117 = vmatpush3.bf16.msra.mxu1 %v8240_v57  ;;  %8118 = vmatprep.mubr.msk.bf16.mxu1 %vm8307_vm1, %v11306_v38 }
 0x5fe   : > { %v5795_v10 = vpack.c.bf16 %v5794_v32, %v5794_v32  ;;  %8128 = vmatprep.subr.bf16.mxu1 %v11306_v38 }
 0x5ff   : > { %v5479_v7 = vpop.f32.mrf.mxu1 }
 0x600   : > { %8113 = vmatmul.mubr.msk.bf16.vlgmr.msra.gmra.mxu0 %vm5559_vm5, %v5795_v10 }
 0x601   : > { %v8076_v43 = vpop.f32.mrf.mxu1  ;;  %v5849_v47 = vld [vmem:[#allocation4 + $0x48] sm:$0xff]  ;;  %8123 = vmatpush3.bf16.msra.mxu0 %v8241_v23  ;;  %8124 = vmatprep.mubr.msk.bf16.mxu0 %vm8307_vm1, %v11306_v38 }
 0x602   : > { %v5850_v62 = vpack.c.bf16 %v5849_v47, %v5849_v47  ;;  %8134 = vmatprep.subr.bf16.mxu0 %v11306_v38 }
 0x603   : > { %v5482_v36 = vpop.f32.mrf.mxu1 }
 0x604   : > { %8119 = vmatmul.mubr.msk.bf16.vlgmr.msra.gmra.mxu1 %vm5559_vm5, %v5850_v62 }
 0x605   : > { %v8077_v21 = vpop.f32.mrf.mxu1  ;;  %8129 = vmatpush3.bf16.msra.mxu1 %v8242_v26  ;;  %8130 = vmatprep.mubr.msk.bf16.mxu1 %vm8307_vm1, %v11306_v38 }
 0x606   : > { %v6603_v21 = vld [vmem:[%s11151_s8] ss:$0 sm:$0xff] }
 0x607   : > { %v5487_v50 = vpop.f32.mrf.mxu1 }
 0x608   : > { %v5515_v40 = vadd.f32 %v5487_v50, %v11004_v22 }
 0x609   : > { %v8080_v5 = vpop.f32.mrf.mxu1 }
 0x60a   : > { %v5539_v12 = vadd.f32 %v11015_v4, %v5515_v40 }
 0x60b   : > { %v5490_v46 = vpop.f32.mrf.mxu1 }
 0x60c   : > { %v5556_v17 = vmax.f32 %v5539_v12, 0.0  ;;  %v5516_v29 = vadd.f32 %v5490_v46, %v11007_v28  ;;  %v8243_v28 = vld [vmem:[%s11150_s7 + $0x40] sm:$0xff]  }
 0x60d   : > { %v8081_v58 = vpop.f32.mrf.mxu1 }
 0x60e   : > { %5574 = vst.msk [vmem:[#allocation4 + $0x70] sm:$0xff] %vm5559_vm5, %v5556_v17  ;;  %v5540_v25 = vadd.f32 %v11015_v4, %v5516_v29 }
 0x60f   : > { %v5495_v54 = vpop.f32.mrf.mxu1 }
 0x610   : > { %v5557_v13 = vmax.f32 %v5540_v25, 0.0  ;;  %v5517_v56 = vadd.f32 %v5495_v54, %v11010_v41 }
 0x611   : > { %v8084_v8 = vpop.f32.mrf.mxu1 }
 0x612   : > { %5575 = vst.msk [vmem:[#allocation4 + $0x78] sm:$0xff] %vm5559_vm5, %v5557_v13  ;;  %v5541_v22 = vadd.f32 %v11015_v4, %v5517_v56 }
 0x613   : > { %v5498_v6 = vpop.f32.mrf.mxu1 }
 0x614   : > { %v5558_v45 = vmax.f32 %v5541_v22, 0.0 }
 0x615   : > { %v8085_v30 = vpop.f32.mrf.mxu1  ;;  %v5904_v14 = vld [vmem:[#allocation4 + $0x70] sm:$0xff] }
 0x616   : > { %5576 = vst.msk [vmem:[#allocation4 + $0x80] sm:$0xff] %vm5559_vm5, %v5558_v45  ;;  %v5905_v16 = vpack.c.bf16 %v5904_v14, %v5904_v14 }
 0x618   : > { %8125 = vmatmul.mubr.msk.bf16.vlgmr.msra.gmra.mxu0 %vm5559_vm5, %v5905_v16 }
 0x619   : > { %8135 = vmatpush3.bf16.msra.mxu0 %v8243_v28  ;;  %v5959_v41 = vld [vmem:[#allocation4 + $0x78] sm:$0xff]  ;;  %8136 = vmatprep.mubr.msk.bf16.mxu0 %vm8307_vm1, %v11306_v38 }
 0x61a   : > { %v5960_v31 = vpack.c.bf16 %v5959_v41, %v5959_v41 }
 0x61c   : > { %8131 = vmatmul.mubr.msk.bf16.vlgmr.msra.gmra.mxu1 %vm5559_vm5, %v5960_v31 }
 0x61d   : > { %v6014_v4 = vld [vmem:[#allocation4 + $0x80] sm:$0xff] }
 0x61e   : > { %v6015_v49 = vpack.c.bf16 %v6014_v4, %v6014_v4 }
 0x620   : > { %8137 = vmatmul.mubr.msk.bf16.vlgmr.msra.gmra.mxu0 %vm5559_vm5, %v6015_v49 }
 0x6a4   : > { %v5629_v0 = vpop.f32.mrf.mxu0 }
 0x6a6   : > { %v8090_v27 = vpop.f32.mrf.mxu0 }
 0x6a8   : > { %v5632_v52 = vpop.f32.mrf.mxu0 }
 0x6aa   : > { %v8091_v24 = vpop.f32.mrf.mxu0 }
 0x6ac   : > { %v5678_v19 = vpop.f32.mrf.mxu0 }
 0x6ad   : > { %v5679_v48 = vadd.f32 %v5678_v19, %v5629_v0 }
 0x6ae   : > { %v8096_v60 = vpop.f32.mrf.mxu0 }
 0x6b0   : > { %v5681_v61 = vpop.f32.mrf.mxu0 }
 0x6b2   : > { %v8097_v2 = vpop.f32.mrf.mxu0 }
 0x6b4   : > { %v5732_v59 = vpop.f32.mrf.mxu0 }
 0x6b5   : > { %v5738_v51 = vadd.f32 %v5732_v59, %v5679_v48 }
 0x6b6   : > { %v8102_v42 = vpop.f32.mrf.mxu0 }
 0x6b8   : > { %v5735_v37 = vpop.f32.mrf.mxu0 }
 0x6ba   : > { %v8103_v9 = vpop.f32.mrf.mxu0 }
 0x6bc   : > { %v5787_v38 = vpop.f32.mrf.mxu1 }
 0x6bd   : > { %v5793_v57 = vadd.f32 %v5787_v38, %v5738_v51 }
 0x6be   : > { %v8108_v1 = vpop.f32.mrf.mxu1 }
 0x6c0   : > { %v5790_v39 = vpop.f32.mrf.mxu1  ;;  %v5842_v44 = vpop.f32.mrf.mxu0 }
 0x6c1   : > { %v5848_v3 = vadd.f32 %v5842_v44, %v5793_v57 }
 0x6c2   : > { %v8109_v63 = vpop.f32.mrf.mxu1  ;;  %v8114_v53 = vpop.f32.mrf.mxu0 }
 0x6c4   : > { %v5845_v34 = vpop.f32.mrf.mxu0  ;;  %v5897_v15 = vpop.f32.mrf.mxu1 }
 0x6c5   : > { %v5903_v32 = vadd.f32 %v5897_v15, %v5848_v3 }
 0x6c6   : > { %v8115_v18 = vpop.f32.mrf.mxu0  ;;  %v8120_v33 = vpop.f32.mrf.mxu1 }
 0x6c8   : > { %v5900_v35 = vpop.f32.mrf.mxu1 }
 0x6ca   : > { %v8121_v20 = vpop.f32.mrf.mxu1 }
 0x6d8   : > { %v5952_v55 = vpop.f32.mrf.mxu0 }
 0x6d9   : > { %v5958_v7 = vadd.f32 %v5952_v55, %v5903_v32 }
 0x6da   : > { %v8126_v11 = vpop.f32.mrf.mxu0 }
 0x6dc   : > { %v5955_v23 = vpop.f32.mrf.mxu0  ;;  %v6007_v10 = vpop.f32.mrf.mxu1 }
 0x6dd   : > { %v6013_v26 = vadd.f32 %v6007_v10, %v5958_v7 }
 0x6de   : > { %v8127_v43 = vpop.f32.mrf.mxu0  ;;  %v8132_v47 = vpop.f32.mrf.mxu1 }
 0x6e0   : > { %v6010_v62 = vpop.f32.mrf.mxu1  ;;  %v6062_v36 = vpop.f32.mrf.mxu0 }
 0x6e1   : > { %v6068_v50 = vadd.f32 %v6062_v36, %v6013_v26 }
 0x6e2   : > { %v8133_v40 = vpop.f32.mrf.mxu1  ;;  %v8138_v5 = vpop.f32.mrf.mxu0 }
 0x6e3   : > { %v6076_v12 = vadd.f32 %v6603_v21, %v6068_v50 }
 0x6e4   : > { %v6065_v46 = vpop.f32.mrf.mxu0 }
 0x6e5   : > { %6077 = vst.msk [vmem:[%s326_s22] sm:$0xff] %vm3816_vm4, %v6076_v12 }
 0x6e6   : > { %v8139_v17 = vpop.f32.mrf.mxu0 }
 0x6e7   : > { %8257 = shalt.err (!%p8254_p3)
}
 0x6e8   : > { %s8258_s17 = scalar_lea.hbm %s11101_s25, 128  ;;  %s8262_s22 = scalar_lea.hbm %s11152_s9, 256 }
 0x6e9   : > { %p8259_p4 = scmp.ne.s32.totalorder %s11101_s25, %s8258_s17  ;;  %p8263_p9 = scmp.lt.s32.totalorder %s11101_s25, %s11152_s9 }
 0x6ea   : > { %p8264_p10 = scmp.lt.s32.totalorder %s8262_s22, %s8258_s17 }
 0x6eb   : > { %p8260_p7 = pnand %p8259_p4, %p8397_p5 }
 0x6ec   : > { %p8265_p11 = por %p8264_p10, %p8263_p9 }
 0x6ed   : > { %p8261_p8 = pneg %p8260_p7 }
 0x6ef   : > { %p8266_p12 = pnand %p8265_p11, %p8261_p8 }
 0x6f1   : > { %8269 = shalt.err (!%p8266_p12)
}
 0x6f2   : > { %8140 = dma.vmem_to_hbm [thread:$0]  (%p8397_p5), %s11103_s27, 128, %s11101_s25, %s6079_s13  }
 0x6f3 PF: > { %p8146_p13 = scmp.ge.s32.totalorder %s8304_s12, 2  ;;  %s6104_s26 = sand.u32 1, %s8292_s30  }
 0x6f4   : > { %s6105_s28 = scalar_lea.sflag [#allocation6], %s6104_s26 }
 0x6f5   : > { %p8143_p0 = pnand %p8146_p13, %p8401_p6 }
 0x6f7   : > { %p8144_p1 = pneg %p8143_p0 }
 0x6f9   : > { %8287 = dma.done.wait (%p8144_p1), %s6105_s28, 128  }
 0x6fa   : > { %8289 = vsyncadd (%p8144_p1), %s6105_s28, 4294967168  ;;  %p19_p2 = scmp.ge.s32.totalorder %s8384_s15, 4   ;;  %s11441_s30 = smov %s8296_s10 }
 0x6fb   : > { %s11442_s10 = smov %s8300_s11  ;;  %s11443_s11 = smov %s8395_s18 }
 0x6fc   : > { %s11444_s12 = smov %s8384_s15  ;;  %21 = sbr.rel (!%p19_p2) target bundleno = 3 (0x3), region = 115 }
 0x701   :  { %6110 = vsyncpa [#allocation6], 1 }
 0x702   :  { %6112 = vsyncpa [#allocation6 + $0x1], 1 }

</bundles_post_ra>
